<compile_context>
chip_gen: v7x
topology: tpu7x:2x2x1
jax: 0.10.0
libtpu: 0.0.40
codegen_flags: <defaults>
</compile_context>

<pallas_src>
import numpy as np
import jax
import jax.numpy as jnp
from jax import lax
from jax.experimental import pallas as pl
from jax.experimental.pallas import tpu as pltpu

# ---- module-level constants implied by the original autoencoder.py ----------
chunk_channels = 4
frame_channels = 3
chunk_height = 4
chunk_width = 4
chunkified_height = 8
chunkified_width = 8
stride_h = chunk_height // 2
stride_w = chunk_width // 2
frame_height = (chunkified_height - 1) * stride_h + chunk_height   # 18
frame_width = (chunkified_width - 1) * stride_w + chunk_width      # 18

# ---- fused-kernel geometry ---------------------------------------------------
K_IN = chunk_channels * chunkified_height * chunkified_width       # 256
N_OUT = frame_channels * frame_height * frame_width                # 972
M1P = 1024            # layer-1 feature width padded 972 -> 1024 (lane-dense h)
TB_MAX = 256          # batch rows per grid step (sublane dim of both GEMMs)


def _round_up(x, m):
    return (x + m - 1) // m * m


# ------------------------------ Pallas kernel --------------------------------
def _decoder_kernel(x_ref, w1_ref, b1_ref, w2_ref, b2_ref, o_ref, h_ref):
    # layer 1: ConvTranspose2d(4->3, 4x4, stride 2) + ReLU, as one dense GEMM.
    h = jnp.dot(x_ref[...], w1_ref[...], preferred_element_type=jnp.float32)
    h = jnp.maximum(h + b1_ref[...], 0.0)
    h_ref[...] = h.astype(h_ref.dtype)          # bf16 intermediate, VMEM only
    # layer 2: ConvTranspose2d(3->3, 7x7, stride 1, pad 3) + ReLU, one GEMM.
    out = jnp.dot(h_ref[...], w2_ref[...], preferred_element_type=jnp.float32)
    o_ref[...] = jnp.maximum(out + b2_ref[...], 0.0).astype(o_ref.dtype)


# -------------------- dense-map construction (host-side glue) ----------------
def _convtranspose_dense_t(w, in_h, in_w, stride, pad, out_h, out_w):
    """PyTorch ConvTranspose2d weight (Cin,Cout,Kh,Kw) -> dense transposed map
    of shape (Cin*IH*IW, Cout*OH*OW) so that out_flat = x_flat @ M.

    Built via a small einsum against static 0/1 connectivity tensors
    Rh[oh,ih,kh] = [oh == ih*sh + kh - ph] (and Rw likewise) — no conv, no
    scatter, a few M-FLOPs of XLA glue."""
    cin, cout, kh, kw = w.shape
    rh = (np.arange(out_h)[:, None, None] ==
          np.arange(in_h)[None, :, None] * stride[0]
          + np.arange(kh)[None, None, :] - pad[0]).astype(np.float32)
    rw = (np.arange(out_w)[:, None, None] ==
          np.arange(in_w)[None, :, None] * stride[1]
          + np.arange(kw)[None, None, :] - pad[1]).astype(np.float32)
    # i=cin, o=cout, k=kh, l=kw, p=oh, q=ih, r=ow, s=iw
    m = jnp.einsum('iokl,pqk,rsl->iqsopr', w.astype(jnp.float32),
                   jnp.asarray(rh), jnp.asarray(rw))
    return m.reshape(cin * in_h * in_w, cout * out_h * out_w)


def init_decoder_params(key):
    k1, k2, k3, k4 = jax.random.split(key, 4)
    fan1 = chunk_channels * chunk_height * chunk_width
    w1 = jax.random.normal(
        k1, (chunk_channels, frame_channels, chunk_height, chunk_width),
        jnp.float32) / np.sqrt(fan1)
    b1 = jax.random.normal(k2, (frame_channels,), jnp.float32) * 0.01
    fan2 = frame_channels * 7 * 7
    w2 = jax.random.normal(
        k3, (frame_channels, frame_channels, 7, 7), jnp.float32) / np.sqrt(fan2)
    b2 = jax.random.normal(k4, (frame_channels,), jnp.float32) * 0.01
    return w1, b1, w2, b2


@jax.jit
def decoder_forward(params, chunks):
    w1, b1, w2, b2 = params
    original_shape = chunks.shape

    # (..., 4, 8, 8) -> (B, 256) row-major; no transpose, no zero-insertion.
    x = chunks.reshape(-1, K_IN)
    batch = x.shape[0]
    tb = min(TB_MAX, _round_up(batch, 16))       # sublane-friendly batch tile
    num_tiles = (batch + tb - 1) // tb
    b_pad = num_tiles * tb
    x = jnp.pad(x, ((0, b_pad - batch), (0, 0))).astype(jnp.bfloat16)

    # Fold each ConvTranspose2d into a dense (features_in, features_out) map.
    w1t = _convtranspose_dense_t(w1, chunkified_height, chunkified_width,
                                 (stride_h, stride_w), (0, 0),
                                 frame_height, frame_width)            # (256, 972)
    w1t = jnp.pad(w1t, ((0, 0), (0, M1P - N_OUT))).astype(jnp.bfloat16)  # (256,1024)
    w2t = _convtranspose_dense_t(w2, frame_height, frame_width,
                                 (1, 1), (3, 3),
                                 frame_height, frame_width)            # (972, 972)
    w2t = jnp.pad(w2t, ((0, M1P - N_OUT), (0, 0))).astype(jnp.bfloat16)  # (1024,972)
    # Biases broadcast over (oh, ow); padded h lanes stay exactly 0 (zero bias
    # + zero W1T columns), so the zero-padded W2T rows contribute nothing.
    b1f = jnp.pad(jnp.repeat(b1, frame_height * frame_width),
                  (0, M1P - N_OUT)).reshape(1, M1P).astype(jnp.float32)
    b2f = jnp.repeat(b2, frame_height * frame_width).reshape(1, N_OUT)
    b2f = b2f.astype(jnp.float32)

    flops = 2 * b_pad * (K_IN * M1P + M1P * N_OUT)
    bytes_accessed = (x.size * 2 + w1t.size * 2 + w2t.size * 2
                      + b1f.size * 4 + b2f.size * 4 + b_pad * N_OUT * 4)

    out = pl.pallas_call(
        _decoder_kernel,
        out_shape=jax.ShapeDtypeStruct((b_pad, N_OUT), jnp.float32),
        grid_spec=pltpu.PrefetchScalarGridSpec(
            num_scalar_prefetch=0,
            grid=(num_tiles,),
            in_specs=[
                pl.BlockSpec((tb, K_IN), lambda i: (i, 0)),     # x tile
                pl.BlockSpec((K_IN, M1P), lambda i: (0, 0)),    # W1T (resident)
                pl.BlockSpec((1, M1P), lambda i: (0, 0)),       # b1
                pl.BlockSpec((M1P, N_OUT), lambda i: (0, 0)),   # W2T (resident)
                pl.BlockSpec((1, N_OUT), lambda i: (0, 0)),     # b2
            ],
            out_specs=pl.BlockSpec((tb, N_OUT), lambda i: (i, 0)),
            scratch_shapes=[pltpu.VMEM((tb, M1P), jnp.bfloat16)],
        ),
        compiler_params=pltpu.CompilerParams(
            dimension_semantics=("parallel",)),
        cost_estimate=pl.CostEstimate(flops=flops, transcendentals=0,
                                      bytes_accessed=bytes_accessed),
    )(x, w1t, b1f, w2t, b2f)

    # (B_pad, 972) -> crop batch -> free reshape to (..., 3, 18, 18).
    frames = out[:batch].reshape(*original_shape[:-3], frame_channels,
                                 frame_height, frame_width)
    return frames


# ---------------------------- pure-JAX reference ------------------------------
def _conv_transpose_relu_ref(x, w, b, stride, padding):
    cin, cout, kh, kw = w.shape
    sh, sw = stride
    ph, pw = padding
    wc = jnp.transpose(w[:, :, ::-1, ::-1], (1, 0, 2, 3))      # (Cout, Cin, Kh, Kw)
    out = lax.conv_general_dilated(
        x, wc, window_strides=(1, 1),
        padding=[(kh - 1 - ph, kh - 1 - ph), (kw - 1 - pw, kw - 1 - pw)],
        lhs_dilation=(sh, sw),
        dimension_numbers=('NCHW', 'OIHW', 'NCHW'))
    return jnp.maximum(out + b.reshape(1, -1, 1, 1), 0.0)


def _ref_decoder(params, chunks):
    w1, b1, w2, b2 = params
    h = _conv_transpose_relu_ref(chunks, w1, b1, (stride_h, stride_w), (0, 0))
    return _conv_transpose_relu_ref(h, w2, b2, (1, 1), (3, 3))


if __name__ == "__main__":
    key = jax.random.PRNGKey(0)
    kp, kx = jax.random.split(key)
    params = init_decoder_params(kp)

    # small deterministic input consistent with the module (batch=2 chunks)
    chunks = jax.random.normal(
        kx, (2, chunk_channels, chunkified_height, chunkified_width), jnp.float32)
    frames = jax.block_until_ready(decoder_forward(params, chunks))
    assert frames.shape == (2, frame_channels, frame_height, frame_width), frames.shape

    # bf16 MXU operands vs f32 XLA-conv reference -> 5e-2 tolerance expected.
    ref = _ref_decoder(params, chunks)
    np.testing.assert_allclose(np.asarray(frames), np.asarray(ref),
                               rtol=5e-2, atol=5e-2)

    # multi-tile grid + batch-padding path (300 images -> 2 grid steps)
    chunks2 = jax.random.normal(
        jax.random.PRNGKey(1),
        (300, chunk_channels, chunkified_height, chunkified_width), jnp.float32)
    frames2 = jax.block_until_ready(decoder_forward(params, chunks2))
    ref2 = _ref_decoder(params, chunks2)
    np.testing.assert_allclose(np.asarray(frames2), np.asarray(ref2),
                               rtol=5e-2, atol=5e-2)

    print("KERNEL_OK")
</pallas_src>

<mosaic_0001>
module attributes {stable_mosaic.version = 11 : i64} {
  func.func @_decoder_kernel(%arg0: i32, %arg1: memref<16x256xbf16, #tpu.memory_space<vmem>>, %arg2: memref<256x1024xbf16, #tpu.memory_space<vmem>>, %arg3: memref<1x1024xf32, #tpu.memory_space<vmem>>, %arg4: memref<1024x972xbf16, #tpu.memory_space<vmem>>, %arg5: memref<1x972xf32, #tpu.memory_space<vmem>>, %arg6: memref<16x972xf32, #tpu.memory_space<vmem>>, %arg7: memref<16x1024xbf16, #tpu.memory_space<vmem>>) attributes {dimension_semantics = [#tpu.dimension_semantics<parallel>], iteration_bounds = array<i64: 1>, scalar_prefetch = 0 : i64, scratch_operands = 1 : i64, tpu.core_type = #tpu.core_type<tc>, window_params = [{transform_indices = @transform_0, window_bounds = array<i64: 16, 256>}, {pipeline_mode = #tpu.pipeline_mode<synchronous>, transform_indices = @transform_1, window_bounds = array<i64: 256, 1024>}, {pipeline_mode = #tpu.pipeline_mode<synchronous>, transform_indices = @transform_2, window_bounds = array<i64: 1, 1024>}, {pipeline_mode = #tpu.pipeline_mode<synchronous>, transform_indices = @transform_3, window_bounds = array<i64: 1024, 972>}, {pipeline_mode = #tpu.pipeline_mode<synchronous>, transform_indices = @transform_4, window_bounds = array<i64: 1, 972>}, {transform_indices = @transform_5, window_bounds = array<i64: 16, 972>}]} {
    %c0 = arith.constant 0 : index
    %c0_0 = arith.constant 0 : index
    %0 = vector.load %arg1[%c0, %c0_0] : memref<16x256xbf16, #tpu.memory_space<vmem>>, vector<16x256xbf16>
    %c0_1 = arith.constant 0 : index
    %c0_2 = arith.constant 0 : index
    %1 = vector.load %arg2[%c0_1, %c0_2] : memref<256x1024xbf16, #tpu.memory_space<vmem>>, vector<256x1024xbf16>
    %cst = arith.constant dense<0.000000e+00> : vector<16x1024xf32>
    %2 = tpu.matmul %0, %1, %cst {dimension_numbers = #tpu.dot_dimension_numbers<[1], [0], [0], [1], [0, 0, 1, 1], [], []>} : vector<16x256xbf16>, vector<256x1024xbf16>, vector<16x1024xf32> -> vector<16x1024xf32>
    %c0_3 = arith.constant 0 : index
    %c0_4 = arith.constant 0 : index
    %3 = vector.load %arg3[%c0_3, %c0_4] : memref<1x1024xf32, #tpu.memory_space<vmem>>, vector<1x1024xf32>
    %4 = vector.broadcast %3 : vector<1x1024xf32> to vector<16x1024xf32>
    %5 = arith.addf %2, %4 : vector<16x1024xf32>
    %cst_5 = arith.constant 0.000000e+00 : f32
    %6 = vector.broadcast %cst_5 : f32 to vector<16x1024xf32>
    %7 = arith.maximumf %5, %6 : vector<16x1024xf32>
    %8 = arith.truncf %7 : vector<16x1024xf32> to vector<16x1024xbf16>
    %c0_6 = arith.constant 0 : index
    %c0_7 = arith.constant 0 : index
    %9 = vector.load %arg7[%c0_6, %c0_7] : memref<16x1024xbf16, #tpu.memory_space<vmem>>, vector<16x1024xbf16>
    tpu.vector_store %arg7[%c0_6, %c0_7], %8 {strides = array<i32>} : memref<16x1024xbf16, #tpu.memory_space<vmem>>, vector<16x1024xbf16>,
    %c0_8 = arith.constant 0 : index
    %c0_9 = arith.constant 0 : index
    %10 = vector.load %arg7[%c0_8, %c0_9] : memref<16x1024xbf16, #tpu.memory_space<vmem>>, vector<16x1024xbf16>
    %c0_10 = arith.constant 0 : index
    %c0_11 = arith.constant 0 : index
    %11 = vector.load %arg4[%c0_10, %c0_11] : memref<1024x972xbf16, #tpu.memory_space<vmem>>, vector<1024x972xbf16>
    %cst_12 = arith.constant dense<0.000000e+00> : vector<16x972xf32>
    %12 = tpu.matmul %10, %11, %cst_12 {dimension_numbers = #tpu.dot_dimension_numbers<[1], [0], [0], [1], [0, 0, 1, 1], [], []>} : vector<16x1024xbf16>, vector<1024x972xbf16>, vector<16x972xf32> -> vector<16x972xf32>
    %c0_13 = arith.constant 0 : index
    %c0_14 = arith.constant 0 : index
    %13 = vector.load %arg5[%c0_13, %c0_14] : memref<1x972xf32, #tpu.memory_space<vmem>>, vector<1x972xf32>
    %14 = vector.broadcast %13 : vector<1x972xf32> to vector<16x972xf32>
    %15 = arith.addf %12, %14 : vector<16x972xf32>
    %cst_15 = arith.constant 0.000000e+00 : f32
    %16 = vector.broadcast %cst_15 : f32 to vector<16x972xf32>
    %17 = arith.maximumf %15, %16 : vector<16x972xf32>
    %c0_16 = arith.constant 0 : index
    %c0_17 = arith.constant 0 : index
    %18 = vector.load %arg6[%c0_16, %c0_17] : memref<16x972xf32, #tpu.memory_space<vmem>>, vector<16x972xf32>
    tpu.vector_store %arg6[%c0_16, %c0_17], %17 {strides = array<i32>} : memref<16x972xf32, #tpu.memory_space<vmem>>, vector<16x972xf32>,
    return
  }
  func.func @transform_0(%arg0: i32) -> (i32, i32) {
    %c0_i32 = arith.constant 0 : i32
    %c0_i32_0 = arith.constant 0 : i32
    return %arg0, %c0_i32 : i32, i32
  }
  func.func @transform_1(%arg0: i32) -> (i32, i32) {
    %c0_i32 = arith.constant 0 : i32
    %c0_i32_0 = arith.constant 0 : i32
    %c0_i32_1 = arith.constant 0 : i32
    return %c0_i32, %c0_i32_0 : i32, i32
  }
  func.func @transform_2(%arg0: i32) -> (i32, i32) {
    %c0_i32 = arith.constant 0 : i32
    %c0_i32_0 = arith.constant 0 : i32
    %c0_i32_1 = arith.constant 0 : i32
    return %c0_i32, %c0_i32_0 : i32, i32
  }
  func.func @transform_3(%arg0: i32) -> (i32, i32) {
    %c0_i32 = arith.constant 0 : i32
    %c0_i32_0 = arith.constant 0 : i32
    %c0_i32_1 = arith.constant 0 : i32
    return %c0_i32, %c0_i32_0 : i32, i32
  }
  func.func @transform_4(%arg0: i32) -> (i32, i32) {
    %c0_i32 = arith.constant 0 : i32
    %c0_i32_0 = arith.constant 0 : i32
    %c0_i32_1 = arith.constant 0 : i32
    return %c0_i32, %c0_i32_0 : i32, i32
  }
  func.func @transform_5(%arg0: i32) -> (i32, i32) {
    %c0_i32 = arith.constant 0 : i32
    %c0_i32_0 = arith.constant 0 : i32
    return %arg0, %c0_i32 : i32, i32
  }
}

</mosaic_0001>

<bundles_post_ra>
// kernel: decoder_forward.1
= control target key start
LH: loop header
LB: loop body
LE: loop exit
PB: predicated region body
PF: predicated region fallthrough
CT: control target
= control target key end

     0   :  { %vm4879_vm0 = vcmask 621568   ;;  %s7766_s1 = inlined_call_operand.vmem [shape: bf16[256,1024], index: 1, kind: input, shape index: {}]   ;;  %s7767_s0 = inlined_call_operand.vmem [shape: bf16[16,256], index: 0, kind: input, shape index: {}]   ;;  %s7768_s3 = inlined_call_operand.vmem [shape: bf16[1024,972], index: 3, kind: input, shape index: {}]   ;;  %s7769_s2 = inlined_call_operand.vmem [shape: f32[1,1024], index: 2, kind: input, shape index: {}]   ;;  %s7770_s4 = inlined_call_operand.vmem [shape: f32[1,972], index: 4, kind: input, shape index: {}]   ;;  %s7771_s5 = inlined_call_operand.vmem [shape: f32[16,972], index: 5, kind: output, shape index: {}]  }
   0x1   :  { %v22_v0 = vld [vmem:[%s7766_s1] sm:$0xff]  ;;  %v23_v17 = vld [vmem:[%s7766_s1 + $0x8] sm:$0xff] }
   0x2   :  { %v26_v1 = vld [vmem:[%s7766_s1 + $0x20] sm:$0xff]  ;;  %v27_v18 = vld [vmem:[%s7766_s1 + $0x28] sm:$0xff] }
   0x3   :  { %v30_v2 = vld [vmem:[%s7766_s1 + $0x40] sm:$0xff]  ;;  %v4896_v3 = vcombine.high %v22_v0, %v26_v1  ;;  %v4895_v4 = vcombine.low %v22_v0, %v26_v1  ;;  %v4898_v20 = vcombine.high %v23_v17, %v27_v18  ;;  %v4897_v21 = vcombine.low %v23_v17, %v27_v18  ;;  %v31_v23 = vld [vmem:[%s7766_s1 + $0x48] sm:$0xff] }
   0x4   :  { %v34_v5 = vld [vmem:[%s7766_s1 + $0x60] sm:$0xff]  ;;  %v35_v25 = vld [vmem:[%s7766_s1 + $0x68] sm:$0xff] }
   0x5   :  { %v4904_v6 = vcombine.high %v30_v2, %v34_v5  ;;  %v38_v7 = vld [vmem:[%s7766_s1 + $0x80] sm:$0xff]  ;;  %842 = vmatprep.subr.bf16.mxu0 %v4896_v3  ;;  %v4903_v9 = vcombine.low %v30_v2, %v34_v5  ;;  %v39_v26 = vld [vmem:[%s7766_s1 + $0x88] sm:$0xff]  ;;  %885 = vmatprep.subr.bf16.mxu1 %v4898_v20  ;;  %v4906_v30 = vcombine.high %v31_v23, %v35_v25 }
   0x6   :  { %v42_v8 = vld [vmem:[%s7766_s1 + $0xa0] sm:$0xff]  ;;  %843 = vmatpush1.bf16.msra.mxu0 %v4895_v4  ;;  %v43_v27 = vld [vmem:[%s7766_s1 + $0xa8] sm:$0xff]  ;;  %886 = vmatpush1.bf16.msra.mxu1 %v4897_v21  ;;  %v4905_v31 = vcombine.low %v31_v23, %v35_v25 }
   0x7   :  { %844 = vmatprep.subr.bf16.mxu0 %v4904_v6  ;;  %v4912_v10 = vcombine.high %v38_v7, %v42_v8  ;;  %v46_v11 = vld [vmem:[%s7766_s1 + $0xc0] sm:$0xff]  ;;  %v4911_v13 = vcombine.low %v38_v7, %v42_v8  ;;  %887 = vmatprep.subr.bf16.mxu1 %v4906_v30  ;;  %v4914_v33 = vcombine.high %v39_v26, %v43_v27  ;;  %v47_v35 = vld [vmem:[%s7766_s1 + $0xc8] sm:$0xff] }
   0x8   :  { %v50_v12 = vld [vmem:[%s7766_s1 + $0xe0] sm:$0xff]  ;;  %v51_v36 = vld [vmem:[%s7766_s1 + $0xe8] sm:$0xff]  ;;  %v4913_v39 = vcombine.low %v39_v26, %v43_v27 }
   0x9   :  { %v4920_v14 = vcombine.high %v46_v11, %v50_v12  ;;  %v54_v15 = vld [vmem:[%s7766_s1 + $0x100] sm:$0xff]  ;;  %v4919_v19 = vcombine.low %v46_v11, %v50_v12  ;;  %v4922_v41 = vcombine.high %v47_v35, %v51_v36  ;;  %v55_v43 = vld [vmem:[%s7766_s1 + $0x108] sm:$0xff]  ;;  %v4921_v47 = vcombine.low %v47_v35, %v51_v36 }
   0xa   :  { %845 = vmatpush1.bf16.msra.mxu0 %v4903_v9  ;;  %v58_v16 = vld [vmem:[%s7766_s1 + $0x120] sm:$0xff]  ;;  %888 = vmatpush1.bf16.msra.mxu1 %v4905_v31  ;;  %v59_v44 = vld [vmem:[%s7766_s1 + $0x128] sm:$0xff] }
   0xb   :  { %846 = vmatprep.subr.bf16.mxu0 %v4912_v10  ;;  %v5671_v22 = vld [vmem:[%s7767_s0 + $0x4] ss:$8 sps:$4 sm:$0xff]   ;;  %v4928_v24 = vcombine.high %v54_v15, %v58_v16  ;;  %v4927_v32 = vcombine.low %v54_v15, %v58_v16  ;;  %889 = vmatprep.subr.bf16.mxu1 %v4914_v33  ;;  %v4930_v49 = vcombine.high %v55_v43, %v59_v44 }
   0xc   :  { %v62_v28 = vld [vmem:[%s7766_s1 + $0x140] sm:$0xff]  ;;  %874 = vmatprep.mubr.bf16.mxu0 %v5671_v22  ;;  %917 = vmatprep.mubr.bf16.mxu1 %v5671_v22  ;;  %v63_v51 = vld [vmem:[%s7766_s1 + $0x148] sm:$0xff]  ;;  %v4929_v55 = vcombine.low %v55_v43, %v59_v44 }
   0xd   :  { %v66_v29 = vld [vmem:[%s7766_s1 + $0x160] sm:$0xff]  ;;  %v67_v52 = vld [vmem:[%s7766_s1 + $0x168] sm:$0xff] }
   0xe   :  { %847 = vmatpush1.bf16.msra.mxu0 %v4911_v13  ;;  %v4936_v34 = vcombine.high %v62_v28, %v66_v29  ;;  %v70_v37 = vld [vmem:[%s7766_s1 + $0x180] sm:$0xff]  ;;  %v4935_v40 = vcombine.low %v62_v28, %v66_v29  ;;  %890 = vmatpush1.bf16.msra.mxu1 %v4913_v39  ;;  %v4938_v57 = vcombine.high %v63_v51, %v67_v52  ;;  %v71_v59 = vld [vmem:[%s7766_s1 + $0x188] sm:$0xff] }
   0xf   :  { %848 = vmatprep.subr.bf16.mxu0 %v4920_v14  ;;  %v74_v38 = vld [vmem:[%s7766_s1 + $0x1a0] sm:$0xff]  ;;  %891 = vmatprep.subr.bf16.mxu1 %v4922_v41  ;;  %v75_v60 = vld [vmem:[%s7766_s1 + $0x1a8] sm:$0xff]  ;;  %v4937_v63 = vcombine.low %v63_v51, %v67_v52 }
  0x10   :  { %v4944_v42 = vcombine.high %v70_v37, %v74_v38  ;;  %v78_v45 = vld [vmem:[%s7766_s1 + $0x1c0] sm:$0xff]  ;;  %v4943_v48 = vcombine.low %v70_v37, %v74_v38  ;;  %v4946_v1 = vcombine.high %v71_v59, %v75_v60  ;;  %v79_v3 = vld [vmem:[%s7766_s1 + $0x1c8] sm:$0xff]  ;;  %v4945_v7 = vcombine.low %v71_v59, %v75_v60 }
  0x11   :  { %v82_v46 = vld [vmem:[%s7766_s1 + $0x1e0] sm:$0xff]  ;;  %v83_v4 = vld [vmem:[%s7766_s1 + $0x1e8] sm:$0xff] }
  0x12   :  { %849 = vmatpush1.bf16.msra.mxu0 %v4919_v19  ;;  %v4952_v50 = vcombine.high %v78_v45, %v82_v46  ;;  %v86_v53 = vld [vmem:[%s7766_s1 + $0x200] sm:$0xff]  ;;  %892 = vmatpush1.bf16.msra.mxu1 %v4921_v47  ;;  %v4951_v56 = vcombine.low %v78_v45, %v82_v46  ;;  %v4954_v9 = vcombine.high %v79_v3, %v83_v4  ;;  %v87_v11 = vld [vmem:[%s7766_s1 + $0x208] sm:$0xff] }
  0x13   :  { %850 = vmatprep.subr.bf16.mxu0 %v4928_v24  ;;  %v90_v54 = vld [vmem:[%s7766_s1 + $0x220] sm:$0xff]  ;;  %893 = vmatprep.subr.bf16.mxu1 %v4930_v49  ;;  %v91_v12 = vld [vmem:[%s7766_s1 + $0x228] sm:$0xff]  ;;  %v4953_v15 = vcombine.low %v79_v3, %v83_v4 }
  0x14   :  { %v4960_v58 = vcombine.high %v86_v53, %v90_v54  ;;  %v94_v61 = vld [vmem:[%s7766_s1 + $0x240] sm:$0xff]  ;;  %v4959_v0 = vcombine.low %v86_v53, %v90_v54  ;;  %v4962_v17 = vcombine.high %v87_v11, %v91_v12  ;;  %v95_v19 = vld [vmem:[%s7766_s1 + $0x248] sm:$0xff]  ;;  %v4961_v24 = vcombine.low %v87_v11, %v91_v12  ;;  %v24_v54 = vld [vmem:[%s7766_s1 + $0x10] sm:$0xff] }
  0x15   :  { %v98_v62 = vld [vmem:[%s7766_s1 + $0x260] sm:$0xff]  ;;  %v99_v20 = vld [vmem:[%s7766_s1 + $0x268] sm:$0xff] }
  0x16   :  { %851 = vmatpush1.bf16.msra.mxu0 %v4927_v32  ;;  %894 = vmatpush1.bf16.msra.mxu1 %v4929_v55  ;;  %v4968_v2 = vcombine.high %v94_v61, %v98_v62  ;;  %v102_v5 = vld [vmem:[%s7766_s1 + $0x280] sm:$0xff]  ;;  %v4967_v8 = vcombine.low %v94_v61, %v98_v62  ;;  %v4970_v26 = vcombine.high %v95_v19, %v99_v20  ;;  %v103_v28 = vld [vmem:[%s7766_s1 + $0x288] sm:$0xff]  ;;  %v28_v55 = vld [vmem:[%s7766_s1 + $0x30] sm:$0xff] }
  0x17   :  { %852 = vmatprep.subr.bf16.mxu0 %v4936_v34  ;;  %895 = vmatprep.subr.bf16.mxu1 %v4938_v57  ;;  %v106_v6 = vld [vmem:[%s7766_s1 + $0x2a0] sm:$0xff]  ;;  %v107_v29 = vld [vmem:[%s7766_s1 + $0x2a8] sm:$0xff]  ;;  %v4969_v32 = vcombine.low %v95_v19, %v99_v20  ;;  %v4900_v61 = vcombine.high %v24_v54, %v28_v55  ;;  %v32_v62 = vld [vmem:[%s7766_s1 + $0x50] sm:$0xff]  ;;  %v4899_v3 = vcombine.low %v24_v54, %v28_v55 }
  0x18   :  { %v4976_v10 = vcombine.high %v102_v5, %v106_v6  ;;  %v110_v13 = vld [vmem:[%s7766_s1 + $0x2c0] sm:$0xff]  ;;  %v4975_v16 = vcombine.low %v102_v5, %v106_v6  ;;  %v4978_v34 = vcombine.high %v103_v28, %v107_v29  ;;  %v111_v36 = vld [vmem:[%s7766_s1 + $0x2c8] sm:$0xff]  ;;  %v69_v54 = vld [vmem:[%s7766_s1 + $0x178] sm:$0xff] }
  0x19   :  { %v114_v14 = vld [vmem:[%s7766_s1 + $0x2e0] sm:$0xff]  ;;  %v115_v37 = vld [vmem:[%s7766_s1 + $0x2e8] sm:$0xff]  ;;  %v88_v55 = vld [vmem:[%s7766_s1 + $0x210] sm:$0xff] }
  0x1a   :  { %853 = vmatpush1.bf16.msra.mxu0 %v4935_v40  ;;  %896 = vmatpush1.bf16.msra.mxu1 %v4937_v63  ;;  %v4984_v18 = vcombine.high %v110_v13, %v114_v14  ;;  %v118_v21 = vld [vmem:[%s7766_s1 + $0x300] sm:$0xff]  ;;  %v4983_v25 = vcombine.low %v110_v13, %v114_v14  ;;  %v4977_v40 = vcombine.low %v103_v28, %v107_v29  ;;  %v119_v44 = vld [vmem:[%s7766_s1 + $0x308] sm:$0xff]  ;;  %v36_v63 = vld [vmem:[%s7766_s1 + $0x70] sm:$0xff] }
  0x1b   :  { %854 = vmatprep.subr.bf16.mxu0 %v4944_v42  ;;  %897 = vmatprep.subr.bf16.mxu1 %v4946_v1  ;;  %v122_v23 = vld [vmem:[%s7766_s1 + $0x320] sm:$0xff]  ;;  %v4986_v42 = vcombine.high %v111_v36, %v115_v37  ;;  %v123_v45 = vld [vmem:[%s7766_s1 + $0x328] sm:$0xff]  ;;  %v4908_v6 = vcombine.high %v32_v62, %v36_v63  ;;  %v4907_v11 = vcombine.low %v32_v62, %v36_v63  ;;  %v25_v13 = vld [vmem:[%s7766_s1 + $0x18] sm:$0xff] }
  0x1c   :  { %v4992_v27 = vcombine.high %v118_v21, %v122_v23  ;;  %v126_v30 = vld [vmem:[%s7766_s1 + $0x340] sm:$0xff]  ;;  %v4991_v33 = vcombine.low %v118_v21, %v122_v23  ;;  %v127_v52 = vld [vmem:[%s7766_s1 + $0x348] sm:$0xff]  ;;  %v29_v14 = vld [vmem:[%s7766_s1 + $0x38] sm:$0xff] }
  0x1d   :  { %v130_v31 = vld [vmem:[%s7766_s1 + $0x360] sm:$0xff]  ;;  %v131_v53 = vld [vmem:[%s7766_s1 + $0x368] sm:$0xff]  ;;  %v4902_v19 = vcombine.high %v25_v13, %v29_v14  ;;  %v33_v21 = vld [vmem:[%s7766_s1 + $0x58] sm:$0xff] }
  0x1e   :  { %855 = vmatpush1.bf16.msra.mxu0 %v4943_v48  ;;  %898 = vmatpush1.bf16.msra.mxu1 %v4945_v7  ;;  %v5000_v35 = vcombine.high %v126_v30, %v130_v31  ;;  %v134_v38 = vld [vmem:[%s7766_s1 + $0x380] sm:$0xff]  ;;  %v4999_v41 = vcombine.low %v126_v30, %v130_v31  ;;  %v4985_v48 = vcombine.low %v111_v36, %v115_v37  ;;  %v135_v59 = vld [vmem:[%s7766_s1 + $0x388] sm:$0xff]  ;;  %v40_v7 = vld [vmem:[%s7766_s1 + $0x90] sm:$0xff] }
  0x1f   :  { %856 = vmatprep.subr.bf16.mxu0 %v4952_v50  ;;  %899 = vmatprep.subr.bf16.mxu1 %v4954_v9  ;;  %v138_v39 = vld [vmem:[%s7766_s1 + $0x3a0] sm:$0xff]  ;;  %v4994_v50 = vcombine.high %v119_v44, %v123_v45  ;;  %v139_v60 = vld [vmem:[%s7766_s1 + $0x3a8] sm:$0xff]  ;;  %v5001_v1 = vcombine.low %v127_v52, %v131_v53  ;;  %v37_v23 = vld [vmem:[%s7766_s1 + $0x78] sm:$0xff] }
  0x20   :  { %v5008_v43 = vcombine.high %v134_v38, %v138_v39  ;;  %v142_v46 = vld [vmem:[%s7766_s1 + $0x3c0] sm:$0xff]  ;;  %v5007_v49 = vcombine.low %v134_v38, %v138_v39  ;;  %v143_v4 = vld [vmem:[%s7766_s1 + $0x3c8] sm:$0xff]  ;;  %v5009_v9 = vcombine.low %v135_v59, %v139_v60  ;;  %v4910_v28 = vcombine.high %v33_v21, %v37_v23  ;;  %v41_v30 = vld [vmem:[%s7766_s1 + $0x98] sm:$0xff] }
  0x21   :  { %v146_v47 = vld [vmem:[%s7766_s1 + $0x3e0] sm:$0xff]  ;;  %v147_v5 = vld [vmem:[%s7766_s1 + $0x3e8] sm:$0xff]  ;;  %v45_v31 = vld [vmem:[%s7766_s1 + $0xb8] sm:$0xff] }
  0x22   :  { %857 = vmatpush1.bf16.msra.mxu0 %v4951_v56  ;;  %900 = vmatpush1.bf16.msra.mxu1 %v4953_v15  ;;  %v5016_v51 = vcombine.high %v142_v46, %v146_v47  ;;  %v4993_v56 = vcombine.low %v119_v44, %v123_v45  ;;  %v5015_v57 = vcombine.low %v142_v46, %v146_v47  ;;  %v48_v15 = vld [vmem:[%s7766_s1 + $0xd0] sm:$0xff]  ;;  %v49_v38 = vld [vmem:[%s7766_s1 + $0xd8] sm:$0xff] }
  0x23   :  { %858 = vmatprep.subr.bf16.mxu0 %v4960_v58  ;;  %901 = vmatprep.subr.bf16.mxu1 %v4962_v17  ;;  %v5002_v58 = vcombine.high %v127_v52, %v131_v53  ;;  %v5017_v17 = vcombine.low %v143_v4, %v147_v5  ;;  %v4918_v36 = vcombine.high %v41_v30, %v45_v31  ;;  %v53_v39 = vld [vmem:[%s7766_s1 + $0xf8] sm:$0xff]  ;;  %v80_v47 = vld [vmem:[%s7766_s1 + $0x1d0] sm:$0xff] }
  0x24   :  { %v57_v45 = vld [vmem:[%s7766_s1 + $0x118] sm:$0xff]  ;;  %v96_v63 = vld [vmem:[%s7766_s1 + $0x250] sm:$0xff] }
  0x25   :  { %v61_v46 = vld [vmem:[%s7766_s1 + $0x138] sm:$0xff] }
  0x26   :  { %859 = vmatpush1.bf16.msra.mxu0 %v4959_v0  ;;  %902 = vmatpush1.bf16.msra.mxu1 %v4961_v24  ;;  %v5840_v0 = vld [vmem:[%s7767_s0] ss:$8 sps:$4 sm:$0xff]   ;;  %v56_v24 = vld [vmem:[%s7766_s1 + $0x110] sm:$0xff]  ;;  %v65_v53 = vld [vmem:[%s7766_s1 + $0x158] sm:$0xff] }
  0x27   :  { %860 = vmatprep.subr.bf16.mxu0 %v4968_v2  ;;  %903 = vmatprep.subr.bf16.mxu1 %v4970_v26  ;;  %v5010_v2 = vcombine.high %v135_v59, %v139_v60  ;;  %v4901_v26 = vcombine.low %v25_v13, %v29_v14  ;;  %v4942_v59 = vcombine.high %v65_v53, %v69_v54  ;;  %v77_v62 = vld [vmem:[%s7766_s1 + $0x1b8] sm:$0xff] }
  0x28   :  { %v89_v14 = vld [vmem:[%s7766_s1 + $0x218] sm:$0xff] }
  0x2a   :  { %861 = vmatpush1.bf16.msra.mxu0 %v4967_v8  ;;  %904 = vmatpush1.bf16.msra.mxu1 %v4969_v32  ;;  %v44_v8 = vld [vmem:[%s7766_s1 + $0xb0] sm:$0xff] }
  0x2b   :  { %862 = vmatprep.subr.bf16.mxu0 %v4976_v10  ;;  %905 = vmatprep.subr.bf16.mxu1 %v4978_v34  ;;  %v5018_v10 = vcombine.high %v143_v4, %v147_v5  ;;  %v4916_v12 = vcombine.high %v40_v7, %v44_v8  ;;  %v64_v32 = vld [vmem:[%s7766_s1 + $0x150] sm:$0xff]  ;;  %v4909_v34 = vcombine.low %v33_v21, %v37_v23  ;;  %v97_v23 = vld [vmem:[%s7766_s1 + $0x258] sm:$0xff] }
  0x2e   :  { %863 = vmatpush1.bf16.msra.mxu0 %v4975_v16  ;;  %906 = vmatpush1.bf16.msra.mxu1 %v4977_v40  ;;  %v52_v16 = vld [vmem:[%s7766_s1 + $0xf0] sm:$0xff] }
  0x2f   :  { %864 = vmatprep.subr.bf16.mxu0 %v4984_v18  ;;  %907 = vmatprep.subr.bf16.mxu1 %v4986_v42  ;;  %v4915_v18 = vcombine.low %v40_v7, %v44_v8  ;;  %v4924_v20 = vcombine.high %v48_v15, %v52_v16  ;;  %v72_v40 = vld [vmem:[%s7766_s1 + $0x190] sm:$0xff]  ;;  %v85_v7 = vld [vmem:[%s7766_s1 + $0x1f8] sm:$0xff] }
  0x30   :  { %v104_v8 = vld [vmem:[%s7766_s1 + $0x290] sm:$0xff] }
  0x32   :  { %865 = vmatpush1.bf16.msra.mxu0 %v4983_v25  ;;  %908 = vmatpush1.bf16.msra.mxu1 %v4985_v48  ;;  %v60_v25 = vld [vmem:[%s7766_s1 + $0x130] sm:$0xff] }
  0x33   :  { %866 = vmatprep.subr.bf16.mxu0 %v4992_v27  ;;  %909 = vmatprep.subr.bf16.mxu1 %v4994_v50  ;;  %v4923_v27 = vcombine.low %v48_v15, %v52_v16  ;;  %v4932_v29 = vcombine.high %v56_v24, %v60_v25  ;;  %v84_v48 = vld [vmem:[%s7766_s1 + $0x1f0] sm:$0xff]  ;;  %v93_v15 = vld [vmem:[%s7766_s1 + $0x238] sm:$0xff] }
  0x34   :  { %v4956_v52 = vcombine.high %v80_v47, %v84_v48  ;;  %v112_v16 = vld [vmem:[%s7766_s1 + $0x2d0] sm:$0xff] }
  0x36   :  { %867 = vmatpush1.bf16.msra.mxu0 %v4991_v33  ;;  %910 = vmatpush1.bf16.msra.mxu1 %v4993_v56  ;;  %v68_v33 = vld [vmem:[%s7766_s1 + $0x170] sm:$0xff] }
  0x37   :  { %868 = vmatprep.subr.bf16.mxu0 %v5000_v35  ;;  %911 = vmatprep.subr.bf16.mxu1 %v5002_v58  ;;  %v4931_v35 = vcombine.low %v56_v24, %v60_v25  ;;  %v4940_v37 = vcombine.high %v64_v32, %v68_v33  ;;  %v4939_v42 = vcombine.low %v64_v32, %v68_v33  ;;  %v92_v56 = vld [vmem:[%s7766_s1 + $0x230] sm:$0xff]  ;;  %v101_v24 = vld [vmem:[%s7766_s1 + $0x278] sm:$0xff] }
  0x38   :  { %v4955_v58 = vcombine.low %v80_v47, %v84_v48  ;;  %v4964_v60 = vcombine.high %v88_v55, %v92_v56  ;;  %v120_v25 = vld [vmem:[%s7766_s1 + $0x310] sm:$0xff]  ;;  %v109_v32 = vld [vmem:[%s7766_s1 + $0x2b8] sm:$0xff] }
  0x39   :  { %v128_v33 = vld [vmem:[%s7766_s1 + $0x350] sm:$0xff]  ;;  %v125_v47 = vld [vmem:[%s7766_s1 + $0x338] sm:$0xff] }
  0x3a   :  { %869 = vmatpush1.bf16.msra.mxu0 %v4999_v41  ;;  %912 = vmatpush1.bf16.msra.mxu1 %v5001_v1  ;;  %v4917_v41 = vcombine.low %v41_v30, %v45_v31  ;;  %v100_v1 = vld [vmem:[%s7766_s1 + $0x270] sm:$0xff]  ;;  %v105_v31 = vld [vmem:[%s7766_s1 + $0x298] sm:$0xff] }
  0x3b   :  { %870 = vmatprep.subr.bf16.mxu0 %v5008_v43  ;;  %913 = vmatprep.subr.bf16.mxu1 %v5010_v2  ;;  %v4926_v43 = vcombine.high %v49_v38, %v53_v39  ;;  %v4941_v2 = vcombine.low %v65_v53, %v69_v54  ;;  %v4972_v5 = vcombine.high %v96_v63, %v100_v1  ;;  %v144_v48 = vld [vmem:[%s7766_s1 + $0x3d0] sm:$0xff]  ;;  %v129_v54 = vld [vmem:[%s7766_s1 + $0x358] sm:$0xff] }
  0x3e   :  { %871 = vmatpush1.bf16.msra.mxu0 %v5007_v49  ;;  %914 = vmatpush1.bf16.msra.mxu1 %v5009_v9  ;;  %v4925_v49 = vcombine.low %v49_v38, %v53_v39  ;;  %v108_v9 = vld [vmem:[%s7766_s1 + $0x2b0] sm:$0xff]  ;;  %v113_v39 = vld [vmem:[%s7766_s1 + $0x2d8] sm:$0xff] }
  0x3f   :  { %872 = vmatprep.subr.bf16.mxu0 %v5016_v51  ;;  %915 = vmatprep.subr.bf16.mxu1 %v5018_v10  ;;  %v4934_v51 = vcombine.high %v57_v45, %v61_v46  ;;  %v4980_v13 = vcombine.high %v104_v8, %v108_v9 }
  0x42   :  { %873 = vmatpush1.bf16.msra.mxu0 %v5015_v57  ;;  %916 = vmatpush1.bf16.msra.mxu1 %v5017_v17  ;;  %v4933_v57 = vcombine.low %v57_v45, %v61_v46  ;;  %v116_v17 = vld [vmem:[%s7766_s1 + $0x2f0] sm:$0xff]  ;;  %v121_v46 = vld [vmem:[%s7766_s1 + $0x318] sm:$0xff] }
  0x43   :  { %928 = vmatprep.subr.bf16.mxu0 %v4900_v61  ;;  %971 = vmatprep.subr.bf16.mxu1 %v4902_v19  ;;  %v73_v61 = vld [vmem:[%s7766_s1 + $0x198] sm:$0xff]  ;;  %v4979_v19 = vcombine.low %v104_v8, %v108_v9  ;;  %v4988_v21 = vcombine.high %v112_v16, %v116_v17  ;;  %v1070_v9 = vld [vmem:[%s7768_s3 + $0x80] sm:$0xff] }
  0x44   :  { %v4950_v4 = vcombine.high %v73_v61, %v77_v62  ;;  %v4949_v10 = vcombine.low %v73_v61, %v77_v62  ;;  %v137_v61 = vld [vmem:[%s7766_s1 + $0x398] sm:$0xff] }
  0x45   :  { %875 = vmatmul.mubr.bf16.vlgmr.msra.gmra.mrb[0].mxu0 %v5840_v0  ;;  %918 = vmatmul.mubr.bf16.vlgmr.msra.gmra.mrb[0].mxu1 %v5840_v0  ;;  %v141_v62 = vld [vmem:[%s7766_s1 + $0x3b8] sm:$0xff] }
  0x46   :  { %929 = vmatpush1.bf16.msra.mxu0 %v4899_v3  ;;  %960 = vmatprep.mubr.bf16.mxu0 %v5671_v22  ;;  %v4963_v3 = vcombine.low %v88_v55, %v92_v56  ;;  %v133_v55 = vld [vmem:[%s7766_s1 + $0x378] sm:$0xff]  ;;  %v1054_v56 = vld [vmem:[%s7768_s3] sm:$0xff] }
  0x47   :  { %930 = vmatprep.subr.bf16.mxu0 %v4908_v6  ;;  %972 = vmatpush1.bf16.msra.mxu1 %v4901_v26  ;;  %v81_v6 = vld [vmem:[%s7766_s1 + $0x1d8] sm:$0xff]  ;;  %v124_v26 = vld [vmem:[%s7766_s1 + $0x330] sm:$0xff] }
  0x48   :  { %1003 = vmatprep.mubr.bf16.mxu1 %v5671_v22  ;;  %973 = vmatprep.subr.bf16.mxu1 %v4910_v28  ;;  %v76_v22 = vld [vmem:[%s7766_s1 + $0x1b0] sm:$0xff]  ;;  %v4987_v28 = vcombine.low %v112_v16, %v116_v17  ;;  %v4996_v30 = vcombine.high %v120_v25, %v124_v26  ;;  %v1078_v17 = vld [vmem:[%s7768_s3 + $0xc0] sm:$0xff] }
  0x49   :  { %v4948_v44 = vcombine.high %v72_v40, %v76_v22  ;;  %v4947_v50 = vcombine.low %v72_v40, %v76_v22  ;;  %v117_v40 = vld [vmem:[%s7766_s1 + $0x2f8] sm:$0xff]  ;;  %v136_v22 = vld [vmem:[%s7766_s1 + $0x390] sm:$0xff] }
  0x4a   :  { %931 = vmatpush1.bf16.msra.mxu0 %v4907_v11  ;;  %v4971_v11 = vcombine.low %v96_v63, %v100_v1  ;;  %v1062_v1 = vld [vmem:[%s7768_s3 + $0x40] sm:$0xff] }
  0x4b   :  { %932 = vmatprep.subr.bf16.mxu0 %v4916_v12  ;;  %974 = vmatpush1.bf16.msra.mxu1 %v4909_v34  ;;  %v4958_v12 = vcombine.high %v81_v6, %v85_v7  ;;  %v132_v34 = vld [vmem:[%s7766_s1 + $0x370] sm:$0xff] }
  0x4c   :  { %975 = vmatprep.subr.bf16.mxu1 %v4918_v36  ;;  %v4995_v36 = vcombine.low %v120_v25, %v124_v26  ;;  %v5004_v38 = vcombine.high %v128_v33, %v132_v34  ;;  %v1086_v26 = vld [vmem:[%s7768_s3 + $0x100] sm:$0xff] }
  0x4e   :  { %933 = vmatpush1.bf16.msra.mxu0 %v4915_v18  ;;  %v4957_v18 = vcombine.low %v81_v6, %v85_v7  ;;  %v145_v6 = vld [vmem:[%s7766_s1 + $0x3d8] sm:$0xff] }
  0x4f   :  { %934 = vmatprep.subr.bf16.mxu0 %v4924_v20  ;;  %976 = vmatpush1.bf16.msra.mxu1 %v4917_v41  ;;  %v4966_v20 = vcombine.high %v89_v14, %v93_v15  ;;  %v140_v41 = vld [vmem:[%s7766_s1 + $0x3b0] sm:$0xff]  ;;  %v149_v7 = vld [vmem:[%s7766_s1 + $0x3f8] sm:$0xff] }
  0x50   :  { %977 = vmatprep.subr.bf16.mxu1 %v4926_v43  ;;  %v5003_v43 = vcombine.low %v128_v33, %v132_v34  ;;  %v5012_v45 = vcombine.high %v136_v22, %v140_v41  ;;  %v1094_v34 = vld [vmem:[%s7768_s3 + $0x140] sm:$0xff] }
  0x52   :  { %935 = vmatpush1.bf16.msra.mxu0 %v4923_v27  ;;  %v4965_v27 = vcombine.low %v89_v14, %v93_v15  ;;  %v1055_v14 = vld [vmem:[%s7768_s3 + $0x8] sm:$0xff] }
  0x53   :  { %936 = vmatprep.subr.bf16.mxu0 %v4932_v29  ;;  %978 = vmatpush1.bf16.msra.mxu1 %v4925_v49  ;;  %v4974_v29 = vcombine.high %v97_v23, %v101_v24  ;;  %v148_v49 = vld [vmem:[%s7766_s1 + $0x3f0] sm:$0xff]  ;;  %v1059_v15 = vld [vmem:[%s7768_s3 + $0x28] sm:$0xff] }
  0x54   :  { %979 = vmatprep.subr.bf16.mxu1 %v4934_v51  ;;  %v5011_v51 = vcombine.low %v136_v22, %v140_v41  ;;  %v5020_v53 = vcombine.high %v144_v48, %v148_v49  ;;  %v1102_v22 = vld [vmem:[%s7768_s3 + $0x180] sm:$0xff] }
  0x55   :  { %v1106_v41 = vld [vmem:[%s7768_s3 + $0x1a0] sm:$0xff] }
  0x56   :  { %937 = vmatpush1.bf16.msra.mxu0 %v4931_v35  ;;  %v4973_v35 = vcombine.low %v97_v23, %v101_v24  ;;  %v1063_v23 = vld [vmem:[%s7768_s3 + $0x48] sm:$0xff] }
  0x57   :  { %938 = vmatprep.subr.bf16.mxu0 %v4940_v37  ;;  %980 = vmatpush1.bf16.msra.mxu1 %v4933_v57  ;;  %v4982_v37 = vcombine.high %v105_v31, %v109_v32  ;;  %v1058_v57 = vld [vmem:[%s7768_s3 + $0x20] sm:$0xff]  ;;  %v1067_v24 = vld [vmem:[%s7768_s3 + $0x68] sm:$0xff] }
  0x58   :  { %981 = vmatprep.subr.bf16.mxu1 %v4942_v59  ;;  %v5019_v59 = vcombine.low %v144_v48, %v148_v49  ;;  %v5024_v63 = vcombine.high %v1054_v56, %v1058_v57  ;;  %v1110_v48 = vld [vmem:[%s7768_s3 + $0x1c0] sm:$0xff] }
  0x59   :  { %v1114_v49 = vld [vmem:[%s7768_s3 + $0x1e0] sm:$0xff] }
  0x5a   :  { %939 = vmatpush1.bf16.msra.mxu0 %v4939_v42  ;;  %v4981_v42 = vcombine.low %v105_v31, %v109_v32  ;;  %v1071_v31 = vld [vmem:[%s7768_s3 + $0x88] sm:$0xff] }
  0x5b   :  { %940 = vmatprep.subr.bf16.mxu0 %v4948_v44  ;;  %982 = vmatpush1.bf16.msra.mxu1 %v4941_v2  ;;  %v4990_v44 = vcombine.high %v113_v39, %v117_v40  ;;  %v1066_v2 = vld [vmem:[%s7768_s3 + $0x60] sm:$0xff]  ;;  %v1075_v32 = vld [vmem:[%s7768_s3 + $0xa8] sm:$0xff] }
  0x5c   :  { %983 = vmatprep.subr.bf16.mxu1 %v4950_v4  ;;  %v5014_v4 = vcombine.high %v137_v61, %v141_v62  ;;  %v5032_v8 = vcombine.high %v1062_v1, %v1066_v2 }
  0x5e   :  { %941 = vmatpush1.bf16.msra.mxu0 %v4947_v50  ;;  %v4989_v50 = vcombine.low %v113_v39, %v117_v40  ;;  %v1079_v39 = vld [vmem:[%s7768_s3 + $0xc8] sm:$0xff] }
  0x5f   :  { %942 = vmatprep.subr.bf16.mxu0 %v4956_v52  ;;  %984 = vmatpush1.bf16.msra.mxu1 %v4949_v10  ;;  %v4998_v52 = vcombine.high %v121_v46, %v125_v47  ;;  %v1074_v10 = vld [vmem:[%s7768_s3 + $0xa0] sm:$0xff] }
  0x60   :  { %985 = vmatprep.subr.bf16.mxu1 %v4958_v12  ;;  %v5022_v12 = vcombine.high %v145_v6, %v149_v7  ;;  %v5040_v16 = vcombine.high %v1070_v9, %v1074_v10 }
  0x62   :  { %943 = vmatpush1.bf16.msra.mxu0 %v4955_v58  ;;  %v4997_v58 = vcombine.low %v121_v46, %v125_v47  ;;  %v1091_v46 = vld [vmem:[%s7768_s3 + $0x128] sm:$0xff]  ;;  %v5072_v47 = vcombine.high %v1102_v22, %v1106_v41 }
  0x63   :  { %944 = vmatprep.subr.bf16.mxu0 %v4964_v60  ;;  %986 = vmatpush1.bf16.msra.mxu1 %v4957_v18  ;;  %v5006_v60 = vcombine.high %v129_v54, %v133_v55  ;;  %v1082_v18 = vld [vmem:[%s7768_s3 + $0xe0] sm:$0xff] }
  0x64   :  { %987 = vmatprep.subr.bf16.mxu1 %v4966_v20  ;;  %v5026_v20 = vcombine.high %v1055_v14, %v1059_v15  ;;  %v5048_v25 = vcombine.high %v1078_v17, %v1082_v18 }
  0x66   :  { %945 = vmatpush1.bf16.msra.mxu0 %v4963_v3  ;;  %v5005_v3 = vcombine.low %v129_v54, %v133_v55  ;;  %v1099_v54 = vld [vmem:[%s7768_s3 + $0x168] sm:$0xff]  ;;  %v5080_v55 = vcombine.high %v1110_v48, %v1114_v49 }
  0x67   :  { %946 = vmatprep.subr.bf16.mxu0 %v4972_v5  ;;  %988 = vmatpush1.bf16.msra.mxu1 %v4965_v27  ;;  %v5023_v5 = vcombine.low %v1054_v56, %v1058_v57  ;;  %v1090_v27 = vld [vmem:[%s7768_s3 + $0x120] sm:$0xff] }
  0x68   :  { %989 = vmatprep.subr.bf16.mxu1 %v4974_v29  ;;  %v5034_v29 = vcombine.high %v1063_v23, %v1067_v24  ;;  %v5056_v33 = vcombine.high %v1086_v26, %v1090_v27  ;;  %v1118_v56 = vld [vmem:[%s7768_s3 + $0x200] sm:$0xff] }
  0x69   :  { %v1122_v57 = vld [vmem:[%s7768_s3 + $0x220] sm:$0xff] }
  0x6a   :  { %947 = vmatpush1.bf16.msra.mxu0 %v4971_v11  ;;  %v5013_v11 = vcombine.low %v137_v61, %v141_v62  ;;  %v1107_v61 = vld [vmem:[%s7768_s3 + $0x1a8] sm:$0xff]  ;;  %v5079_v62 = vcombine.low %v1110_v48, %v1114_v49 }
  0x6b   :  { %948 = vmatprep.subr.bf16.mxu0 %v4980_v13  ;;  %990 = vmatpush1.bf16.msra.mxu1 %v4973_v35  ;;  %v5031_v13 = vcombine.low %v1062_v1, %v1066_v2  ;;  %v1098_v35 = vld [vmem:[%s7768_s3 + $0x160] sm:$0xff] }
  0x6c   :  { %991 = vmatprep.subr.bf16.mxu1 %v4982_v37  ;;  %v5042_v37 = vcombine.high %v1071_v31, %v1075_v32  ;;  %v5064_v40 = vcombine.high %v1094_v34, %v1098_v35  ;;  %v6133_v1 = vld [vmem:[%s7768_s3 + $0x400] sm:$0xff] }
  0x6d   :  { %v6138_v2 = vld [vmem:[%s7768_s3 + $0x420] sm:$0xff] }
  0x6e   :  { %949 = vmatpush1.bf16.msra.mxu0 %v4979_v19  ;;  %v5021_v19 = vcombine.low %v145_v6, %v149_v7  ;;  %v6154_v6 = vld [vmem:[%s7768_s3 + $0x428] sm:$0xff] }
  0x6f   :  { %950 = vmatprep.subr.bf16.mxu0 %v4988_v21  ;;  %992 = vmatpush1.bf16.msra.mxu1 %v4981_v42  ;;  %v5039_v21 = vcombine.low %v1070_v9, %v1074_v10  ;;  %v5041_v42 = vcombine.low %v1071_v31, %v1075_v32  ;;  %v1150_v32 = vld [vmem:[%s7768_s3 + $0x300] sm:$0xff] }
  0x70   :  { %993 = vmatprep.subr.bf16.mxu1 %v4990_v44  ;;  %v5063_v44 = vcombine.low %v1094_v34, %v1098_v35 }
  0x72   :  { %951 = vmatpush1.bf16.msra.mxu0 %v4987_v28  ;;  %v5025_v28 = vcombine.low %v1055_v14, %v1059_v15  ;;  %v1134_v15 = vld [vmem:[%s7768_s3 + $0x280] sm:$0xff] }
  0x73   :  { %952 = vmatprep.subr.bf16.mxu0 %v4996_v30  ;;  %994 = vmatpush1.bf16.msra.mxu1 %v4989_v50  ;;  %v5047_v30 = vcombine.low %v1078_v17, %v1082_v18 }
  0x74   :  { %995 = vmatprep.subr.bf16.mxu1 %v4998_v52  ;;  %v5071_v52 = vcombine.low %v1102_v22, %v1106_v41 }
  0x76   :  { %953 = vmatpush1.bf16.msra.mxu0 %v4995_v36  ;;  %v5033_v36 = vcombine.low %v1063_v23, %v1067_v24  ;;  %v1142_v24 = vld [vmem:[%s7768_s3 + $0x2c0] sm:$0xff] }
  0x77   :  { %954 = vmatprep.subr.bf16.mxu0 %v5004_v38  ;;  %996 = vmatpush1.bf16.msra.mxu1 %v4997_v58  ;;  %v5055_v38 = vcombine.low %v1086_v26, %v1090_v27 }
  0x78   :  { %997 = vmatprep.subr.bf16.mxu1 %v5006_v60  ;;  %v1103_v60 = vld [vmem:[%s7768_s3 + $0x188] sm:$0xff] }
  0x79   :  { %v5074_v10 = vcombine.high %v1103_v60, %v1107_v61  ;;  %v5073_v17 = vcombine.low %v1103_v60, %v1107_v61  ;;  %v1163_v60 = vld [vmem:[%s7768_s3 + $0x368] sm:$0xff] }
  0x7a   :  { %955 = vmatpush1.bf16.msra.mxu0 %v5003_v43 }
  0x7b   :  { %956 = vmatprep.subr.bf16.mxu0 %v5012_v45  ;;  %998 = vmatpush1.bf16.msra.mxu1 %v5005_v3  ;;  %v1087_v45 = vld [vmem:[%s7768_s3 + $0x108] sm:$0xff] }
  0x7c   :  { %999 = vmatprep.subr.bf16.mxu1 %v5014_v4  ;;  %v5057_v58 = vcombine.low %v1087_v45, %v1091_v46  ;;  %v6143_v3 = vld [vmem:[%s7768_s3 + $0x408] sm:$0xff]  ;;  %v1126_v4 = vld [vmem:[%s7768_s3 + $0x240] sm:$0xff] }
  0x7d   :  { %v5153_v9 = vcombine.low %v6143_v3, %v6154_v6 }
  0x7e   :  { %957 = vmatpush1.bf16.msra.mxu0 %v5011_v51  ;;  %v5058_v51 = vcombine.high %v1087_v45, %v1091_v46  ;;  %v1166_v46 = vld [vmem:[%s7768_s3 + $0x380] sm:$0xff] }
  0x7f   :  { %958 = vmatprep.subr.bf16.mxu0 %v5020_v53  ;;  %1000 = vmatpush1.bf16.msra.mxu1 %v5013_v11  ;;  %v1095_v53 = vld [vmem:[%s7768_s3 + $0x148] sm:$0xff]  ;;  %v5087_v11 = vcombine.low %v1118_v56, %v1122_v57 }
  0x80   :  { %1001 = vmatprep.subr.bf16.mxu1 %v5022_v12  ;;  %v5065_v7 = vcombine.low %v1095_v53, %v1099_v54  ;;  %v1111_v12 = vld [vmem:[%s7768_s3 + $0x1c8] sm:$0xff] }
  0x82   :  { %959 = vmatpush1.bf16.msra.mxu0 %v5019_v59  ;;  %v5066_v59 = vcombine.high %v1095_v53, %v1099_v54  ;;  %v1174_v54 = vld [vmem:[%s7768_s3 + $0x3c0] sm:$0xff] }
  0x83   :  { %4168 = vmatprep.subr.bf16.mxu0 %v5024_v63  ;;  %1002 = vmatpush1.bf16.msra.mxu1 %v5021_v19  ;;  %v5088_v63 = vcombine.high %v1118_v56, %v1122_v57 }
  0x84   :  { %4340 = vmatprep.subr.bf16.mxu1 %v5026_v20  ;;  %v1119_v20 = vld [vmem:[%s7768_s3 + $0x208] sm:$0xff] }
  0x85   :  { %961 = vmatmul.mubr.bf16.vlgmr.msra.gmra.mrb[4].mxu0 %v5840_v0 }
  0x86   :  { %4169 = vmatpush1.bf16.msra.mxu0 %v5023_v5  ;;  %1004 = vmatmul.mubr.bf16.vlgmr.msra.gmra.mrb[4].mxu1 %v5840_v0  ;;  %v1083_v0 = vld [vmem:[%s7768_s3 + $0xe8] sm:$0xff]  ;;  %v1130_v5 = vld [vmem:[%s7768_s3 + $0x260] sm:$0xff] }
  0x87   :  { %4170 = vmatprep.subr.bf16.mxu0 %v5032_v8  ;;  %4341 = vmatpush1.bf16.msra.mxu1 %v5025_v28  ;;  %v5050_v43 = vcombine.high %v1079_v39, %v1083_v0  ;;  %v5049_v50 = vcombine.low %v1079_v39, %v1083_v0  ;;  %v5151_v8 = vcombine.low %v6133_v1, %v6138_v2  ;;  %v1158_v0 = vld [vmem:[%s7768_s3 + $0x340] sm:$0xff] }
  0x88   :  { %4342 = vmatprep.subr.bf16.mxu1 %v5034_v29  ;;  %v5096_v14 = vcombine.high %v1126_v4, %v1130_v5  ;;  %v5095_v19 = vcombine.low %v1126_v4, %v1130_v5  ;;  %v1127_v29 = vld [vmem:[%s7768_s3 + $0x248] sm:$0xff] }
  0x89   :  { %v1167_v5 = vld [vmem:[%s7768_s3 + $0x388] sm:$0xff] }
  0x8a   :  { %4171 = vmatpush1.bf16.msra.mxu0 %v5031_v13  ;;  %v1115_v13 = vld [vmem:[%s7768_s3 + $0x1e8] sm:$0xff] }
  0x8b   :  { %4172 = vmatprep.subr.bf16.mxu0 %v5040_v16  ;;  %4343 = vmatpush1.bf16.msra.mxu1 %v5033_v36  ;;  %v1138_v16 = vld [vmem:[%s7768_s3 + $0x2a0] sm:$0xff]  ;;  %v5082_v18 = vcombine.high %v1111_v12, %v1115_v13  ;;  %v5081_v26 = vcombine.low %v1111_v12, %v1115_v13  ;;  %v1175_v13 = vld [vmem:[%s7768_s3 + $0x3c8] sm:$0xff] }
  0x8c   :  { %4344 = vmatprep.subr.bf16.mxu1 %v5042_v37  ;;  %v5104_v23 = vcombine.high %v1134_v15, %v1138_v16  ;;  %v5103_v28 = vcombine.low %v1134_v15, %v1138_v16  ;;  %v1135_v37 = vld [vmem:[%s7768_s3 + $0x288] sm:$0xff] }
  0x8e   :  { %4173 = vmatpush1.bf16.msra.mxu0 %v5039_v21  ;;  %v1123_v21 = vld [vmem:[%s7768_s3 + $0x228] sm:$0xff] }
  0x8f   :  { %4174 = vmatprep.subr.bf16.mxu0 %v5048_v25  ;;  %4345 = vmatpush1.bf16.msra.mxu1 %v5041_v42  ;;  %v1146_v25 = vld [vmem:[%s7768_s3 + $0x2e0] sm:$0xff]  ;;  %v5090_v27 = vcombine.high %v1119_v20, %v1123_v21  ;;  %v5089_v34 = vcombine.low %v1119_v20, %v1123_v21 }
  0x90   :  { %4346 = vmatprep.subr.bf16.mxu1 %v5050_v43  ;;  %v5112_v31 = vcombine.high %v1142_v24, %v1146_v25  ;;  %v5111_v36 = vcombine.low %v1142_v24, %v1146_v25  ;;  %v1143_v43 = vld [vmem:[%s7768_s3 + $0x2c8] sm:$0xff] }
  0x92   :  { %4175 = vmatpush1.bf16.msra.mxu0 %v5047_v30  ;;  %v1131_v30 = vld [vmem:[%s7768_s3 + $0x268] sm:$0xff] }
  0x93   :  { %4176 = vmatprep.subr.bf16.mxu0 %v5056_v33  ;;  %4347 = vmatpush1.bf16.msra.mxu1 %v5049_v50  ;;  %v1154_v33 = vld [vmem:[%s7768_s3 + $0x320] sm:$0xff]  ;;  %v5098_v35 = vcombine.high %v1127_v29, %v1131_v30  ;;  %v5097_v22 = vcombine.low %v1127_v29, %v1131_v30 }
  0x94   :  { %4348 = vmatprep.subr.bf16.mxu1 %v5058_v51  ;;  %v5120_v39 = vcombine.high %v1150_v32, %v1154_v33  ;;  %v5119_v42 = vcombine.low %v1150_v32, %v1154_v33  ;;  %v1151_v51 = vld [vmem:[%s7768_s3 + $0x308] sm:$0xff] }
  0x96   :  { %4177 = vmatpush1.bf16.msra.mxu0 %v5055_v38  ;;  %v1139_v38 = vld [vmem:[%s7768_s3 + $0x2a8] sm:$0xff] }
  0x97   :  { %4178 = vmatprep.subr.bf16.mxu0 %v5064_v40  ;;  %4349 = vmatpush1.bf16.msra.mxu1 %v5057_v58  ;;  %v1162_v40 = vld [vmem:[%s7768_s3 + $0x360] sm:$0xff]  ;;  %v5106_v41 = vcombine.high %v1135_v37, %v1139_v38  ;;  %v5105_v48 = vcombine.low %v1135_v37, %v1139_v38 }
  0x98   :  { %4350 = vmatprep.subr.bf16.mxu1 %v5066_v59  ;;  %v5128_v45 = vcombine.high %v1158_v0, %v1162_v40  ;;  %v5127_v50 = vcombine.low %v1158_v0, %v1162_v40  ;;  %v1159_v59 = vld [vmem:[%s7768_s3 + $0x348] sm:$0xff]  ;;  %v1190_v38 = vld [vmem:[%s7768_s3 + $0x440] sm:$0xff] }
  0x9a   :  { %4179 = vmatpush1.bf16.msra.mxu0 %v5063_v44  ;;  %v1147_v44 = vld [vmem:[%s7768_s3 + $0x2e8] sm:$0xff] }
  0x9b   :  { %4180 = vmatprep.subr.bf16.mxu0 %v5072_v47  ;;  %4351 = vmatpush1.bf16.msra.mxu1 %v5065_v7  ;;  %v1170_v47 = vld [vmem:[%s7768_s3 + $0x3a0] sm:$0xff]  ;;  %v5114_v49 = vcombine.high %v1143_v43, %v1147_v44  ;;  %v5113_v56 = vcombine.low %v1143_v43, %v1147_v44  ;;  %v1171_v7 = vld [vmem:[%s7768_s3 + $0x3a8] sm:$0xff] }
  0x9c   :  { %4352 = vmatprep.subr.bf16.mxu1 %v5074_v10  ;;  %v5136_v53 = vcombine.high %v1166_v46, %v1170_v47  ;;  %v5135_v58 = vcombine.low %v1166_v46, %v1170_v47  ;;  %v5152_v10 = vcombine.high %v6133_v1, %v6138_v2  ;;  %v5138_v12 = vcombine.high %v1167_v5, %v1171_v7  ;;  %v1210_v1 = vld [vmem:[%s7768_s3 + $0x4e0] sm:$0xff]  ;;  %v1207_v2 = vld [vmem:[%s7768_s3 + $0x4c8] sm:$0xff] }
  0x9d   :  { %v5137_v15 = vcombine.low %v1167_v5, %v1171_v7 }
  0x9e   :  { %4181 = vmatpush1.bf16.msra.mxu0 %v5071_v52  ;;  %v1155_v52 = vld [vmem:[%s7768_s3 + $0x328] sm:$0xff] }
  0x9f   :  { %4182 = vmatprep.subr.bf16.mxu0 %v5080_v55  ;;  %4353 = vmatpush1.bf16.msra.mxu1 %v5073_v17  ;;  %v1178_v55 = vld [vmem:[%s7768_s3 + $0x3e0] sm:$0xff]  ;;  %v5122_v57 = vcombine.high %v1151_v51, %v1155_v52 }
  0xa0   :  { %4354 = vmatprep.subr.bf16.mxu1 %v5082_v18  ;;  %v5144_v61 = vcombine.high %v1174_v54, %v1178_v55  ;;  %v5143_v4 = vcombine.low %v1174_v54, %v1178_v55  ;;  %v5154_v18 = vcombine.high %v6143_v3, %v6154_v6  ;;  %v1211_v3 = vld [vmem:[%s7768_s3 + $0x4e8] sm:$0xff] }
  0xa2   :  { %4183 = vmatpush1.bf16.msra.mxu0 %v5079_v62  ;;  %v5121_v62 = vcombine.low %v1151_v51, %v1155_v52  ;;  %v1199_v51 = vld [vmem:[%s7768_s3 + $0x488] sm:$0xff] }
  0xa3   :  { %4184 = vmatprep.subr.bf16.mxu0 %v5088_v63  ;;  %4355 = vmatpush1.bf16.msra.mxu1 %v5081_v26  ;;  %v5130_v63 = vcombine.high %v1159_v59, %v1163_v60  ;;  %v1203_v52 = vld [vmem:[%s7768_s3 + $0x4a8] sm:$0xff] }
  0xa4   :  { %4356 = vmatprep.subr.bf16.mxu1 %v5090_v27  ;;  %v5169_v7 = vcombine.low %v1199_v51, %v1203_v52 }
  0xa6   :  { %4185 = vmatpush1.bf16.msra.mxu0 %v5087_v11  ;;  %v5129_v11 = vcombine.low %v1159_v59, %v1163_v60  ;;  %v5170_v59 = vcombine.high %v1199_v51, %v1203_v52  ;;  %v1206_v60 = vld [vmem:[%s7768_s3 + $0x4c0] sm:$0xff] }
  0xa7   :  { %4186 = vmatprep.subr.bf16.mxu0 %v5096_v14  ;;  %4357 = vmatpush1.bf16.msra.mxu1 %v5089_v34  ;;  %v1179_v14 = vld [vmem:[%s7768_s3 + $0x3e8] sm:$0xff] }
  0xa8   :  { %4358 = vmatprep.subr.bf16.mxu1 %v5098_v35  ;;  %v5146_v16 = vcombine.high %v1175_v13, %v1179_v14  ;;  %v5145_v17 = vcombine.low %v1175_v13, %v1179_v14  ;;  %v1214_v13 = vld [vmem:[%s7768_s3 + $0x500] sm:$0xff] }
  0xaa   :  { %4187 = vmatpush1.bf16.msra.mxu0 %v5095_v19  ;;  %v152_v19 = vlaneseq }
  0xab   :  { %4188 = vmatprep.subr.bf16.mxu0 %v5104_v23  ;;  %4359 = vmatpush1.bf16.msra.mxu1 %v5097_v22  ;;  %v6260_v23 = vld [vmem:[%s7769_s2] sm:$0xff] }
  0xac   :  { %4360 = vmatprep.subr.bf16.mxu1 %v5106_v41  ;;  %v6254_v20 = vshrl.u32 %v152_v19, 7  ;;  %v1194_v22 = vld [vmem:[%s7768_s3 + $0x460] sm:$0xff]  ;;  %v1191_v41 = vld [vmem:[%s7768_s3 + $0x448] sm:$0xff] }
  0xad   :  { %v5160_v46 = vcombine.high %v1190_v38, %v1194_v22  ;;  %v5159_v54 = vcombine.low %v1190_v38, %v1194_v22  ;;  %v1230_v38 = vld [vmem:[%s7768_s3 + $0x580] sm:$0xff]  ;;  %v1235_v22 = vld [vmem:[%s7768_s3 + $0x5a8] sm:$0xff] }
  0xae   :  { %4189 = vmatpush1.bf16.msra.mxu0 %v5103_v28  ;;  %v154_v21 = vsub.s32 0, %v6254_v20  ;;  %v158_v24 = vsub.s32 1, %v6254_v20  ;;  %v162_v35 = vsub.s32 2, %v6254_v20 }
  0xaf   :  { %4190 = vmatprep.subr.bf16.mxu0 %v5112_v31  ;;  %4361 = vmatpush1.bf16.msra.mxu1 %v5105_v48  ;;  %v1198_v48 = vld [vmem:[%s7768_s3 + $0x480] sm:$0xff] }
  0xb0   :  { %4362 = vmatprep.subr.bf16.mxu1 %v5114_v49  ;;  %v155_v25 = vrot.slane %v6260_v23, %v154_v21  ;;  %v159_v26 = vrot.slane %v6260_v23, %v158_v24 }
  0xb2   :  { %4191 = vmatpush1.bf16.msra.mxu0 %v5111_v36 }
  0xb3   :  { %4192 = vmatprep.subr.bf16.mxu0 %v5120_v39  ;;  %4363 = vmatpush1.bf16.msra.mxu1 %v5113_v56  ;;  %v166_v39 = vsub.s32 3, %v6254_v20 }
  0xb4   :  { %4364 = vmatprep.subr.bf16.mxu1 %v5122_v57 }
  0xb5   :  { %v167_v49 = vrot.slane %v6260_v23, %v166_v39 }
  0xb6   :  { %4193 = vmatpush1.bf16.msra.mxu0 %v5119_v42  ;;  %v1195_v42 = vld [vmem:[%s7768_s3 + $0x468] sm:$0xff] }
  0xb7   :  { %4194 = vmatprep.subr.bf16.mxu0 %v5128_v45  ;;  %4365 = vmatpush1.bf16.msra.mxu1 %v5121_v62  ;;  %v163_v45 = vrot.slane %v6260_v23, %v162_v35  ;;  %v5162_v47 = vcombine.high %v1191_v41, %v1195_v42  ;;  %v5161_v55 = vcombine.low %v1191_v41, %v1195_v42 }
  0xb8   :  { %4366 = vmatprep.subr.bf16.mxu1 %v5130_v63 }
  0xba   :  { %4195 = vmatpush1.bf16.msra.mxu0 %v5127_v50  ;;  %v1202_v50 = vld [vmem:[%s7768_s3 + $0x4a0] sm:$0xff] }
  0xbb   :  { %4196 = vmatprep.subr.bf16.mxu0 %v5136_v53  ;;  %4367 = vmatpush1.bf16.msra.mxu1 %v5129_v11  ;;  %v5167_v5 = vcombine.low %v1198_v48, %v1202_v50  ;;  %v5176_v11 = vcombine.high %v1206_v60, %v1210_v1 }
  0xbc   :  { %4368 = vmatprep.subr.bf16.mxu1 %v5138_v12  ;;  %v5178_v12 = vcombine.high %v1207_v2, %v1211_v3 }
  0xbe   :  { %4197 = vmatpush1.bf16.msra.mxu0 %v5135_v58  ;;  %v5168_v58 = vcombine.high %v1198_v48, %v1202_v50  ;;  %v1242_v48 = vld [vmem:[%s7768_s3 + $0x5e0] sm:$0xff]  ;;  %v1243_v50 = vld [vmem:[%s7768_s3 + $0x5e8] sm:$0xff] }
  0xbf   :  { %4198 = vmatprep.subr.bf16.mxu0 %v5144_v61  ;;  %4369 = vmatpush1.bf16.msra.mxu1 %v5137_v15  ;;  %v1218_v15 = vld [vmem:[%s7768_s3 + $0x520] sm:$0xff] }
  0xc0   :  { %4370 = vmatprep.subr.bf16.mxu1 %v5146_v16  ;;  %v1215_v16 = vld [vmem:[%s7768_s3 + $0x508] sm:$0xff] }
  0xc2   :  { %4199 = vmatpush1.bf16.msra.mxu0 %v5143_v4 }
  0xc3   :  { %4211 = vmatprep.subr.bf16.mxu0 %v5152_v10  ;;  %4371 = vmatpush1.bf16.msra.mxu1 %v5145_v17  ;;  %v1219_v17 = vld [vmem:[%s7768_s3 + $0x528] sm:$0xff] }
  0xc4   :  { %4383 = vmatprep.subr.bf16.mxu1 %v5154_v18 }
 0x118   :  { %v876_v27 = vpop.f32.mrb[0].mxu0  ;;  %v919_v53 = vpop.f32.mrb[0].mxu1 }
 0x119   :  { %v877_v28 = vadd.f32 %v876_v27, %v155_v25  ;;  %v878_v29 = vpop.f32.mrb[1].mxu0  ;;  %v920_v56 = vadd.f32 %v919_v53, %v163_v45  ;;  %v921_v57 = vpop.f32.mrb[1].mxu1  ;;  %v5184_v27 = vcombine.high %v1214_v13, %v1218_v15 }
 0x11a   :  { %v879_v30 = vadd.f32 %v878_v29, %v159_v26  ;;  %v880_v31 = vpop.f32.mrb[2].mxu0  ;;  %v922_v61 = vadd.f32 %v921_v57, %v167_v49  ;;  %v923_v62 = vpop.f32.mrb[2].mxu1  ;;  %v1222_v29 = vld [vmem:[%s7768_s3 + $0x540] sm:$0xff]  ;;  %v1247_v57 = vld [vmem:[%s7768_s3 + $0x608] sm:$0xff] }
 0x11b   :  { %v881_v32 = vadd.f32 %v880_v31, %v155_v25  ;;  %v882_v33 = vpop.f32.mrb[3].mxu0  ;;  %v1014_v36 = vmax.f32 %v877_v28, 0.0  ;;  %v1016_v6 = vmax.f32 %v920_v56, 0.0  ;;  %v5175_v25 = vcombine.low %v1206_v60, %v1210_v1  ;;  %v1223_v31 = vld [vmem:[%s7768_s3 + $0x548] sm:$0xff]  ;;  %v1250_v56 = vld [vmem:[%s7768_s3 + $0x620] sm:$0xff] }
 0x11c   :  { %v883_v34 = vadd.f32 %v882_v33, %v159_v26  ;;  %v1015_v0 = vmax.f32 %v879_v30, 0.0  ;;  %v1017_v63 = vmax.f32 %v922_v61, 0.0  ;;  %v5177_v26 = vcombine.low %v1207_v2, %v1211_v3  ;;  %v1226_v30 = vld [vmem:[%s7768_s3 + $0x560] sm:$0xff]  ;;  %v1255_v3 = vld [vmem:[%s7768_s3 + $0x648] sm:$0xff] }
 0x11d   :  { %v1022_v37 = vmax.f32 %v881_v32, 0.0  ;;  %v5186_v28 = vcombine.high %v1215_v16, %v1219_v17  ;;  %v1227_v32 = vld [vmem:[%s7768_s3 + $0x568] sm:$0xff]  ;;  %v5183_v33 = vcombine.low %v1214_v13, %v1218_v15  ;;  %v5191_v41 = vcombine.low %v1222_v29, %v1226_v30  ;;  %v1254_v1 = vld [vmem:[%s7768_s3 + $0x640] sm:$0xff] }
 0x11e   :  { %v1023_v40 = vmax.f32 %v883_v34, 0.0  ;;  %v5185_v34 = vcombine.low %v1215_v16, %v1219_v17  ;;  %v5193_v42 = vcombine.low %v1223_v31, %v1227_v32  ;;  %v1258_v2 = vld [vmem:[%s7768_s3 + $0x660] sm:$0xff] }
 0x11f   :  { %v6283_v43 = vpack.c.bf16 %v1022_v37, %v1014_v36  ;;  %v5192_v36 = vcombine.high %v1222_v29, %v1226_v30  ;;  %v5194_v37 = vcombine.high %v1223_v31, %v1227_v32  ;;  %v1270_v16 = vld [vmem:[%s7768_s3 + $0x6c0] sm:$0xff] }
 0x120   :  { %v6285_v44 = vpack.c.bf16 %v1023_v40, %v1015_v0  ;;  %v1234_v0 = vld [vmem:[%s7768_s3 + $0x5a0] sm:$0xff]  ;;  %v1231_v40 = vld [vmem:[%s7768_s3 + $0x588] sm:$0xff] }
 0x121   :  { %v5199_v51 = vcombine.low %v1230_v38, %v1234_v0  ;;  %v5201_v52 = vcombine.low %v1231_v40, %v1235_v22  ;;  %v1274_v17 = vld [vmem:[%s7768_s3 + $0x6e0] sm:$0xff] }
 0x122   :  { %4200 = vmatprep.mubr.bf16.mxu0 %v6285_v44  ;;  %4372 = vmatprep.mubr.bf16.mxu1 %v6285_v44  ;;  %v5240_v29 = vcombine.high %v1270_v16, %v1274_v17  ;;  %v1278_v31 = vld [vmem:[%s7768_s3 + $0x700] sm:$0xff] }
 0x123   :  { %4201 = vmatmul.mubr.bf16.vlgmr.msra.gmra.mrb[8].mxu0 %v6283_v43  ;;  %4373 = vmatmul.mubr.bf16.vlgmr.msra.gmra.mrb[8].mxu1 %v6283_v43  ;;  %v1282_v32 = vld [vmem:[%s7768_s3 + $0x720] sm:$0xff] }
 0x124   :  { %4212 = vmatpush1.bf16.msra.mxu0 %v5151_v8  ;;  %4384 = vmatpush1.bf16.msra.mxu1 %v5153_v9  ;;  %v924_v8 = vadd.f32 %v923_v62, %v163_v45  ;;  %v925_v9 = vpop.f32.mrb[3].mxu1  ;;  %v5200_v45 = vcombine.high %v1230_v38, %v1234_v0  ;;  %v5248_v38 = vcombine.high %v1278_v31, %v1282_v32 }
 0x125   :  { %4213 = vmatprep.subr.bf16.mxu0 %v5160_v46  ;;  %4385 = vmatprep.subr.bf16.mxu1 %v5162_v47  ;;  %v926_v4 = vadd.f32 %v925_v9, %v167_v49  ;;  %v5202_v46 = vcombine.high %v1231_v40, %v1235_v22  ;;  %v1238_v47 = vld [vmem:[%s7768_s3 + $0x5c0] sm:$0xff]  ;;  %v1239_v49 = vld [vmem:[%s7768_s3 + $0x5c8] sm:$0xff] }
 0x126   :  { %v1024_v10 = vmax.f32 %v924_v8, 0.0  ;;  %v5208_v53 = vcombine.high %v1238_v47, %v1242_v48  ;;  %v5209_v60 = vcombine.low %v1239_v49, %v1243_v50  ;;  %v1286_v40 = vld [vmem:[%s7768_s3 + $0x740] sm:$0xff] }
 0x127   :  { %v1025_v14 = vmax.f32 %v926_v4, 0.0  ;;  %v1290_v22 = vld [vmem:[%s7768_s3 + $0x760] sm:$0xff] }
 0x128   :  { %4214 = vmatpush1.bf16.msra.mxu0 %v5159_v54  ;;  %4386 = vmatpush1.bf16.msra.mxu1 %v5161_v55  ;;  %v6339_v18 = vpack.c.bf16 %v1024_v10, %v1016_v6  ;;  %v5210_v54 = vcombine.high %v1239_v49, %v1243_v50  ;;  %v1246_v55 = vld [vmem:[%s7768_s3 + $0x600] sm:$0xff]  ;;  %v1259_v6 = vld [vmem:[%s7768_s3 + $0x668] sm:$0xff]  ;;  %v170_v50 = vsub.s32 4, %v6254_v20 }
 0x129   :  { %4215 = vmatprep.subr.bf16.mxu0 %v5168_v58  ;;  %4387 = vmatprep.subr.bf16.mxu1 %v5170_v59  ;;  %v6341_v19 = vpack.c.bf16 %v1025_v14, %v1017_v63  ;;  %v1251_v58 = vld [vmem:[%s7768_s3 + $0x628] sm:$0xff]  ;;  %v5207_v59 = vcombine.low %v1238_v47, %v1242_v48  ;;  %v5216_v61 = vcombine.high %v1246_v55, %v1250_v56  ;;  %v1294_v49 = vld [vmem:[%s7768_s3 + $0x780] sm:$0xff] }
 0x12a   :  { %v5218_v62 = vcombine.high %v1247_v57, %v1251_v58  ;;  %v5215_v8 = vcombine.low %v1246_v55, %v1250_v56  ;;  %v5217_v9 = vcombine.low %v1247_v57, %v1251_v58  ;;  %v5224_v63 = vcombine.high %v1254_v1, %v1258_v2  ;;  %v1263_v10 = vld [vmem:[%s7768_s3 + $0x688] sm:$0xff] }
 0x12b   :  { %4243 = vmatprep.mubr.bf16.mxu0 %v6341_v19  ;;  %4415 = vmatprep.mubr.bf16.mxu1 %v6341_v19  ;;  %v5226_v4 = vcombine.high %v1255_v3, %v1259_v6  ;;  %v5225_v13 = vcombine.low %v1255_v3, %v1259_v6  ;;  %v5256_v47 = vcombine.high %v1286_v40, %v1290_v22 }
 0x12c   :  { %4216 = vmatpush1.bf16.msra.mxu0 %v5167_v5  ;;  %4388 = vmatpush1.bf16.msra.mxu1 %v5169_v7  ;;  %v1262_v5 = vld [vmem:[%s7768_s3 + $0x680] sm:$0xff]  ;;  %v5255_v55 = vcombine.low %v1286_v40, %v1290_v22 }
 0x12d   :  { %4217 = vmatprep.subr.bf16.mxu0 %v5176_v11  ;;  %4389 = vmatprep.subr.bf16.mxu1 %v5178_v12  ;;  %v1266_v7 = vld [vmem:[%s7768_s3 + $0x6a0] sm:$0xff]  ;;  %v1267_v11 = vld [vmem:[%s7768_s3 + $0x6a8] sm:$0xff]  ;;  %v5223_v12 = vcombine.low %v1254_v1, %v1258_v2 }
 0x12e   :  { %v5232_v14 = vcombine.high %v1262_v5, %v1266_v7  ;;  %v5234_v15 = vcombine.high %v1263_v10, %v1267_v11  ;;  %v1307_v1 = vld [vmem:[%s7768_s3 + $0x7e8] sm:$0xff] }
 0x130   :  { %4218 = vmatpush1.bf16.msra.mxu0 %v5175_v25  ;;  %4390 = vmatpush1.bf16.msra.mxu1 %v5177_v26  ;;  %v1271_v25 = vld [vmem:[%s7768_s3 + $0x6c8] sm:$0xff] }
 0x131   :  { %4219 = vmatprep.subr.bf16.mxu0 %v5184_v27  ;;  %4391 = vmatprep.subr.bf16.mxu1 %v5186_v28  ;;  %v1275_v26 = vld [vmem:[%s7768_s3 + $0x6e8] sm:$0xff]  ;;  %v5231_v27 = vcombine.low %v1262_v5, %v1266_v7  ;;  %v5233_v28 = vcombine.low %v1263_v10, %v1267_v11  ;;  %v1314_v10 = vld [vmem:[%s7768_s3 + $0x820] sm:$0xff] }
 0x132   :  { %v5242_v30 = vcombine.high %v1271_v25, %v1275_v26  ;;  %v1311_v11 = vld [vmem:[%s7768_s3 + $0x808] sm:$0xff] }
 0x134   :  { %4220 = vmatpush1.bf16.msra.mxu0 %v5183_v33  ;;  %4392 = vmatpush1.bf16.msra.mxu1 %v5185_v34  ;;  %v1279_v33 = vld [vmem:[%s7768_s3 + $0x708] sm:$0xff] }
 0x135   :  { %4221 = vmatprep.subr.bf16.mxu0 %v5192_v36  ;;  %4393 = vmatprep.subr.bf16.mxu1 %v5194_v37  ;;  %v1283_v34 = vld [vmem:[%s7768_s3 + $0x728] sm:$0xff]  ;;  %v5239_v36 = vcombine.low %v1270_v16, %v1274_v17  ;;  %v5241_v37 = vcombine.low %v1271_v25, %v1275_v26 }
 0x136   :  { %v5250_v0 = vcombine.high %v1279_v33, %v1283_v34 }
 0x138   :  { %4222 = vmatpush1.bf16.msra.mxu0 %v5191_v41  ;;  %4394 = vmatpush1.bf16.msra.mxu1 %v5193_v42  ;;  %v1287_v41 = vld [vmem:[%s7768_s3 + $0x748] sm:$0xff] }
 0x139   :  { %4223 = vmatprep.subr.bf16.mxu0 %v5200_v45  ;;  %4395 = vmatprep.subr.bf16.mxu1 %v5202_v46  ;;  %v1291_v42 = vld [vmem:[%s7768_s3 + $0x768] sm:$0xff]  ;;  %v5247_v45 = vcombine.low %v1278_v31, %v1282_v32  ;;  %v5249_v46 = vcombine.low %v1279_v33, %v1283_v34  ;;  %v1318_v32 = vld [vmem:[%s7768_s3 + $0x840] sm:$0xff]  ;;  %v182_v34 = vsub.s32 7, %v6254_v20 }
 0x13a   :  { %v5258_v48 = vcombine.high %v1287_v41, %v1291_v42  ;;  %v5257_v56 = vcombine.low %v1287_v41, %v1291_v42 }
 0x13c   :  { %4224 = vmatpush1.bf16.msra.mxu0 %v5199_v51  ;;  %4396 = vmatpush1.bf16.msra.mxu1 %v5201_v52  ;;  %v1298_v51 = vld [vmem:[%s7768_s3 + $0x7a0] sm:$0xff]  ;;  %v1295_v52 = vld [vmem:[%s7768_s3 + $0x788] sm:$0xff] }
 0x13d   :  { %4225 = vmatprep.subr.bf16.mxu0 %v5208_v53  ;;  %4397 = vmatprep.subr.bf16.mxu1 %v5210_v54  ;;  %v1299_v53 = vld [vmem:[%s7768_s3 + $0x7a8] sm:$0xff]  ;;  %v174_v54 = vsub.s32 5, %v6254_v20  ;;  %v5264_v57 = vcombine.high %v1294_v49, %v1298_v51  ;;  %v5263_v3 = vcombine.low %v1294_v49, %v1298_v51  ;;  %v183_v49 = vrot.slane %v6260_v23, %v182_v34  ;;  %v1330_v51 = vld [vmem:[%s7768_s3 + $0x8a0] sm:$0xff] }
 0x13e   :  { %v5266_v58 = vcombine.high %v1295_v52, %v1299_v53  ;;  %v5265_v6 = vcombine.low %v1295_v52, %v1299_v53  ;;  %v1327_v52 = vld [vmem:[%s7768_s3 + $0x888] sm:$0xff] }
 0x13f   :  { %v175_v2 = vrot.slane %v6260_v23, %v174_v54  ;;  %v1331_v53 = vld [vmem:[%s7768_s3 + $0x8a8] sm:$0xff] }
 0x140   :  { %4226 = vmatpush1.bf16.msra.mxu0 %v5207_v59  ;;  %4398 = vmatpush1.bf16.msra.mxu1 %v5209_v60  ;;  %v1302_v59 = vld [vmem:[%s7768_s3 + $0x7c0] sm:$0xff]  ;;  %v171_v60 = vrot.slane %v6260_v23, %v170_v50 }
 0x141   :  { %4227 = vmatprep.subr.bf16.mxu0 %v5216_v61  ;;  %4399 = vmatprep.subr.bf16.mxu1 %v5218_v62  ;;  %v1306_v61 = vld [vmem:[%s7768_s3 + $0x7e0] sm:$0xff]  ;;  %v1303_v62 = vld [vmem:[%s7768_s3 + $0x7c8] sm:$0xff] }
 0x142   :  { %v5273_v26 = vcombine.low %v1303_v62, %v1307_v1 }
 0x144   :  { %4228 = vmatpush1.bf16.msra.mxu0 %v5215_v8  ;;  %4400 = vmatpush1.bf16.msra.mxu1 %v5217_v9  ;;  %v5272_v9 = vcombine.high %v1302_v59, %v1306_v61 }
 0x145   :  { %4229 = vmatprep.subr.bf16.mxu0 %v5224_v63  ;;  %4401 = vmatprep.subr.bf16.mxu1 %v5226_v4  ;;  %v5274_v63 = vcombine.high %v1303_v62, %v1307_v1  ;;  %v1310_v4 = vld [vmem:[%s7768_s3 + $0x800] sm:$0xff] }
 0x146   :  { %v5279_v40 = vcombine.low %v1310_v4, %v1314_v10 }
 0x148   :  { %4230 = vmatpush1.bf16.msra.mxu0 %v5223_v12  ;;  %4402 = vmatpush1.bf16.msra.mxu1 %v5225_v13  ;;  %v1315_v12 = vld [vmem:[%s7768_s3 + $0x828] sm:$0xff] }
 0x149   :  { %4231 = vmatprep.subr.bf16.mxu0 %v5232_v14  ;;  %4403 = vmatprep.subr.bf16.mxu1 %v5234_v15  ;;  %v5271_v15 = vcombine.low %v1302_v59, %v1306_v61  ;;  %v5282_v31 = vcombine.high %v1311_v11, %v1315_v12  ;;  %v5281_v41 = vcombine.low %v1311_v11, %v1315_v12  ;;  %v1334_v61 = vld [vmem:[%s7768_s3 + $0x8c0] sm:$0xff] }
 0x14c   :  { %4232 = vmatpush1.bf16.msra.mxu0 %v5231_v27  ;;  %4404 = vmatpush1.bf16.msra.mxu1 %v5233_v28 }
 0x14d   :  { %4233 = vmatprep.subr.bf16.mxu0 %v5240_v29  ;;  %4405 = vmatprep.subr.bf16.mxu1 %v5242_v30  ;;  %v178_v29 = vsub.s32 6, %v6254_v20  ;;  %v5280_v30 = vcombine.high %v1310_v4, %v1314_v10  ;;  %v5297_v10 = vcombine.low %v1327_v52, %v1331_v53 }
 0x150   :  { %4234 = vmatpush1.bf16.msra.mxu0 %v5239_v36  ;;  %4406 = vmatpush1.bf16.msra.mxu1 %v5241_v37  ;;  %v1322_v36 = vld [vmem:[%s7768_s3 + $0x860] sm:$0xff]  ;;  %v1319_v37 = vld [vmem:[%s7768_s3 + $0x848] sm:$0xff] }
 0x151   :  { %4235 = vmatprep.subr.bf16.mxu0 %v5248_v38  ;;  %4407 = vmatprep.subr.bf16.mxu1 %v5250_v0  ;;  %v1323_v38 = vld [vmem:[%s7768_s3 + $0x868] sm:$0xff] }
 0x154   :  { %4236 = vmatpush1.bf16.msra.mxu0 %v5247_v45  ;;  %4408 = vmatpush1.bf16.msra.mxu1 %v5249_v46  ;;  %v179_v45 = vrot.slane %v6260_v23, %v178_v29  ;;  %v5288_v46 = vcombine.high %v1318_v32, %v1322_v36  ;;  %v5287_v23 = vcombine.low %v1318_v32, %v1322_v36  ;;  %v1354_v36 = vld [vmem:[%s7768_s3 + $0x960] sm:$0xff] }
 0x155   :  { %4237 = vmatprep.subr.bf16.mxu0 %v5256_v47  ;;  %4409 = vmatprep.subr.bf16.mxu1 %v5258_v48  ;;  %v5290_v47 = vcombine.high %v1319_v37, %v1323_v38  ;;  %v1326_v48 = vld [vmem:[%s7768_s3 + $0x880] sm:$0xff] }
 0x156   :  { %v5296_v59 = vcombine.high %v1326_v48, %v1330_v51 }
 0x158   :  { %4238 = vmatpush1.bf16.msra.mxu0 %v5255_v55  ;;  %4410 = vmatpush1.bf16.msra.mxu1 %v5257_v56  ;;  %v962_v8 = vpop.f32.mrb[4].mxu0  ;;  %v5289_v56 = vcombine.low %v1319_v37, %v1323_v38  ;;  %v1351_v37 = vld [vmem:[%s7768_s3 + $0x948] sm:$0xff] }
 0x159   :  { %4239 = vmatprep.subr.bf16.mxu0 %v5264_v57  ;;  %4411 = vmatprep.subr.bf16.mxu1 %v5266_v58  ;;  %v963_v5 = vadd.f32 %v962_v8, %v171_v60  ;;  %v964_v7 = vpop.f32.mrb[5].mxu0  ;;  %v1005_v55 = vpop.f32.mrb[4].mxu1  ;;  %v1355_v38 = vld [vmem:[%s7768_s3 + $0x968] sm:$0xff] }
 0x15a   :  { %v965_v13 = vadd.f32 %v964_v7, %v175_v2  ;;  %v966_v14 = vpop.f32.mrb[6].mxu0  ;;  %v1006_v57 = vadd.f32 %v1005_v55, %v179_v45  ;;  %v1007_v58 = vpop.f32.mrb[5].mxu1  ;;  %v5295_v7 = vcombine.low %v1326_v48, %v1330_v51  ;;  %v1359_v48 = vld [vmem:[%s7768_s3 + $0x988] sm:$0xff] }
 0x15b   :  { %v1018_v16 = vmax.f32 %v963_v5, 0.0  ;;  %v967_v17 = vadd.f32 %v966_v14, %v171_v60  ;;  %v968_v25 = vpop.f32.mrb[7].mxu0  ;;  %v5298_v60 = vcombine.high %v1327_v52, %v1331_v53  ;;  %v1008_v62 = vadd.f32 %v1007_v58, %v183_v49  ;;  %v1009_v1 = vpop.f32.mrb[6].mxu1  ;;  %v1342_v14 = vld [vmem:[%s7768_s3 + $0x900] sm:$0xff]  ;;  %v1371_v58 = vld [vmem:[%s7768_s3 + $0x9e8] sm:$0xff] }
 0x15c   :  { %4240 = vmatpush1.bf16.msra.mxu0 %v5263_v3  ;;  %4412 = vmatpush1.bf16.msra.mxu1 %v5265_v6  ;;  %v1019_v27 = vmax.f32 %v965_v13, 0.0  ;;  %v969_v28 = vadd.f32 %v968_v25, %v175_v2  ;;  %v1338_v2 = vld [vmem:[%s7768_s3 + $0x8e0] sm:$0xff]  ;;  %v1335_v3 = vld [vmem:[%s7768_s3 + $0x8c8] sm:$0xff]  ;;  %v1020_v8 = vmax.f32 %v1006_v57, 0.0  ;;  %v5321_v52 = vcombine.low %v1351_v37, %v1355_v38 }
 0x15d   :  { %4241 = vmatprep.subr.bf16.mxu0 %v5272_v9  ;;  %4413 = vmatprep.subr.bf16.mxu1 %v5274_v63  ;;  %v1026_v33 = vmax.f32 %v967_v17, 0.0  ;;  %v1339_v6 = vld [vmem:[%s7768_s3 + $0x8e8] sm:$0xff]  ;;  %v1010_v9 = vadd.f32 %v1009_v1, %v179_v45  ;;  %v1011_v63 = vpop.f32.mrb[7].mxu1  ;;  %v1021_v4 = vmax.f32 %v1008_v62, 0.0  ;;  %v5304_v12 = vcombine.high %v1334_v61, %v1338_v2  ;;  %v1374_v1 = vld [vmem:[%s7768_s3 + $0xa00] sm:$0xff] }
 0x15e   :  { %v1027_v0 = vmax.f32 %v969_v28, 0.0  ;;  %v1012_v5 = vadd.f32 %v1011_v63, %v183_v49  ;;  %v5306_v13 = vcombine.high %v1335_v3, %v1339_v6  ;;  %v1343_v17 = vld [vmem:[%s7768_s3 + $0x908] sm:$0xff]  ;;  %v5303_v28 = vcombine.low %v1334_v61, %v1338_v2  ;;  %v1378_v2 = vld [vmem:[%s7768_s3 + $0xa20] sm:$0xff] }
 0x15f   :  { %v6511_v22 = vpack.c.bf16 %v1026_v33, %v1018_v16  ;;  %v1028_v11 = vmax.f32 %v1010_v9, 0.0  ;;  %v1346_v16 = vld [vmem:[%s7768_s3 + $0x920] sm:$0xff]  ;;  %v1347_v25 = vld [vmem:[%s7768_s3 + $0x928] sm:$0xff]  ;;  %v5322_v45 = vcombine.high %v1351_v37, %v1355_v38  ;;  %v5344_v63 = vcombine.high %v1374_v1, %v1378_v2 }
 0x160   :  { %4242 = vmatpush1.bf16.msra.mxu0 %v5271_v15  ;;  %4414 = vmatpush1.bf16.msra.mxu1 %v5273_v26  ;;  %v6513_v42 = vpack.c.bf16 %v1027_v0, %v1019_v27  ;;  %v1029_v15 = vmax.f32 %v1012_v5, 0.0  ;;  %v5314_v32 = vcombine.high %v1343_v17, %v1347_v25  ;;  %v1350_v33 = vld [vmem:[%s7768_s3 + $0x940] sm:$0xff]  ;;  %v5311_v0 = vcombine.low %v1342_v14, %v1346_v16  ;;  %v1363_v49 = vld [vmem:[%s7768_s3 + $0x9a8] sm:$0xff] }
 0x161   :  { %4254 = vmatprep.subr.bf16.mxu0 %v5280_v30  ;;  %4426 = vmatprep.subr.bf16.mxu1 %v5282_v31  ;;  %v6561_v26 = vpack.c.bf16 %v1028_v11, %v1020_v8  ;;  %v5305_v30 = vcombine.low %v1335_v3, %v1339_v6  ;;  %v5312_v31 = vcombine.high %v1342_v14, %v1346_v16  ;;  %v1367_v57 = vld [vmem:[%s7768_s3 + $0x9c8] sm:$0xff]  ;;  %v1382_v5 = vld [vmem:[%s7768_s3 + $0xa40] sm:$0xff] }
 0x162   :  { %v6563_v27 = vpack.c.bf16 %v1029_v15, %v1021_v4  ;;  %v5319_v51 = vcombine.low %v1350_v33, %v1354_v36  ;;  %v5330_v55 = vcombine.high %v1359_v48, %v1363_v49  ;;  %v5338_v62 = vcombine.high %v1367_v57, %v1371_v58  ;;  %v1375_v3 = vld [vmem:[%s7768_s3 + $0xa08] sm:$0xff]  ;;  %v1390_v16 = vld [vmem:[%s7768_s3 + $0xa80] sm:$0xff] }
 0x163   :  { %4244 = vmatmul.mubr.bf16.vlgmr.msra.gmra.mrb[8].mxu0 %v6339_v18  ;;  %4416 = vmatmul.mubr.bf16.vlgmr.msra.gmra.mrb[8].mxu1 %v6339_v18  ;;  %v1379_v6 = vld [vmem:[%s7768_s3 + $0xa28] sm:$0xff]  ;;  %v5337_v9 = vcombine.low %v1367_v57, %v1371_v58  ;;  %v1402_v37 = vld [vmem:[%s7768_s3 + $0xae0] sm:$0xff] }
 0x164   :  { %4255 = vmatpush1.bf16.msra.mxu0 %v5279_v40  ;;  %4427 = vmatpush1.bf16.msra.mxu1 %v5281_v41  ;;  %v5313_v40 = vcombine.low %v1343_v17, %v1347_v25  ;;  %v5320_v41 = vcombine.high %v1350_v33, %v1354_v36  ;;  %v5346_v4 = vcombine.high %v1375_v3, %v1379_v6  ;;  %v1387_v11 = vld [vmem:[%s7768_s3 + $0xa68] sm:$0xff]  ;;  %v1394_v17 = vld [vmem:[%s7768_s3 + $0xaa0] sm:$0xff] }
 0x165   :  { %4256 = vmatprep.subr.bf16.mxu0 %v5288_v46  ;;  %4428 = vmatprep.subr.bf16.mxu1 %v5290_v47  ;;  %v1358_v46 = vld [vmem:[%s7768_s3 + $0x980] sm:$0xff]  ;;  %v1391_v25 = vld [vmem:[%s7768_s3 + $0xa88] sm:$0xff] }
 0x166   :  { %4286 = vmatprep.mubr.bf16.mxu0 %v6513_v42  ;;  %4458 = vmatprep.mubr.bf16.mxu1 %v6513_v42  ;;  %v1362_v47 = vld [vmem:[%s7768_s3 + $0x9a0] sm:$0xff]  ;;  %v1399_v38 = vld [vmem:[%s7768_s3 + $0xac8] sm:$0xff] }
 0x167   :  { %v5328_v53 = vcombine.high %v1358_v46, %v1362_v47  ;;  %v1398_v36 = vld [vmem:[%s7768_s3 + $0xac0] sm:$0xff]  ;;  %v1415_v58 = vld [vmem:[%s7768_s3 + $0xb48] sm:$0xff] }
 0x168   :  { %4257 = vmatpush1.bf16.msra.mxu0 %v5287_v23  ;;  %4429 = vmatpush1.bf16.msra.mxu1 %v5289_v56  ;;  %v1366_v23 = vld [vmem:[%s7768_s3 + $0x9c0] sm:$0xff] }
 0x169   :  { %4258 = vmatprep.subr.bf16.mxu0 %v5296_v59  ;;  %4430 = vmatprep.subr.bf16.mxu1 %v5298_v60  ;;  %v1370_v56 = vld [vmem:[%s7768_s3 + $0x9e0] sm:$0xff]  ;;  %v5327_v59 = vcombine.low %v1358_v46, %v1362_v47  ;;  %v5329_v60 = vcombine.low %v1359_v48, %v1363_v49  ;;  %v1407_v49 = vld [vmem:[%s7768_s3 + $0xb08] sm:$0xff] }
 0x16a   :  { %v5336_v61 = vcombine.high %v1366_v23, %v1370_v56  ;;  %v5335_v8 = vcombine.low %v1366_v23, %v1370_v56  ;;  %v1406_v47 = vld [vmem:[%s7768_s3 + $0xb00] sm:$0xff] }
 0x16b   :  { %v1410_v48 = vld [vmem:[%s7768_s3 + $0xb20] sm:$0xff] }
 0x16c   :  { %4259 = vmatpush1.bf16.msra.mxu0 %v5295_v7  ;;  %4431 = vmatpush1.bf16.msra.mxu1 %v5297_v10  ;;  %v1386_v7 = vld [vmem:[%s7768_s3 + $0xa60] sm:$0xff]  ;;  %v1383_v10 = vld [vmem:[%s7768_s3 + $0xa48] sm:$0xff] }
 0x16d   :  { %4260 = vmatprep.subr.bf16.mxu0 %v5304_v12  ;;  %4432 = vmatprep.subr.bf16.mxu1 %v5306_v13  ;;  %v5343_v12 = vcombine.low %v1374_v1, %v1378_v2  ;;  %v5345_v13 = vcombine.low %v1375_v3, %v1379_v6  ;;  %v5352_v14 = vcombine.high %v1382_v5, %v1386_v7  ;;  %v1414_v56 = vld [vmem:[%s7768_s3 + $0xb40] sm:$0xff]  ;;  %v1423_v6 = vld [vmem:[%s7768_s3 + $0xb88] sm:$0xff] }
 0x16e   :  { %v5354_v15 = vcombine.high %v1383_v10, %v1387_v11  ;;  %v1418_v57 = vld [vmem:[%s7768_s3 + $0xb60] sm:$0xff] }
 0x16f   :  { %v1422_v2 = vld [vmem:[%s7768_s3 + $0xb80] sm:$0xff] }
 0x170   :  { %4261 = vmatpush1.bf16.msra.mxu0 %v5303_v28  ;;  %4433 = vmatpush1.bf16.msra.mxu1 %v5305_v30  ;;  %v1395_v28 = vld [vmem:[%s7768_s3 + $0xaa8] sm:$0xff]  ;;  %v5351_v30 = vcombine.low %v1382_v5, %v1386_v7  ;;  %v1426_v3 = vld [vmem:[%s7768_s3 + $0xba0] sm:$0xff] }
 0x171   :  { %4262 = vmatprep.subr.bf16.mxu0 %v5312_v31  ;;  %4434 = vmatprep.subr.bf16.mxu1 %v5314_v32  ;;  %v5353_v31 = vcombine.low %v1383_v10, %v1387_v11  ;;  %v5360_v32 = vcombine.high %v1390_v16, %v1394_v17  ;;  %v5362_v33 = vcombine.high %v1391_v25, %v1395_v28  ;;  %v1430_v7 = vld [vmem:[%s7768_s3 + $0xbc0] sm:$0xff]  ;;  %v1431_v11 = vld [vmem:[%s7768_s3 + $0xbc8] sm:$0xff] }
 0x172   :  { %v1434_v10 = vld [vmem:[%s7768_s3 + $0xbe0] sm:$0xff] }
 0x174   :  { %4263 = vmatpush1.bf16.msra.mxu0 %v5311_v0  ;;  %4435 = vmatpush1.bf16.msra.mxu1 %v5313_v40  ;;  %v1403_v0 = vld [vmem:[%s7768_s3 + $0xae8] sm:$0xff]  ;;  %v5359_v40 = vcombine.low %v1390_v16, %v1394_v17  ;;  %v1438_v17 = vld [vmem:[%s7768_s3 + $0xc00] sm:$0xff] }
 0x175   :  { %4264 = vmatprep.subr.bf16.mxu0 %v5320_v41  ;;  %4436 = vmatprep.subr.bf16.mxu1 %v5322_v45  ;;  %v5361_v41 = vcombine.low %v1391_v25, %v1395_v28  ;;  %v5368_v45 = vcombine.high %v1398_v36, %v1402_v37  ;;  %v5370_v46 = vcombine.high %v1399_v38, %v1403_v0  ;;  %v1442_v25 = vld [vmem:[%s7768_s3 + $0xc20] sm:$0xff]  ;;  %v1439_v28 = vld [vmem:[%s7768_s3 + $0xc08] sm:$0xff] }
 0x178   :  { %4265 = vmatpush1.bf16.msra.mxu0 %v5319_v51  ;;  %4437 = vmatpush1.bf16.msra.mxu1 %v5321_v52  ;;  %v1411_v51 = vld [vmem:[%s7768_s3 + $0xb28] sm:$0xff]  ;;  %v5367_v52 = vcombine.low %v1398_v36, %v1402_v37  ;;  %v1446_v37 = vld [vmem:[%s7768_s3 + $0xc40] sm:$0xff] }
 0x179   :  { %4266 = vmatprep.subr.bf16.mxu0 %v5328_v53  ;;  %4438 = vmatprep.subr.bf16.mxu1 %v5330_v55  ;;  %v5369_v53 = vcombine.low %v1399_v38, %v1403_v0  ;;  %v5376_v55 = vcombine.high %v1406_v47, %v1410_v48  ;;  %v5378_v23 = vcombine.high %v1407_v49, %v1411_v51  ;;  %v1450_v38 = vld [vmem:[%s7768_s3 + $0xc60] sm:$0xff]  ;;  %v1447_v0 = vld [vmem:[%s7768_s3 + $0xc48] sm:$0xff] }
 0x17c   :  { %4267 = vmatpush1.bf16.msra.mxu0 %v5327_v59  ;;  %4439 = vmatpush1.bf16.msra.mxu1 %v5329_v60  ;;  %v1419_v59 = vld [vmem:[%s7768_s3 + $0xb68] sm:$0xff]  ;;  %v5375_v60 = vcombine.low %v1406_v47, %v1410_v48  ;;  %v1454_v48 = vld [vmem:[%s7768_s3 + $0xc80] sm:$0xff] }
 0x17d   :  { %4268 = vmatprep.subr.bf16.mxu0 %v5336_v61  ;;  %4440 = vmatprep.subr.bf16.mxu1 %v5338_v62  ;;  %v5377_v61 = vcombine.low %v1407_v49, %v1411_v51  ;;  %v5384_v62 = vcombine.high %v1414_v56, %v1418_v57  ;;  %v5386_v1 = vcombine.high %v1415_v58, %v1419_v59  ;;  %v1458_v49 = vld [vmem:[%s7768_s3 + $0xca0] sm:$0xff]  ;;  %v1455_v51 = vld [vmem:[%s7768_s3 + $0xc88] sm:$0xff] }
 0x180   :  { %4269 = vmatpush1.bf16.msra.mxu0 %v5335_v8  ;;  %4441 = vmatpush1.bf16.msra.mxu1 %v5337_v9  ;;  %v1427_v8 = vld [vmem:[%s7768_s3 + $0xba8] sm:$0xff]  ;;  %v5383_v9 = vcombine.low %v1414_v56, %v1418_v57  ;;  %v1462_v57 = vld [vmem:[%s7768_s3 + $0xcc0] sm:$0xff] }
 0x181   :  { %4270 = vmatprep.subr.bf16.mxu0 %v5344_v63  ;;  %4442 = vmatprep.subr.bf16.mxu1 %v5346_v4  ;;  %v5385_v63 = vcombine.low %v1415_v58, %v1419_v59  ;;  %v5392_v4 = vcombine.high %v1422_v2, %v1426_v3  ;;  %v5394_v5 = vcombine.high %v1423_v6, %v1427_v8  ;;  %v1466_v58 = vld [vmem:[%s7768_s3 + $0xce0] sm:$0xff]  ;;  %v1463_v59 = vld [vmem:[%s7768_s3 + $0xcc8] sm:$0xff] }
 0x184   :  { %4271 = vmatpush1.bf16.msra.mxu0 %v5343_v12  ;;  %4443 = vmatpush1.bf16.msra.mxu1 %v5345_v13  ;;  %v1435_v12 = vld [vmem:[%s7768_s3 + $0xbe8] sm:$0xff]  ;;  %v5391_v13 = vcombine.low %v1422_v2, %v1426_v3  ;;  %v1470_v3 = vld [vmem:[%s7768_s3 + $0xd00] sm:$0xff] }
 0x185   :  { %4272 = vmatprep.subr.bf16.mxu0 %v5352_v14  ;;  %4444 = vmatprep.subr.bf16.mxu1 %v5354_v15  ;;  %v5393_v14 = vcombine.low %v1423_v6, %v1427_v8  ;;  %v5400_v15 = vcombine.high %v1430_v7, %v1434_v10  ;;  %v5402_v16 = vcombine.high %v1431_v11, %v1435_v12  ;;  %v1474_v6 = vld [vmem:[%s7768_s3 + $0xd20] sm:$0xff]  ;;  %v1471_v8 = vld [vmem:[%s7768_s3 + $0xd08] sm:$0xff] }
 0x188   :  { %4273 = vmatpush1.bf16.msra.mxu0 %v5351_v30  ;;  %4445 = vmatpush1.bf16.msra.mxu1 %v5353_v31  ;;  %v1443_v30 = vld [vmem:[%s7768_s3 + $0xc28] sm:$0xff]  ;;  %v5399_v31 = vcombine.low %v1430_v7, %v1434_v10  ;;  %v1478_v10 = vld [vmem:[%s7768_s3 + $0xd40] sm:$0xff] }
 0x189   :  { %4274 = vmatprep.subr.bf16.mxu0 %v5360_v32  ;;  %4446 = vmatprep.subr.bf16.mxu1 %v5362_v33  ;;  %v5401_v32 = vcombine.low %v1431_v11, %v1435_v12  ;;  %v5408_v33 = vcombine.high %v1438_v17, %v1442_v25  ;;  %v5410_v36 = vcombine.high %v1439_v28, %v1443_v30  ;;  %v1482_v11 = vld [vmem:[%s7768_s3 + $0xd60] sm:$0xff]  ;;  %v1479_v12 = vld [vmem:[%s7768_s3 + $0xd48] sm:$0xff] }
 0x18c   :  { %4275 = vmatpush1.bf16.msra.mxu0 %v5359_v40  ;;  %4447 = vmatpush1.bf16.msra.mxu1 %v5361_v41  ;;  %v1451_v40 = vld [vmem:[%s7768_s3 + $0xc68] sm:$0xff]  ;;  %v5407_v41 = vcombine.low %v1438_v17, %v1442_v25  ;;  %v1486_v25 = vld [vmem:[%s7768_s3 + $0xd80] sm:$0xff] }
 0x18d   :  { %4276 = vmatprep.subr.bf16.mxu0 %v5368_v45  ;;  %4448 = vmatprep.subr.bf16.mxu1 %v5370_v46  ;;  %v5409_v45 = vcombine.low %v1439_v28, %v1443_v30  ;;  %v5416_v46 = vcombine.high %v1446_v37, %v1450_v38  ;;  %v5418_v47 = vcombine.high %v1447_v0, %v1451_v40  ;;  %v1490_v28 = vld [vmem:[%s7768_s3 + $0xda0] sm:$0xff]  ;;  %v1487_v30 = vld [vmem:[%s7768_s3 + $0xd88] sm:$0xff] }
 0x190   :  { %4277 = vmatpush1.bf16.msra.mxu0 %v5367_v52  ;;  %4449 = vmatpush1.bf16.msra.mxu1 %v5369_v53  ;;  %v1459_v52 = vld [vmem:[%s7768_s3 + $0xca8] sm:$0xff]  ;;  %v5415_v53 = vcombine.low %v1446_v37, %v1450_v38  ;;  %v1494_v38 = vld [vmem:[%s7768_s3 + $0xdc0] sm:$0xff] }
 0x191   :  { %4278 = vmatprep.subr.bf16.mxu0 %v5376_v55  ;;  %4450 = vmatprep.subr.bf16.mxu1 %v5378_v23  ;;  %v5417_v55 = vcombine.low %v1447_v0, %v1451_v40  ;;  %v5424_v23 = vcombine.high %v1454_v48, %v1458_v49  ;;  %v5426_v56 = vcombine.high %v1455_v51, %v1459_v52  ;;  %v1498_v0 = vld [vmem:[%s7768_s3 + $0xde0] sm:$0xff]  ;;  %v1495_v40 = vld [vmem:[%s7768_s3 + $0xdc8] sm:$0xff] }
 0x194   :  { %4279 = vmatpush1.bf16.msra.mxu0 %v5375_v60  ;;  %4451 = vmatpush1.bf16.msra.mxu1 %v5377_v61  ;;  %v1467_v60 = vld [vmem:[%s7768_s3 + $0xce8] sm:$0xff]  ;;  %v5423_v61 = vcombine.low %v1454_v48, %v1458_v49  ;;  %v1502_v49 = vld [vmem:[%s7768_s3 + $0xe00] sm:$0xff] }
 0x195   :  { %4280 = vmatprep.subr.bf16.mxu0 %v5384_v62  ;;  %4452 = vmatprep.subr.bf16.mxu1 %v5386_v1  ;;  %v5425_v62 = vcombine.low %v1455_v51, %v1459_v52  ;;  %v5432_v1 = vcombine.high %v1462_v57, %v1466_v58  ;;  %v5434_v2 = vcombine.high %v1463_v59, %v1467_v60  ;;  %v1506_v51 = vld [vmem:[%s7768_s3 + $0xe20] sm:$0xff]  ;;  %v1503_v52 = vld [vmem:[%s7768_s3 + $0xe08] sm:$0xff] }
 0x198   :  { %4281 = vmatpush1.bf16.msra.mxu0 %v5383_v9  ;;  %4453 = vmatpush1.bf16.msra.mxu1 %v5385_v63  ;;  %v1475_v9 = vld [vmem:[%s7768_s3 + $0xd28] sm:$0xff]  ;;  %v5431_v63 = vcombine.low %v1462_v57, %v1466_v58  ;;  %v1510_v58 = vld [vmem:[%s7768_s3 + $0xe40] sm:$0xff] }
 0x199   :  { %4282 = vmatprep.subr.bf16.mxu0 %v5392_v4  ;;  %4454 = vmatprep.subr.bf16.mxu1 %v5394_v5  ;;  %v5433_v4 = vcombine.low %v1463_v59, %v1467_v60  ;;  %v5440_v5 = vcombine.high %v1470_v3, %v1474_v6  ;;  %v5442_v7 = vcombine.high %v1471_v8, %v1475_v9  ;;  %v1514_v59 = vld [vmem:[%s7768_s3 + $0xe60] sm:$0xff]  ;;  %v1511_v60 = vld [vmem:[%s7768_s3 + $0xe48] sm:$0xff] }
 0x19c   :  { %4283 = vmatpush1.bf16.msra.mxu0 %v5391_v13  ;;  %4455 = vmatpush1.bf16.msra.mxu1 %v5393_v14  ;;  %v1483_v13 = vld [vmem:[%s7768_s3 + $0xd68] sm:$0xff]  ;;  %v5439_v14 = vcombine.low %v1470_v3, %v1474_v6  ;;  %v1518_v6 = vld [vmem:[%s7768_s3 + $0xe80] sm:$0xff] }
 0x19d   :  { %4284 = vmatprep.subr.bf16.mxu0 %v5400_v15  ;;  %4456 = vmatprep.subr.bf16.mxu1 %v5402_v16  ;;  %v5441_v15 = vcombine.low %v1471_v8, %v1475_v9  ;;  %v5448_v16 = vcombine.high %v1478_v10, %v1482_v11  ;;  %v5450_v17 = vcombine.high %v1479_v12, %v1483_v13  ;;  %v1522_v8 = vld [vmem:[%s7768_s3 + $0xea0] sm:$0xff]  ;;  %v1519_v9 = vld [vmem:[%s7768_s3 + $0xe88] sm:$0xff] }
 0x1a0   :  { %4285 = vmatpush1.bf16.msra.mxu0 %v5399_v31  ;;  %4457 = vmatpush1.bf16.msra.mxu1 %v5401_v32  ;;  %v1491_v31 = vld [vmem:[%s7768_s3 + $0xda8] sm:$0xff]  ;;  %v5447_v32 = vcombine.low %v1478_v10, %v1482_v11  ;;  %v1526_v11 = vld [vmem:[%s7768_s3 + $0xec0] sm:$0xff] }
 0x1a1   :  { %4297 = vmatprep.subr.bf16.mxu0 %v5408_v33  ;;  %4469 = vmatprep.subr.bf16.mxu1 %v5410_v36  ;;  %v5449_v33 = vcombine.low %v1479_v12, %v1483_v13  ;;  %v5456_v36 = vcombine.high %v1486_v25, %v1490_v28  ;;  %v5458_v37 = vcombine.high %v1487_v30, %v1491_v31  ;;  %v1530_v12 = vld [vmem:[%s7768_s3 + $0xee0] sm:$0xff]  ;;  %v1527_v13 = vld [vmem:[%s7768_s3 + $0xec8] sm:$0xff] }
 0x1a3   :  { %4287 = vmatmul.mubr.bf16.vlgmr.msra.gmra.mrb[8].mxu0 %v6511_v22  ;;  %4459 = vmatmul.mubr.bf16.vlgmr.msra.gmra.mrb[8].mxu1 %v6511_v22 }
 0x1a4   :  { %4298 = vmatpush1.bf16.msra.mxu0 %v5407_v41  ;;  %4470 = vmatpush1.bf16.msra.mxu1 %v5409_v45  ;;  %v1499_v41 = vld [vmem:[%s7768_s3 + $0xde8] sm:$0xff]  ;;  %v5455_v45 = vcombine.low %v1486_v25, %v1490_v28  ;;  %v1534_v28 = vld [vmem:[%s7768_s3 + $0xf00] sm:$0xff] }
 0x1a5   :  { %4299 = vmatprep.subr.bf16.mxu0 %v5416_v46  ;;  %4471 = vmatprep.subr.bf16.mxu1 %v5418_v47  ;;  %v5457_v46 = vcombine.low %v1487_v30, %v1491_v31  ;;  %v5464_v47 = vcombine.high %v1494_v38, %v1498_v0  ;;  %v5466_v48 = vcombine.high %v1495_v40, %v1499_v41  ;;  %v1538_v30 = vld [vmem:[%s7768_s3 + $0xf20] sm:$0xff]  ;;  %v1535_v31 = vld [vmem:[%s7768_s3 + $0xf08] sm:$0xff] }
 0x1a6   :  { %4329 = vmatprep.mubr.bf16.mxu0 %v6563_v27  ;;  %4501 = vmatprep.mubr.bf16.mxu1 %v6563_v27 }
 0x1a8   :  { %4300 = vmatpush1.bf16.msra.mxu0 %v5415_v53  ;;  %4472 = vmatpush1.bf16.msra.mxu1 %v5417_v55  ;;  %v1507_v53 = vld [vmem:[%s7768_s3 + $0xe28] sm:$0xff]  ;;  %v5463_v55 = vcombine.low %v1494_v38, %v1498_v0  ;;  %v1542_v0 = vld [vmem:[%s7768_s3 + $0xf40] sm:$0xff] }
 0x1a9   :  { %4301 = vmatprep.subr.bf16.mxu0 %v5424_v23  ;;  %4473 = vmatprep.subr.bf16.mxu1 %v5426_v56  ;;  %v5465_v23 = vcombine.low %v1495_v40, %v1499_v41  ;;  %v5472_v56 = vcombine.high %v1502_v49, %v1506_v51  ;;  %v5474_v57 = vcombine.high %v1503_v52, %v1507_v53  ;;  %v1546_v40 = vld [vmem:[%s7768_s3 + $0xf60] sm:$0xff]  ;;  %v1543_v41 = vld [vmem:[%s7768_s3 + $0xf48] sm:$0xff] }
 0x1ac   :  { %4302 = vmatpush1.bf16.msra.mxu0 %v5423_v61  ;;  %4474 = vmatpush1.bf16.msra.mxu1 %v5425_v62  ;;  %v1515_v61 = vld [vmem:[%s7768_s3 + $0xe68] sm:$0xff]  ;;  %v5471_v62 = vcombine.low %v1502_v49, %v1506_v51  ;;  %v1550_v51 = vld [vmem:[%s7768_s3 + $0xf80] sm:$0xff] }
 0x1ad   :  { %4303 = vmatprep.subr.bf16.mxu0 %v5432_v1  ;;  %4475 = vmatprep.subr.bf16.mxu1 %v5434_v2  ;;  %v5473_v1 = vcombine.low %v1503_v52, %v1507_v53  ;;  %v5480_v2 = vcombine.high %v1510_v58, %v1514_v59  ;;  %v5482_v3 = vcombine.high %v1511_v60, %v1515_v61  ;;  %v1554_v52 = vld [vmem:[%s7768_s3 + $0xfa0] sm:$0xff]  ;;  %v1551_v53 = vld [vmem:[%s7768_s3 + $0xf88] sm:$0xff] }
 0x1b0   :  { %4304 = vmatpush1.bf16.msra.mxu0 %v5431_v63  ;;  %4476 = vmatpush1.bf16.msra.mxu1 %v5433_v4  ;;  %v1523_v63 = vld [vmem:[%s7768_s3 + $0xea8] sm:$0xff]  ;;  %v5479_v4 = vcombine.low %v1510_v58, %v1514_v59  ;;  %v1558_v59 = vld [vmem:[%s7768_s3 + $0xfc0] sm:$0xff] }
 0x1b1   :  { %4305 = vmatprep.subr.bf16.mxu0 %v5440_v5  ;;  %4477 = vmatprep.subr.bf16.mxu1 %v5442_v7  ;;  %v5481_v5 = vcombine.low %v1511_v60, %v1515_v61  ;;  %v5488_v7 = vcombine.high %v1518_v6, %v1522_v8  ;;  %v5490_v10 = vcombine.high %v1519_v9, %v1523_v63  ;;  %v1562_v60 = vld [vmem:[%s7768_s3 + $0xfe0] sm:$0xff]  ;;  %v1559_v61 = vld [vmem:[%s7768_s3 + $0xfc8] sm:$0xff] }
 0x1b4   :  { %4306 = vmatpush1.bf16.msra.mxu0 %v5439_v14  ;;  %4478 = vmatpush1.bf16.msra.mxu1 %v5441_v15  ;;  %v1531_v14 = vld [vmem:[%s7768_s3 + $0xee8] sm:$0xff]  ;;  %v5487_v15 = vcombine.low %v1518_v6, %v1522_v8  ;;  %v1056_v8 = vld [vmem:[%s7768_s3 + $0x10] sm:$0xff] }
 0x1b5   :  { %4307 = vmatprep.subr.bf16.mxu0 %v5448_v16  ;;  %4479 = vmatprep.subr.bf16.mxu1 %v5450_v17  ;;  %v5489_v16 = vcombine.low %v1519_v9, %v1523_v63  ;;  %v5496_v17 = vcombine.high %v1526_v11, %v1530_v12  ;;  %v5498_v25 = vcombine.high %v1527_v13, %v1531_v14  ;;  %v1060_v9 = vld [vmem:[%s7768_s3 + $0x30] sm:$0xff]  ;;  %v1057_v63 = vld [vmem:[%s7768_s3 + $0x18] sm:$0xff] }
 0x1b8   :  { %4308 = vmatpush1.bf16.msra.mxu0 %v5447_v32  ;;  %4480 = vmatpush1.bf16.msra.mxu1 %v5449_v33  ;;  %v1539_v32 = vld [vmem:[%s7768_s3 + $0xf28] sm:$0xff]  ;;  %v5495_v33 = vcombine.low %v1526_v11, %v1530_v12  ;;  %v1064_v12 = vld [vmem:[%s7768_s3 + $0x50] sm:$0xff] }
 0x1b9   :  { %4309 = vmatprep.subr.bf16.mxu0 %v5456_v36  ;;  %4481 = vmatprep.subr.bf16.mxu1 %v5458_v37  ;;  %v5497_v36 = vcombine.low %v1527_v13, %v1531_v14  ;;  %v5504_v37 = vcombine.high %v1534_v28, %v1538_v30  ;;  %v5506_v38 = vcombine.high %v1535_v31, %v1539_v32  ;;  %v1068_v13 = vld [vmem:[%s7768_s3 + $0x70] sm:$0xff]  ;;  %v1065_v14 = vld [vmem:[%s7768_s3 + $0x58] sm:$0xff] }
 0x1bc   :  { %4310 = vmatpush1.bf16.msra.mxu0 %v5455_v45  ;;  %4482 = vmatpush1.bf16.msra.mxu1 %v5457_v46  ;;  %v1547_v45 = vld [vmem:[%s7768_s3 + $0xf68] sm:$0xff]  ;;  %v5503_v46 = vcombine.low %v1534_v28, %v1538_v30  ;;  %v1072_v30 = vld [vmem:[%s7768_s3 + $0x90] sm:$0xff] }
 0x1bd   :  { %4311 = vmatprep.subr.bf16.mxu0 %v5464_v47  ;;  %4483 = vmatprep.subr.bf16.mxu1 %v5466_v48  ;;  %v5505_v47 = vcombine.low %v1535_v31, %v1539_v32  ;;  %v5512_v48 = vcombine.high %v1542_v0, %v1546_v40  ;;  %v5514_v49 = vcombine.high %v1543_v41, %v1547_v45  ;;  %v1076_v31 = vld [vmem:[%s7768_s3 + $0xb0] sm:$0xff]  ;;  %v1073_v32 = vld [vmem:[%s7768_s3 + $0x98] sm:$0xff] }
 0x1c0   :  { %4312 = vmatpush1.bf16.msra.mxu0 %v5463_v55  ;;  %4484 = vmatpush1.bf16.msra.mxu1 %v5465_v23  ;;  %v1555_v55 = vld [vmem:[%s7768_s3 + $0xfa8] sm:$0xff]  ;;  %v5511_v23 = vcombine.low %v1542_v0, %v1546_v40  ;;  %v1080_v40 = vld [vmem:[%s7768_s3 + $0xd0] sm:$0xff] }
 0x1c1   :  { %4313 = vmatprep.subr.bf16.mxu0 %v5472_v56  ;;  %4485 = vmatprep.subr.bf16.mxu1 %v5474_v57  ;;  %v5513_v56 = vcombine.low %v1543_v41, %v1547_v45  ;;  %v5520_v57 = vcombine.high %v1550_v51, %v1554_v52  ;;  %v5522_v58 = vcombine.high %v1551_v53, %v1555_v55  ;;  %v1084_v41 = vld [vmem:[%s7768_s3 + $0xf0] sm:$0xff]  ;;  %v1081_v45 = vld [vmem:[%s7768_s3 + $0xd8] sm:$0xff] }
 0x1c4   :  { %4314 = vmatpush1.bf16.msra.mxu0 %v5471_v62  ;;  %4486 = vmatpush1.bf16.msra.mxu1 %v5473_v1  ;;  %v1563_v62 = vld [vmem:[%s7768_s3 + $0xfe8] sm:$0xff]  ;;  %v5519_v1 = vcombine.low %v1550_v51, %v1554_v52  ;;  %v1088_v51 = vld [vmem:[%s7768_s3 + $0x110] sm:$0xff] }
 0x1c5   :  { %4315 = vmatprep.subr.bf16.mxu0 %v5480_v2  ;;  %4487 = vmatprep.subr.bf16.mxu1 %v5482_v3  ;;  %v5521_v2 = vcombine.low %v1551_v53, %v1555_v55  ;;  %v5528_v3 = vcombine.high %v1558_v59, %v1562_v60  ;;  %v5530_v6 = vcombine.high %v1559_v61, %v1563_v62  ;;  %v1092_v52 = vld [vmem:[%s7768_s3 + $0x130] sm:$0xff]  ;;  %v1089_v53 = vld [vmem:[%s7768_s3 + $0x118] sm:$0xff] }
 0x1c6   :  { %v1093_v55 = vld [vmem:[%s7768_s3 + $0x138] sm:$0xff] }
 0x1c8   :  { %4316 = vmatpush1.bf16.msra.mxu0 %v5479_v4  ;;  %4488 = vmatpush1.bf16.msra.mxu1 %v5481_v5  ;;  %v1061_v4 = vld [vmem:[%s7768_s3 + $0x38] sm:$0xff]  ;;  %v5527_v5 = vcombine.low %v1558_v59, %v1562_v60  ;;  %v1096_v59 = vld [vmem:[%s7768_s3 + $0x150] sm:$0xff] }
 0x1c9   :  { %4317 = vmatprep.subr.bf16.mxu0 %v5488_v7  ;;  %4489 = vmatprep.subr.bf16.mxu1 %v5490_v10  ;;  %v5529_v7 = vcombine.low %v1559_v61, %v1563_v62  ;;  %v5028_v10 = vcombine.high %v1056_v8, %v1060_v9  ;;  %v5030_v11 = vcombine.high %v1057_v63, %v1061_v4  ;;  %v1100_v60 = vld [vmem:[%s7768_s3 + $0x170] sm:$0xff]  ;;  %v1097_v61 = vld [vmem:[%s7768_s3 + $0x158] sm:$0xff] }
 0x1ca   :  { %v1101_v62 = vld [vmem:[%s7768_s3 + $0x178] sm:$0xff] }
 0x1cc   :  { %4318 = vmatpush1.bf16.msra.mxu0 %v5487_v15  ;;  %4490 = vmatpush1.bf16.msra.mxu1 %v5489_v16  ;;  %v1069_v15 = vld [vmem:[%s7768_s3 + $0x78] sm:$0xff]  ;;  %v5027_v16 = vcombine.low %v1056_v8, %v1060_v9  ;;  %v1104_v8 = vld [vmem:[%s7768_s3 + $0x190] sm:$0xff] }
 0x1cd   :  { %4319 = vmatprep.subr.bf16.mxu0 %v5496_v17  ;;  %4491 = vmatprep.subr.bf16.mxu1 %v5498_v25  ;;  %v5029_v17 = vcombine.low %v1057_v63, %v1061_v4  ;;  %v5036_v25 = vcombine.high %v1064_v12, %v1068_v13  ;;  %v5038_v28 = vcombine.high %v1065_v14, %v1069_v15  ;;  %v1108_v9 = vld [vmem:[%s7768_s3 + $0x1b0] sm:$0xff]  ;;  %v1105_v63 = vld [vmem:[%s7768_s3 + $0x198] sm:$0xff] }
 0x1ce   :  { %v1109_v4 = vld [vmem:[%s7768_s3 + $0x1b8] sm:$0xff] }
 0x1d0   :  { %4320 = vmatpush1.bf16.msra.mxu0 %v5495_v33  ;;  %4492 = vmatpush1.bf16.msra.mxu1 %v5497_v36  ;;  %v1077_v33 = vld [vmem:[%s7768_s3 + $0xb8] sm:$0xff]  ;;  %v5035_v36 = vcombine.low %v1064_v12, %v1068_v13  ;;  %v1112_v12 = vld [vmem:[%s7768_s3 + $0x1d0] sm:$0xff] }
 0x1d1   :  { %4321 = vmatprep.subr.bf16.mxu0 %v5504_v37  ;;  %4493 = vmatprep.subr.bf16.mxu1 %v5506_v38  ;;  %v5037_v37 = vcombine.low %v1065_v14, %v1069_v15  ;;  %v5044_v38 = vcombine.high %v1072_v30, %v1076_v31  ;;  %v5046_v0 = vcombine.high %v1073_v32, %v1077_v33  ;;  %v1116_v13 = vld [vmem:[%s7768_s3 + $0x1f0] sm:$0xff]  ;;  %v1113_v14 = vld [vmem:[%s7768_s3 + $0x1d8] sm:$0xff] }
 0x1d2   :  { %v1117_v15 = vld [vmem:[%s7768_s3 + $0x1f8] sm:$0xff] }
 0x1d4   :  { %4322 = vmatpush1.bf16.msra.mxu0 %v5503_v46  ;;  %4494 = vmatpush1.bf16.msra.mxu1 %v5505_v47  ;;  %v5043_v46 = vcombine.low %v1072_v30, %v1076_v31  ;;  %v5045_v47 = vcombine.low %v1073_v32, %v1077_v33  ;;  %v1120_v30 = vld [vmem:[%s7768_s3 + $0x210] sm:$0xff]  ;;  %v1121_v32 = vld [vmem:[%s7768_s3 + $0x218] sm:$0xff] }
 0x1d5   :  { %4323 = vmatprep.subr.bf16.mxu0 %v5512_v48  ;;  %4495 = vmatprep.subr.bf16.mxu1 %v5514_v49  ;;  %v5052_v48 = vcombine.high %v1080_v40, %v1084_v41  ;;  %v1124_v31 = vld [vmem:[%s7768_s3 + $0x230] sm:$0xff]  ;;  %v1125_v33 = vld [vmem:[%s7768_s3 + $0x238] sm:$0xff] }
 0x1d8   :  { %4324 = vmatpush1.bf16.msra.mxu0 %v5511_v23  ;;  %4496 = vmatpush1.bf16.msra.mxu1 %v5513_v56  ;;  %v5051_v23 = vcombine.low %v1080_v40, %v1084_v41  ;;  %v1128_v40 = vld [vmem:[%s7768_s3 + $0x250] sm:$0xff] }
 0x1d9   :  { %4325 = vmatprep.subr.bf16.mxu0 %v5520_v57  ;;  %4497 = vmatprep.subr.bf16.mxu1 %v5522_v58  ;;  %v5060_v57 = vcombine.high %v1088_v51, %v1092_v52  ;;  %v5062_v58 = vcombine.high %v1089_v53, %v1093_v55  ;;  %v1132_v41 = vld [vmem:[%s7768_s3 + $0x270] sm:$0xff] }
 0x1dc   :  { %4326 = vmatpush1.bf16.msra.mxu0 %v5519_v1  ;;  %4498 = vmatpush1.bf16.msra.mxu1 %v5521_v2  ;;  %v5059_v1 = vcombine.low %v1088_v51, %v1092_v52  ;;  %v5061_v2 = vcombine.low %v1089_v53, %v1093_v55  ;;  %v1136_v51 = vld [vmem:[%s7768_s3 + $0x290] sm:$0xff]  ;;  %v1137_v53 = vld [vmem:[%s7768_s3 + $0x298] sm:$0xff] }
 0x1dd   :  { %4327 = vmatprep.subr.bf16.mxu0 %v5528_v3  ;;  %4499 = vmatprep.subr.bf16.mxu1 %v5530_v6  ;;  %v5068_v3 = vcombine.high %v1096_v59, %v1100_v60  ;;  %v5070_v6 = vcombine.high %v1097_v61, %v1101_v62  ;;  %v1140_v52 = vld [vmem:[%s7768_s3 + $0x2b0] sm:$0xff]  ;;  %v1141_v55 = vld [vmem:[%s7768_s3 + $0x2b8] sm:$0xff] }
 0x1e0   :  { %4328 = vmatpush1.bf16.msra.mxu0 %v5527_v5  ;;  %4500 = vmatpush1.bf16.msra.mxu1 %v5529_v7  ;;  %v5067_v5 = vcombine.low %v1096_v59, %v1100_v60  ;;  %v5069_v7 = vcombine.low %v1097_v61, %v1101_v62  ;;  %v1144_v59 = vld [vmem:[%s7768_s3 + $0x2d0] sm:$0xff]  ;;  %v1145_v61 = vld [vmem:[%s7768_s3 + $0x2d8] sm:$0xff] }
 0x1e1   :  { %4512 = vmatprep.subr.bf16.mxu0 %v5028_v10  ;;  %4684 = vmatprep.subr.bf16.mxu1 %v5030_v11  ;;  %v5076_v10 = vcombine.high %v1104_v8, %v1108_v9  ;;  %v5078_v11 = vcombine.high %v1105_v63, %v1109_v4  ;;  %v1148_v60 = vld [vmem:[%s7768_s3 + $0x2f0] sm:$0xff]  ;;  %v1149_v62 = vld [vmem:[%s7768_s3 + $0x2f8] sm:$0xff] }
 0x1e3   :  { %4330 = vmatmul.mubr.bf16.vlgmr.msra.gmra.mrb[8].mxu0 %v6561_v26  ;;  %4502 = vmatmul.mubr.bf16.vlgmr.msra.gmra.mrb[8].mxu1 %v6561_v26 }
 0x1e4   :  { %4513 = vmatpush1.bf16.msra.mxu0 %v5027_v16  ;;  %4544 = vmatprep.mubr.bf16.mxu0 %v6285_v44  ;;  %v5075_v16 = vcombine.low %v1104_v8, %v1108_v9  ;;  %v1152_v8 = vld [vmem:[%s7768_s3 + $0x310] sm:$0xff] }
 0x1e5   :  { %4685 = vmatpush1.bf16.msra.mxu1 %v5029_v17  ;;  %4716 = vmatprep.mubr.bf16.mxu1 %v6285_v44  ;;  %v1085_v44 = vld [vmem:[%s7768_s3 + $0xf8] sm:$0xff]  ;;  %v5077_v17 = vcombine.low %v1105_v63, %v1109_v4  ;;  %v1156_v9 = vld [vmem:[%s7768_s3 + $0x330] sm:$0xff] }
 0x1e6   :  { %4514 = vmatprep.subr.bf16.mxu0 %v5036_v25  ;;  %4686 = vmatprep.subr.bf16.mxu1 %v5038_v28  ;;  %v5054_v49 = vcombine.high %v1081_v45, %v1085_v44  ;;  %v5053_v56 = vcombine.low %v1081_v45, %v1085_v44  ;;  %v5084_v25 = vcombine.high %v1112_v12, %v1116_v13  ;;  %v1129_v45 = vld [vmem:[%s7768_s3 + $0x258] sm:$0xff] }
 0x1e7   :  { %v5086_v28 = vcombine.high %v1113_v14, %v1117_v15  ;;  %v1133_v44 = vld [vmem:[%s7768_s3 + $0x278] sm:$0xff] }
 0x1e8   :  { %4515 = vmatpush1.bf16.msra.mxu0 %v5035_v36  ;;  %v5083_v36 = vcombine.low %v1112_v12, %v1116_v13  ;;  %v1153_v63 = vld [vmem:[%s7768_s3 + $0x318] sm:$0xff]  ;;  %v1160_v12 = vld [vmem:[%s7768_s3 + $0x350] sm:$0xff] }
 0x1e9   :  { %4687 = vmatpush1.bf16.msra.mxu1 %v5037_v37  ;;  %4516 = vmatprep.subr.bf16.mxu0 %v5044_v38  ;;  %v5085_v37 = vcombine.low %v1113_v14, %v1117_v15  ;;  %v5092_v38 = vcombine.high %v1120_v30, %v1124_v31  ;;  %v1157_v4 = vld [vmem:[%s7768_s3 + $0x338] sm:$0xff]  ;;  %v1164_v13 = vld [vmem:[%s7768_s3 + $0x370] sm:$0xff] }
 0x1ea   :  { %4688 = vmatprep.subr.bf16.mxu1 %v5046_v0  ;;  %v5094_v0 = vcombine.high %v1121_v32, %v1125_v33  ;;  %v1161_v14 = vld [vmem:[%s7768_s3 + $0x358] sm:$0xff] }
 0x1eb   :  { %v1165_v15 = vld [vmem:[%s7768_s3 + $0x378] sm:$0xff] }
 0x1ec   :  { %4517 = vmatpush1.bf16.msra.mxu0 %v5043_v46  ;;  %v5091_v46 = vcombine.low %v1120_v30, %v1124_v31  ;;  %v1168_v30 = vld [vmem:[%s7768_s3 + $0x390] sm:$0xff] }
 0x1ed   :  { %4689 = vmatpush1.bf16.msra.mxu1 %v5045_v47  ;;  %4518 = vmatprep.subr.bf16.mxu0 %v5052_v48  ;;  %v5093_v47 = vcombine.low %v1121_v32, %v1125_v33  ;;  %v5100_v48 = vcombine.high %v1128_v40, %v1132_v41  ;;  %v1172_v31 = vld [vmem:[%s7768_s3 + $0x3b0] sm:$0xff]  ;;  %v1169_v32 = vld [vmem:[%s7768_s3 + $0x398] sm:$0xff] }
 0x1ee   :  { %4690 = vmatprep.subr.bf16.mxu1 %v5054_v49  ;;  %v5102_v49 = vcombine.high %v1129_v45, %v1133_v44  ;;  %v1173_v33 = vld [vmem:[%s7768_s3 + $0x3b8] sm:$0xff] }
 0x1f0   :  { %4519 = vmatpush1.bf16.msra.mxu0 %v5051_v23  ;;  %v5099_v23 = vcombine.low %v1128_v40, %v1132_v41  ;;  %v1176_v40 = vld [vmem:[%s7768_s3 + $0x3d0] sm:$0xff] }
 0x1f1   :  { %4691 = vmatpush1.bf16.msra.mxu1 %v5053_v56  ;;  %4520 = vmatprep.subr.bf16.mxu0 %v5060_v57  ;;  %v5101_v56 = vcombine.low %v1129_v45, %v1133_v44  ;;  %v5108_v57 = vcombine.high %v1136_v51, %v1140_v52  ;;  %v1180_v41 = vld [vmem:[%s7768_s3 + $0x3f0] sm:$0xff]  ;;  %v1177_v45 = vld [vmem:[%s7768_s3 + $0x3d8] sm:$0xff] }
 0x1f2   :  { %4692 = vmatprep.subr.bf16.mxu1 %v5062_v58  ;;  %v5110_v58 = vcombine.high %v1137_v53, %v1141_v55  ;;  %v1181_v44 = vld [vmem:[%s7768_s3 + $0x3f8] sm:$0xff] }
 0x1f4   :  { %4521 = vmatpush1.bf16.msra.mxu0 %v5059_v1  ;;  %v5107_v1 = vcombine.low %v1136_v51, %v1140_v52  ;;  %v1184_v51 = vld [vmem:[%s7768_s3 + $0x410] sm:$0xff] }
 0x1f5   :  { %4693 = vmatpush1.bf16.msra.mxu1 %v5061_v2  ;;  %4522 = vmatprep.subr.bf16.mxu0 %v5068_v3  ;;  %v5109_v2 = vcombine.low %v1137_v53, %v1141_v55  ;;  %v5116_v3 = vcombine.high %v1144_v59, %v1148_v60  ;;  %v1188_v52 = vld [vmem:[%s7768_s3 + $0x430] sm:$0xff]  ;;  %v1185_v53 = vld [vmem:[%s7768_s3 + $0x418] sm:$0xff] }
 0x1f6   :  { %4694 = vmatprep.subr.bf16.mxu1 %v5070_v6  ;;  %v5118_v6 = vcombine.high %v1145_v61, %v1149_v62  ;;  %v1189_v55 = vld [vmem:[%s7768_s3 + $0x438] sm:$0xff] }
 0x1f8   :  { %4523 = vmatpush1.bf16.msra.mxu0 %v5067_v5  ;;  %v5115_v5 = vcombine.low %v1144_v59, %v1148_v60  ;;  %v1192_v59 = vld [vmem:[%s7768_s3 + $0x450] sm:$0xff] }
 0x1f9   :  { %4695 = vmatpush1.bf16.msra.mxu1 %v5069_v7  ;;  %4524 = vmatprep.subr.bf16.mxu0 %v5076_v10  ;;  %v5117_v7 = vcombine.low %v1145_v61, %v1149_v62  ;;  %v5124_v10 = vcombine.high %v1152_v8, %v1156_v9  ;;  %v1196_v60 = vld [vmem:[%s7768_s3 + $0x470] sm:$0xff]  ;;  %v5155_v61 = vcombine.low %v1184_v51, %v1188_v52  ;;  %v1193_v62 = vld [vmem:[%s7768_s3 + $0x458] sm:$0xff] }
 0x1fa   :  { %4696 = vmatprep.subr.bf16.mxu1 %v5078_v11  ;;  %v5126_v11 = vcombine.high %v1153_v63, %v1157_v4 }
 0x1fc   :  { %4525 = vmatpush1.bf16.msra.mxu0 %v5075_v16  ;;  %v5123_v16 = vcombine.low %v1152_v8, %v1156_v9  ;;  %v1204_v8 = vld [vmem:[%s7768_s3 + $0x4b0] sm:$0xff] }
 0x1fd   :  { %4697 = vmatpush1.bf16.msra.mxu1 %v5077_v17  ;;  %4526 = vmatprep.subr.bf16.mxu0 %v5084_v25  ;;  %v5125_v17 = vcombine.low %v1153_v63, %v1157_v4  ;;  %v5132_v25 = vcombine.high %v1160_v12, %v1164_v13  ;;  %v1201_v63 = vld [vmem:[%s7768_s3 + $0x498] sm:$0xff] }
 0x1fe   :  { %4698 = vmatprep.subr.bf16.mxu1 %v5086_v28  ;;  %v5134_v28 = vcombine.high %v1161_v14, %v1165_v15  ;;  %v1205_v4 = vld [vmem:[%s7768_s3 + $0x4b8] sm:$0xff] }
 0x200   :  { %4527 = vmatpush1.bf16.msra.mxu0 %v5083_v36  ;;  %v5131_v36 = vcombine.low %v1160_v12, %v1164_v13  ;;  %v1208_v12 = vld [vmem:[%s7768_s3 + $0x4d0] sm:$0xff] }
 0x201   :  { %4699 = vmatpush1.bf16.msra.mxu1 %v5085_v37  ;;  %4528 = vmatprep.subr.bf16.mxu0 %v5092_v38  ;;  %v5133_v37 = vcombine.low %v1161_v14, %v1165_v15  ;;  %v5140_v38 = vcombine.high %v1168_v30, %v1172_v31  ;;  %v1212_v13 = vld [vmem:[%s7768_s3 + $0x4f0] sm:$0xff]  ;;  %v1213_v14 = vld [vmem:[%s7768_s3 + $0x4f8] sm:$0xff]  ;;  %v5173_v15 = vcombine.low %v1201_v63, %v1205_v4 }
 0x202   :  { %4700 = vmatprep.subr.bf16.mxu1 %v5094_v0  ;;  %v5142_v0 = vcombine.high %v1169_v32, %v1173_v33 }
 0x204   :  { %4529 = vmatpush1.bf16.msra.mxu0 %v5091_v46  ;;  %v5139_v46 = vcombine.low %v1168_v30, %v1172_v31  ;;  %v1217_v30 = vld [vmem:[%s7768_s3 + $0x518] sm:$0xff] }
 0x205   :  { %4701 = vmatpush1.bf16.msra.mxu1 %v5093_v47  ;;  %4530 = vmatprep.subr.bf16.mxu0 %v5100_v48  ;;  %v5141_v47 = vcombine.low %v1169_v32, %v1173_v33  ;;  %v5148_v48 = vcombine.high %v1176_v40, %v1180_v41  ;;  %v1221_v31 = vld [vmem:[%s7768_s3 + $0x538] sm:$0xff]  ;;  %v5179_v32 = vcombine.low %v1208_v12, %v1212_v13 }
 0x206   :  { %4702 = vmatprep.subr.bf16.mxu1 %v5102_v49  ;;  %v5150_v49 = vcombine.high %v1177_v45, %v1181_v44 }
 0x208   :  { %4531 = vmatpush1.bf16.msra.mxu0 %v5099_v23  ;;  %v5147_v23 = vcombine.low %v1176_v40, %v1180_v41  ;;  %v1225_v40 = vld [vmem:[%s7768_s3 + $0x558] sm:$0xff] }
 0x209   :  { %4703 = vmatpush1.bf16.msra.mxu1 %v5101_v56  ;;  %4532 = vmatprep.subr.bf16.mxu0 %v5108_v57  ;;  %v5149_v56 = vcombine.low %v1177_v45, %v1181_v44  ;;  %v5156_v57 = vcombine.high %v1184_v51, %v1188_v52  ;;  %v1229_v41 = vld [vmem:[%s7768_s3 + $0x578] sm:$0xff]  ;;  %v5189_v44 = vcombine.low %v1217_v30, %v1221_v31 }
 0x20a   :  { %4704 = vmatprep.subr.bf16.mxu1 %v5110_v58  ;;  %v5158_v58 = vcombine.high %v1185_v53, %v1189_v55  ;;  %v1233_v51 = vld [vmem:[%s7768_s3 + $0x598] sm:$0xff] }
 0x20b   :  { %v1237_v52 = vld [vmem:[%s7768_s3 + $0x5b8] sm:$0xff] }
 0x20c   :  { %4533 = vmatpush1.bf16.msra.mxu0 %v5107_v1  ;;  %v1197_v1 = vld [vmem:[%s7768_s3 + $0x478] sm:$0xff] }
 0x20d   :  { %4705 = vmatpush1.bf16.msra.mxu1 %v5109_v2  ;;  %4534 = vmatprep.subr.bf16.mxu0 %v5116_v3  ;;  %v5157_v2 = vcombine.low %v1185_v53, %v1189_v55  ;;  %v5164_v3 = vcombine.high %v1192_v59, %v1196_v60  ;;  %v5166_v9 = vcombine.high %v1193_v62, %v1197_v1 }
 0x20e   :  { %4706 = vmatprep.subr.bf16.mxu1 %v5118_v6  ;;  %v1200_v6 = vld [vmem:[%s7768_s3 + $0x490] sm:$0xff]  ;;  %v5197_v55 = vcombine.low %v1225_v40, %v1229_v41 }
 0x210   :  { %4535 = vmatpush1.bf16.msra.mxu0 %v5115_v5  ;;  %v5163_v5 = vcombine.low %v1192_v59, %v1196_v60  ;;  %v1241_v59 = vld [vmem:[%s7768_s3 + $0x5d8] sm:$0xff] }
 0x211   :  { %4707 = vmatpush1.bf16.msra.mxu1 %v5117_v7  ;;  %4536 = vmatprep.subr.bf16.mxu0 %v5124_v10  ;;  %v5165_v7 = vcombine.low %v1193_v62, %v1197_v1  ;;  %v5172_v10 = vcombine.high %v1200_v6, %v1204_v8  ;;  %v1245_v60 = vld [vmem:[%s7768_s3 + $0x5f8] sm:$0xff]  ;;  %v5205_v62 = vcombine.low %v1233_v51, %v1237_v52 }
 0x212   :  { %4708 = vmatprep.subr.bf16.mxu1 %v5126_v11  ;;  %v5174_v11 = vcombine.high %v1201_v63, %v1205_v4  ;;  %v5213_v4 = vcombine.low %v1241_v59, %v1245_v60 }
 0x214   :  { %4537 = vmatpush1.bf16.msra.mxu0 %v5123_v16  ;;  %v5180_v16 = vcombine.high %v1208_v12, %v1212_v13  ;;  %v1257_v12 = vld [vmem:[%s7768_s3 + $0x658] sm:$0xff] }
 0x215   :  { %4709 = vmatpush1.bf16.msra.mxu1 %v5125_v17  ;;  %4538 = vmatprep.subr.bf16.mxu0 %v5132_v25  ;;  %v1216_v25 = vld [vmem:[%s7768_s3 + $0x510] sm:$0xff]  ;;  %v1261_v13 = vld [vmem:[%s7768_s3 + $0x678] sm:$0xff] }
 0x216   :  { %4710 = vmatprep.subr.bf16.mxu1 %v5134_v28  ;;  %v1220_v28 = vld [vmem:[%s7768_s3 + $0x530] sm:$0xff] }
 0x217   :  { %v5187_v45 = vcombine.low %v1216_v25, %v1220_v28 }
 0x218   :  { %4539 = vmatpush1.bf16.msra.mxu0 %v5131_v36  ;;  %v5188_v36 = vcombine.high %v1216_v25, %v1220_v28  ;;  %v1265_v25 = vld [vmem:[%s7768_s3 + $0x698] sm:$0xff] }
 0x219   :  { %4711 = vmatpush1.bf16.msra.mxu1 %v5133_v37  ;;  %4540 = vmatprep.subr.bf16.mxu0 %v5140_v38  ;;  %v5190_v37 = vcombine.high %v1217_v30, %v1221_v31  ;;  %v1224_v38 = vld [vmem:[%s7768_s3 + $0x550] sm:$0xff]  ;;  %v1269_v28 = vld [vmem:[%s7768_s3 + $0x6b8] sm:$0xff]  ;;  %v5229_v31 = vcombine.low %v1257_v12, %v1261_v13 }
 0x21a   :  { %4712 = vmatprep.subr.bf16.mxu1 %v5142_v0  ;;  %v1228_v0 = vld [vmem:[%s7768_s3 + $0x570] sm:$0xff] }
 0x21b   :  { %v5195_v53 = vcombine.low %v1224_v38, %v1228_v0 }
 0x21c   :  { %4541 = vmatpush1.bf16.msra.mxu0 %v5139_v46  ;;  %v5196_v46 = vcombine.high %v1224_v38, %v1228_v0  ;;  %v1273_v38 = vld [vmem:[%s7768_s3 + $0x6d8] sm:$0xff] }
 0x21d   :  { %4713 = vmatpush1.bf16.msra.mxu1 %v5141_v47  ;;  %4542 = vmatprep.subr.bf16.mxu0 %v5148_v48  ;;  %v5198_v47 = vcombine.high %v1225_v40, %v1229_v41  ;;  %v1232_v48 = vld [vmem:[%s7768_s3 + $0x590] sm:$0xff]  ;;  %v1277_v0 = vld [vmem:[%s7768_s3 + $0x6f8] sm:$0xff]  ;;  %v5237_v41 = vcombine.low %v1265_v25, %v1269_v28 }
 0x21e   :  { %4714 = vmatprep.subr.bf16.mxu1 %v5150_v49  ;;  %v1236_v49 = vld [vmem:[%s7768_s3 + $0x5b0] sm:$0xff] }
 0x220   :  { %4543 = vmatpush1.bf16.msra.mxu0 %v5147_v23  ;;  %v5204_v23 = vcombine.high %v1232_v48, %v1236_v49 }
 0x221   :  { %4715 = vmatpush1.bf16.msra.mxu1 %v5149_v56  ;;  %4555 = vmatprep.subr.bf16.mxu0 %v5156_v57  ;;  %v5206_v56 = vcombine.high %v1233_v51, %v1237_v52  ;;  %v1240_v57 = vld [vmem:[%s7768_s3 + $0x5d0] sm:$0xff]  ;;  %v5245_v52 = vcombine.low %v1273_v38, %v1277_v0 }
 0x222   :  { %4727 = vmatprep.subr.bf16.mxu1 %v5158_v58  ;;  %v1244_v58 = vld [vmem:[%s7768_s3 + $0x5f0] sm:$0xff] }
 0x223   :  { %4545 = vmatmul.mubr.bf16.vlgmr.msra.gmra.mrb[12].mxu0 %v6283_v43  ;;  %v5212_v1 = vcombine.high %v1240_v57, %v1244_v58  ;;  %v5211_v63 = vcombine.low %v1240_v57, %v1244_v58  ;;  %v1289_v57 = vld [vmem:[%s7768_s3 + $0x758] sm:$0xff] }
 0x224   :  { %4717 = vmatmul.mubr.bf16.vlgmr.msra.gmra.mrb[12].mxu1 %v6283_v43  ;;  %4556 = vmatpush1.bf16.msra.mxu0 %v5155_v61  ;;  %v1209_v43 = vld [vmem:[%s7768_s3 + $0x4d8] sm:$0xff]  ;;  %v5203_v61 = vcombine.low %v1232_v48, %v1236_v49 }
 0x225   :  { %4587 = vmatprep.mubr.bf16.mxu0 %v6341_v19  ;;  %4728 = vmatpush1.bf16.msra.mxu1 %v5157_v2  ;;  %v5182_v17 = vcombine.high %v1209_v43, %v1213_v14  ;;  %v5181_v33 = vcombine.low %v1209_v43, %v1213_v14  ;;  %v5214_v2 = vcombine.high %v1241_v59, %v1245_v60  ;;  %v1281_v48 = vld [vmem:[%s7768_s3 + $0x718] sm:$0xff] }
 0x226   :  { %4759 = vmatprep.mubr.bf16.mxu1 %v6341_v19  ;;  %4557 = vmatprep.subr.bf16.mxu0 %v5164_v3  ;;  %v5171_v19 = vcombine.low %v1200_v6, %v1204_v8  ;;  %v1248_v3 = vld [vmem:[%s7768_s3 + $0x610] sm:$0xff]  ;;  %v1249_v8 = vld [vmem:[%s7768_s3 + $0x618] sm:$0xff] }
 0x227   :  { %4729 = vmatprep.subr.bf16.mxu1 %v5166_v9  ;;  %v1252_v6 = vld [vmem:[%s7768_s3 + $0x630] sm:$0xff]  ;;  %v1253_v9 = vld [vmem:[%s7768_s3 + $0x638] sm:$0xff] }
 0x228   :  { %4558 = vmatpush1.bf16.msra.mxu0 %v5163_v5  ;;  %v5220_v5 = vcombine.high %v1248_v3, %v1252_v6  ;;  %v5219_v43 = vcombine.low %v1248_v3, %v1252_v6  ;;  %v5221_v14 = vcombine.low %v1249_v8, %v1253_v9  ;;  %v1285_v49 = vld [vmem:[%s7768_s3 + $0x738] sm:$0xff] }
 0x229   :  { %4730 = vmatpush1.bf16.msra.mxu1 %v5165_v7  ;;  %4559 = vmatprep.subr.bf16.mxu0 %v5172_v10  ;;  %v5222_v7 = vcombine.high %v1249_v8, %v1253_v9  ;;  %v1256_v10 = vld [vmem:[%s7768_s3 + $0x650] sm:$0xff]  ;;  %v1293_v58 = vld [vmem:[%s7768_s3 + $0x778] sm:$0xff]  ;;  %v5253_v60 = vcombine.low %v1281_v48, %v1285_v49 }
 0x22a   :  { %4731 = vmatprep.subr.bf16.mxu1 %v5174_v11  ;;  %v1260_v11 = vld [vmem:[%s7768_s3 + $0x670] sm:$0xff]  ;;  %v1297_v3 = vld [vmem:[%s7768_s3 + $0x798] sm:$0xff]  ;;  %v5261_v9 = vcombine.low %v1289_v57, %v1293_v58 }
 0x22b   :  { %v5227_v30 = vcombine.low %v1256_v10, %v1260_v11  ;;  %v1301_v6 = vld [vmem:[%s7768_s3 + $0x7b8] sm:$0xff] }
 0x22c   :  { %4560 = vmatpush1.bf16.msra.mxu0 %v5171_v19  ;;  %v5228_v19 = vcombine.high %v1256_v10, %v1260_v11  ;;  %v1305_v10 = vld [vmem:[%s7768_s3 + $0x7d8] sm:$0xff] }
 0x22d   :  { %4732 = vmatpush1.bf16.msra.mxu1 %v5173_v15  ;;  %4561 = vmatprep.subr.bf16.mxu0 %v5180_v16  ;;  %v5230_v15 = vcombine.high %v1257_v12, %v1261_v13  ;;  %v1264_v16 = vld [vmem:[%s7768_s3 + $0x690] sm:$0xff]  ;;  %v1309_v11 = vld [vmem:[%s7768_s3 + $0x7f8] sm:$0xff]  ;;  %v5269_v13 = vcombine.low %v1297_v3, %v1301_v6 }
 0x22e   :  { %4733 = vmatprep.subr.bf16.mxu1 %v5182_v17  ;;  %v1268_v17 = vld [vmem:[%s7768_s3 + $0x6b0] sm:$0xff] }
 0x22f   :  { %v5235_v40 = vcombine.low %v1264_v16, %v1268_v17 }
 0x230   :  { %4562 = vmatpush1.bf16.msra.mxu0 %v5179_v32  ;;  %v5236_v32 = vcombine.high %v1264_v16, %v1268_v17  ;;  %v1313_v16 = vld [vmem:[%s7768_s3 + $0x818] sm:$0xff] }
 0x231   :  { %4734 = vmatpush1.bf16.msra.mxu1 %v5181_v33  ;;  %4563 = vmatprep.subr.bf16.mxu0 %v5188_v36  ;;  %v5238_v33 = vcombine.high %v1265_v25, %v1269_v28  ;;  %v1272_v36 = vld [vmem:[%s7768_s3 + $0x6d0] sm:$0xff]  ;;  %v1317_v17 = vld [vmem:[%s7768_s3 + $0x838] sm:$0xff]  ;;  %v5277_v28 = vcombine.low %v1305_v10, %v1309_v11 }
 0x232   :  { %4735 = vmatprep.subr.bf16.mxu1 %v5190_v37  ;;  %v1276_v37 = vld [vmem:[%s7768_s3 + $0x6f0] sm:$0xff] }
 0x233   :  { %v5243_v51 = vcombine.low %v1272_v36, %v1276_v37 }
 0x234   :  { %4564 = vmatpush1.bf16.msra.mxu0 %v5187_v45  ;;  %v5244_v45 = vcombine.high %v1272_v36, %v1276_v37  ;;  %v1321_v37 = vld [vmem:[%s7768_s3 + $0x858] sm:$0xff] }
 0x235   :  { %4736 = vmatpush1.bf16.msra.mxu1 %v5189_v44  ;;  %4565 = vmatprep.subr.bf16.mxu0 %v5196_v46  ;;  %v5246_v44 = vcombine.high %v1273_v38, %v1277_v0  ;;  %v1280_v46 = vld [vmem:[%s7768_s3 + $0x710] sm:$0xff]  ;;  %v1325_v38 = vld [vmem:[%s7768_s3 + $0x878] sm:$0xff]  ;;  %v5285_v0 = vcombine.low %v1313_v16, %v1317_v17 }
 0x236   :  { %4737 = vmatprep.subr.bf16.mxu1 %v5198_v47  ;;  %v1284_v47 = vld [vmem:[%s7768_s3 + $0x730] sm:$0xff] }
 0x237   :  { %v5251_v59 = vcombine.low %v1280_v46, %v1284_v47 }
 0x238   :  { %4566 = vmatpush1.bf16.msra.mxu0 %v5195_v53  ;;  %v5252_v53 = vcombine.high %v1280_v46, %v1284_v47  ;;  %v1329_v46 = vld [vmem:[%s7768_s3 + $0x898] sm:$0xff] }
 0x239   :  { %4738 = vmatpush1.bf16.msra.mxu1 %v5197_v55  ;;  %4567 = vmatprep.subr.bf16.mxu0 %v5204_v23  ;;  %v5254_v55 = vcombine.high %v1281_v48, %v1285_v49  ;;  %v1288_v23 = vld [vmem:[%s7768_s3 + $0x750] sm:$0xff]  ;;  %v1333_v47 = vld [vmem:[%s7768_s3 + $0x8b8] sm:$0xff]  ;;  %v5293_v49 = vcombine.low %v1321_v37, %v1325_v38 }
 0x23a   :  { %4739 = vmatprep.subr.bf16.mxu1 %v5206_v56  ;;  %v1292_v56 = vld [vmem:[%s7768_s3 + $0x770] sm:$0xff] }
 0x23b   :  { %v5259_v8 = vcombine.low %v1288_v23, %v1292_v56 }
 0x23c   :  { %4568 = vmatpush1.bf16.msra.mxu0 %v5203_v61  ;;  %v5260_v61 = vcombine.high %v1288_v23, %v1292_v56  ;;  %v1341_v23 = vld [vmem:[%s7768_s3 + $0x8f8] sm:$0xff]  ;;  %v5301_v56 = vcombine.low %v1329_v46, %v1333_v47 }
 0x23d   :  { %4740 = vmatpush1.bf16.msra.mxu1 %v5205_v62  ;;  %4569 = vmatprep.subr.bf16.mxu0 %v5212_v1  ;;  %v5262_v62 = vcombine.high %v1289_v57, %v1293_v58  ;;  %v1296_v1 = vld [vmem:[%s7768_s3 + $0x790] sm:$0xff] }
 0x23e   :  { %4741 = vmatprep.subr.bf16.mxu1 %v5214_v2  ;;  %v1300_v2 = vld [vmem:[%s7768_s3 + $0x7b0] sm:$0xff] }
 0x23f   :  { %v5267_v12 = vcombine.low %v1296_v1, %v1300_v2 }
 0x240   :  { %4570 = vmatpush1.bf16.msra.mxu0 %v5211_v63  ;;  %v5268_v63 = vcombine.high %v1296_v1, %v1300_v2 }
 0x241   :  { %4742 = vmatpush1.bf16.msra.mxu1 %v5213_v4  ;;  %4571 = vmatprep.subr.bf16.mxu0 %v5220_v5  ;;  %v5270_v4 = vcombine.high %v1297_v3, %v1301_v6  ;;  %v1304_v5 = vld [vmem:[%s7768_s3 + $0x7d0] sm:$0xff] }
 0x242   :  { %4743 = vmatprep.subr.bf16.mxu1 %v5222_v7  ;;  %v1308_v7 = vld [vmem:[%s7768_s3 + $0x7f0] sm:$0xff] }
 0x243   :  { %v5275_v25 = vcombine.low %v1304_v5, %v1308_v7 }
 0x244   :  { %4572 = vmatpush1.bf16.msra.mxu0 %v5219_v43  ;;  %v5276_v43 = vcombine.high %v1304_v5, %v1308_v7 }
 0x245   :  { %4744 = vmatpush1.bf16.msra.mxu1 %v5221_v14  ;;  %4573 = vmatprep.subr.bf16.mxu0 %v5228_v19  ;;  %v5278_v14 = vcombine.high %v1305_v10, %v1309_v11  ;;  %v1312_v19 = vld [vmem:[%s7768_s3 + $0x810] sm:$0xff] }
 0x246   :  { %4745 = vmatprep.subr.bf16.mxu1 %v5230_v15  ;;  %v1316_v15 = vld [vmem:[%s7768_s3 + $0x830] sm:$0xff] }
 0x247   :  { %v5283_v36 = vcombine.low %v1312_v19, %v1316_v15 }
 0x248   :  { %4574 = vmatpush1.bf16.msra.mxu0 %v5227_v30  ;;  %v5284_v30 = vcombine.high %v1312_v19, %v1316_v15 }
 0x249   :  { %4746 = vmatpush1.bf16.msra.mxu1 %v5229_v31  ;;  %4575 = vmatprep.subr.bf16.mxu0 %v5236_v32  ;;  %v5286_v31 = vcombine.high %v1313_v16, %v1317_v17  ;;  %v1320_v32 = vld [vmem:[%s7768_s3 + $0x850] sm:$0xff] }
 0x24a   :  { %4747 = vmatprep.subr.bf16.mxu1 %v5238_v33  ;;  %v1324_v33 = vld [vmem:[%s7768_s3 + $0x870] sm:$0xff] }
 0x24b   :  { %v5291_v48 = vcombine.low %v1320_v32, %v1324_v33 }
 0x24c   :  { %4576 = vmatpush1.bf16.msra.mxu0 %v5235_v40  ;;  %v5292_v40 = vcombine.high %v1320_v32, %v1324_v33 }
 0x24d   :  { %4748 = vmatpush1.bf16.msra.mxu1 %v5237_v41  ;;  %4577 = vmatprep.subr.bf16.mxu0 %v5244_v45  ;;  %v1328_v41 = vld [vmem:[%s7768_s3 + $0x890] sm:$0xff] }
 0x24e   :  { %4749 = vmatprep.subr.bf16.mxu1 %v5246_v44  ;;  %v1332_v45 = vld [vmem:[%s7768_s3 + $0x8b0] sm:$0xff]  ;;  %v5294_v44 = vcombine.high %v1321_v37, %v1325_v38 }
 0x24f   :  { %v1376_v38 = vld [vmem:[%s7768_s3 + $0xa10] sm:$0xff] }
 0x250   :  { %4578 = vmatpush1.bf16.msra.mxu0 %v5243_v51  ;;  %v5300_v51 = vcombine.high %v1328_v41, %v1332_v45 }
 0x251   :  { %4750 = vmatpush1.bf16.msra.mxu1 %v5245_v52  ;;  %4579 = vmatprep.subr.bf16.mxu0 %v5252_v53  ;;  %v5302_v52 = vcombine.high %v1329_v46, %v1333_v47  ;;  %v1336_v53 = vld [vmem:[%s7768_s3 + $0x8d0] sm:$0xff] }
 0x252   :  { %4751 = vmatprep.subr.bf16.mxu1 %v5254_v55  ;;  %v1340_v55 = vld [vmem:[%s7768_s3 + $0x8f0] sm:$0xff] }
 0x253   :  { %v5308_v57 = vcombine.high %v1336_v53, %v1340_v55  ;;  %v5307_v1 = vcombine.low %v1336_v53, %v1340_v55 }
 0x254   :  { %4580 = vmatpush1.bf16.msra.mxu0 %v5251_v59  ;;  %v1344_v59 = vld [vmem:[%s7768_s3 + $0x910] sm:$0xff] }
 0x255   :  { %4752 = vmatpush1.bf16.msra.mxu1 %v5253_v60  ;;  %4581 = vmatprep.subr.bf16.mxu0 %v5260_v61  ;;  %v1348_v60 = vld [vmem:[%s7768_s3 + $0x930] sm:$0xff]  ;;  %v1345_v61 = vld [vmem:[%s7768_s3 + $0x918] sm:$0xff] }
 0x256   :  { %4753 = vmatprep.subr.bf16.mxu1 %v5262_v62  ;;  %v1349_v62 = vld [vmem:[%s7768_s3 + $0x938] sm:$0xff]  ;;  %v5316_v3 = vcombine.high %v1344_v59, %v1348_v60  ;;  %v5315_v5 = vcombine.low %v1344_v59, %v1348_v60 }
 0x257   :  { %v5318_v6 = vcombine.high %v1345_v61, %v1349_v62  ;;  %v5317_v7 = vcombine.low %v1345_v61, %v1349_v62 }
 0x258   :  { %4582 = vmatpush1.bf16.msra.mxu0 %v5259_v8  ;;  %v1352_v8 = vld [vmem:[%s7768_s3 + $0x950] sm:$0xff] }
 0x259   :  { %4754 = vmatpush1.bf16.msra.mxu1 %v5261_v9  ;;  %4583 = vmatprep.subr.bf16.mxu0 %v5268_v63  ;;  %v1356_v9 = vld [vmem:[%s7768_s3 + $0x970] sm:$0xff]  ;;  %v1353_v63 = vld [vmem:[%s7768_s3 + $0x958] sm:$0xff] }
 0x25a   :  { %4755 = vmatprep.subr.bf16.mxu1 %v5270_v4  ;;  %v1357_v4 = vld [vmem:[%s7768_s3 + $0x978] sm:$0xff]  ;;  %v5324_v10 = vcombine.high %v1352_v8, %v1356_v9  ;;  %v5323_v19 = vcombine.low %v1352_v8, %v1356_v9 }
 0x25b   :  { %v5326_v11 = vcombine.high %v1353_v63, %v1357_v4  ;;  %v5325_v15 = vcombine.low %v1353_v63, %v1357_v4 }
 0x25c   :  { %4584 = vmatpush1.bf16.msra.mxu0 %v5267_v12  ;;  %v1360_v12 = vld [vmem:[%s7768_s3 + $0x990] sm:$0xff] }
 0x25d   :  { %4756 = vmatpush1.bf16.msra.mxu1 %v5269_v13  ;;  %4585 = vmatprep.subr.bf16.mxu0 %v5276_v43  ;;  %v1364_v13 = vld [vmem:[%s7768_s3 + $0x9b0] sm:$0xff]  ;;  %v1361_v43 = vld [vmem:[%s7768_s3 + $0x998] sm:$0xff] }
 0x25e   :  { %4757 = vmatprep.subr.bf16.mxu1 %v5278_v14  ;;  %v1365_v14 = vld [vmem:[%s7768_s3 + $0x9b8] sm:$0xff]  ;;  %v5332_v16 = vcombine.high %v1360_v12, %v1364_v13  ;;  %v5331_v32 = vcombine.low %v1360_v12, %v1364_v13 }
 0x25f   :  { %v5334_v17 = vcombine.high %v1361_v43, %v1365_v14  ;;  %v5333_v33 = vcombine.low %v1361_v43, %v1365_v14 }
 0x260   :  { %4586 = vmatpush1.bf16.msra.mxu0 %v5275_v25  ;;  %v1368_v25 = vld [vmem:[%s7768_s3 + $0x9d0] sm:$0xff] }
 0x261   :  { %4758 = vmatpush1.bf16.msra.mxu1 %v5277_v28  ;;  %4598 = vmatprep.subr.bf16.mxu0 %v5284_v30  ;;  %v1372_v28 = vld [vmem:[%s7768_s3 + $0x9f0] sm:$0xff]  ;;  %v1369_v30 = vld [vmem:[%s7768_s3 + $0x9d8] sm:$0xff] }
 0x262   :  { %4770 = vmatprep.subr.bf16.mxu1 %v5286_v31  ;;  %v1373_v31 = vld [vmem:[%s7768_s3 + $0x9f8] sm:$0xff] }
 0x263   :  { %4588 = vmatmul.mubr.bf16.vlgmr.msra.gmra.mrb[12].mxu0 %v6339_v18  ;;  %v5342_v37 = vcombine.high %v1369_v30, %v1373_v31 }
 0x264   :  { %4760 = vmatmul.mubr.bf16.vlgmr.msra.gmra.mrb[12].mxu1 %v6339_v18  ;;  %4599 = vmatpush1.bf16.msra.mxu0 %v5283_v36  ;;  %v1337_v18 = vld [vmem:[%s7768_s3 + $0x8d8] sm:$0xff]  ;;  %v5340_v36 = vcombine.high %v1368_v25, %v1372_v28 }
 0x265   :  { %4630 = vmatprep.mubr.bf16.mxu0 %v6513_v42  ;;  %4771 = vmatpush1.bf16.msra.mxu1 %v5285_v0  ;;  %v5310_v58 = vcombine.high %v1337_v18, %v1341_v23  ;;  %v5309_v2 = vcombine.low %v1337_v18, %v1341_v23  ;;  %v1380_v0 = vld [vmem:[%s7768_s3 + $0xa30] sm:$0xff] }
 0x266   :  { %4802 = vmatprep.mubr.bf16.mxu1 %v6513_v42  ;;  %4600 = vmatprep.subr.bf16.mxu0 %v5292_v40  ;;  %v5299_v42 = vcombine.low %v1328_v41, %v1332_v45  ;;  %v1377_v40 = vld [vmem:[%s7768_s3 + $0xa18] sm:$0xff]  ;;  %v5339_v45 = vcombine.low %v1368_v25, %v1372_v28  ;;  %v5348_v46 = vcombine.high %v1376_v38, %v1380_v0 }
 0x267   :  { %4772 = vmatprep.subr.bf16.mxu1 %v5294_v44  ;;  %v1381_v41 = vld [vmem:[%s7768_s3 + $0xa38] sm:$0xff]  ;;  %v5341_v44 = vcombine.low %v1369_v30, %v1373_v31  ;;  %v5347_v53 = vcombine.low %v1376_v38, %v1380_v0 }
 0x268   :  { %4601 = vmatpush1.bf16.msra.mxu0 %v5291_v48  ;;  %v5350_v47 = vcombine.high %v1377_v40, %v1381_v41  ;;  %v1384_v48 = vld [vmem:[%s7768_s3 + $0xa50] sm:$0xff]  ;;  %v5349_v55 = vcombine.low %v1377_v40, %v1381_v41 }
 0x269   :  { %4773 = vmatpush1.bf16.msra.mxu1 %v5293_v49  ;;  %4602 = vmatprep.subr.bf16.mxu0 %v5300_v51  ;;  %v1388_v49 = vld [vmem:[%s7768_s3 + $0xa70] sm:$0xff]  ;;  %v1385_v51 = vld [vmem:[%s7768_s3 + $0xa58] sm:$0xff] }
 0x26a   :  { %4774 = vmatprep.subr.bf16.mxu1 %v5302_v52  ;;  %v1389_v52 = vld [vmem:[%s7768_s3 + $0xa78] sm:$0xff]  ;;  %v5356_v18 = vcombine.high %v1384_v48, %v1388_v49  ;;  %v5355_v59 = vcombine.low %v1384_v48, %v1388_v49 }
 0x26b   :  { %v5358_v23 = vcombine.high %v1385_v51, %v1389_v52  ;;  %v5357_v60 = vcombine.low %v1385_v51, %v1389_v52 }
 0x26c   :  { %4603 = vmatpush1.bf16.msra.mxu0 %v5299_v42  ;;  %v1392_v42 = vld [vmem:[%s7768_s3 + $0xa90] sm:$0xff] }
 0x26d   :  { %4775 = vmatpush1.bf16.msra.mxu1 %v5301_v56  ;;  %4604 = vmatprep.subr.bf16.mxu0 %v5308_v57  ;;  %v1396_v56 = vld [vmem:[%s7768_s3 + $0xab0] sm:$0xff]  ;;  %v1393_v57 = vld [vmem:[%s7768_s3 + $0xa98] sm:$0xff] }
 0x26e   :  { %4776 = vmatprep.subr.bf16.mxu1 %v5310_v58  ;;  %v1397_v58 = vld [vmem:[%s7768_s3 + $0xab8] sm:$0xff]  ;;  %v5364_v61 = vcombine.high %v1392_v42, %v1396_v56  ;;  %v5363_v8 = vcombine.low %v1392_v42, %v1396_v56 }
 0x26f   :  { %v5366_v62 = vcombine.high %v1393_v57, %v1397_v58  ;;  %v5365_v9 = vcombine.low %v1393_v57, %v1397_v58 }
 0x270   :  { %4605 = vmatpush1.bf16.msra.mxu0 %v5307_v1  ;;  %v1400_v1 = vld [vmem:[%s7768_s3 + $0xad0] sm:$0xff] }
 0x271   :  { %4777 = vmatpush1.bf16.msra.mxu1 %v5309_v2  ;;  %4606 = vmatprep.subr.bf16.mxu0 %v5316_v3  ;;  %v1404_v2 = vld [vmem:[%s7768_s3 + $0xaf0] sm:$0xff]  ;;  %v1401_v3 = vld [vmem:[%s7768_s3 + $0xad8] sm:$0xff] }
 0x272   :  { %4778 = vmatprep.subr.bf16.mxu1 %v5318_v6  ;;  %v1405_v6 = vld [vmem:[%s7768_s3 + $0xaf8] sm:$0xff]  ;;  %v5372_v63 = vcombine.high %v1400_v1, %v1404_v2  ;;  %v5371_v12 = vcombine.low %v1400_v1, %v1404_v2 }
 0x273   :  { %v5374_v4 = vcombine.high %v1401_v3, %v1405_v6  ;;  %v5373_v13 = vcombine.low %v1401_v3, %v1405_v6  ;;  %v1453_v1 = vld [vmem:[%s7768_s3 + $0xc78] sm:$0xff]  ;;  %v1456_v6 = vld [vmem:[%s7768_s3 + $0xc90] sm:$0xff] }
 0x274   :  { %4607 = vmatpush1.bf16.msra.mxu0 %v5315_v5  ;;  %v1408_v5 = vld [vmem:[%s7768_s3 + $0xb10] sm:$0xff] }
 0x275   :  { %4779 = vmatpush1.bf16.msra.mxu1 %v5317_v7  ;;  %4608 = vmatprep.subr.bf16.mxu0 %v5324_v10  ;;  %v1412_v7 = vld [vmem:[%s7768_s3 + $0xb30] sm:$0xff]  ;;  %v1409_v10 = vld [vmem:[%s7768_s3 + $0xb18] sm:$0xff] }
 0x276   :  { %4780 = vmatprep.subr.bf16.mxu1 %v5326_v11  ;;  %v1413_v11 = vld [vmem:[%s7768_s3 + $0xb38] sm:$0xff]  ;;  %v5380_v43 = vcombine.high %v1408_v5, %v1412_v7  ;;  %v5379_v25 = vcombine.low %v1408_v5, %v1412_v7 }
 0x277   :  { %v5382_v14 = vcombine.high %v1409_v10, %v1413_v11  ;;  %v5381_v28 = vcombine.low %v1409_v10, %v1413_v11 }
 0x278   :  { %4609 = vmatpush1.bf16.msra.mxu0 %v5323_v19  ;;  %v1416_v19 = vld [vmem:[%s7768_s3 + $0xb50] sm:$0xff] }
 0x279   :  { %4781 = vmatpush1.bf16.msra.mxu1 %v5325_v15  ;;  %4610 = vmatprep.subr.bf16.mxu0 %v5332_v16  ;;  %v1420_v15 = vld [vmem:[%s7768_s3 + $0xb70] sm:$0xff]  ;;  %v1417_v16 = vld [vmem:[%s7768_s3 + $0xb58] sm:$0xff] }
 0x27a   :  { %4782 = vmatprep.subr.bf16.mxu1 %v5334_v17  ;;  %v1421_v17 = vld [vmem:[%s7768_s3 + $0xb78] sm:$0xff]  ;;  %v5388_v30 = vcombine.high %v1416_v19, %v1420_v15  ;;  %v5387_v38 = vcombine.low %v1416_v19, %v1420_v15 }
 0x27b   :  { %v5390_v31 = vcombine.high %v1417_v16, %v1421_v17  ;;  %v5389_v0 = vcombine.low %v1417_v16, %v1421_v17  ;;  %v1472_v16 = vld [vmem:[%s7768_s3 + $0xd10] sm:$0xff] }
 0x27c   :  { %4611 = vmatpush1.bf16.msra.mxu0 %v5331_v32  ;;  %v1424_v32 = vld [vmem:[%s7768_s3 + $0xb90] sm:$0xff] }
 0x27d   :  { %4783 = vmatpush1.bf16.msra.mxu1 %v5333_v33  ;;  %4612 = vmatprep.subr.bf16.mxu0 %v5340_v36  ;;  %v1428_v33 = vld [vmem:[%s7768_s3 + $0xbb0] sm:$0xff]  ;;  %v1425_v36 = vld [vmem:[%s7768_s3 + $0xb98] sm:$0xff] }
 0x27e   :  { %4784 = vmatprep.subr.bf16.mxu1 %v5342_v37  ;;  %v1429_v37 = vld [vmem:[%s7768_s3 + $0xbb8] sm:$0xff]  ;;  %v5396_v40 = vcombine.high %v1424_v32, %v1428_v33  ;;  %v5395_v48 = vcombine.low %v1424_v32, %v1428_v33  ;;  %v1476_v17 = vld [vmem:[%s7768_s3 + $0xd30] sm:$0xff] }
 0x27f   :  { %v5398_v41 = vcombine.high %v1425_v36, %v1429_v37  ;;  %v5397_v49 = vcombine.low %v1425_v36, %v1429_v37  ;;  %v5444_v32 = vcombine.high %v1472_v16, %v1476_v17  ;;  %v1480_v36 = vld [vmem:[%s7768_s3 + $0xd50] sm:$0xff] }
 0x280   :  { %4613 = vmatpush1.bf16.msra.mxu0 %v5339_v45  ;;  %v1432_v45 = vld [vmem:[%s7768_s3 + $0xbd0] sm:$0xff] }
 0x281   :  { %4785 = vmatpush1.bf16.msra.mxu1 %v5341_v44  ;;  %4614 = vmatprep.subr.bf16.mxu0 %v5348_v46  ;;  %v1436_v44 = vld [vmem:[%s7768_s3 + $0xbf0] sm:$0xff]  ;;  %v1433_v46 = vld [vmem:[%s7768_s3 + $0xbd8] sm:$0xff] }
 0x282   :  { %4786 = vmatprep.subr.bf16.mxu1 %v5350_v47  ;;  %v1437_v47 = vld [vmem:[%s7768_s3 + $0xbf8] sm:$0xff]  ;;  %v5404_v51 = vcombine.high %v1432_v45, %v1436_v44  ;;  %v5403_v42 = vcombine.low %v1432_v45, %v1436_v44  ;;  %v1484_v37 = vld [vmem:[%s7768_s3 + $0xd70] sm:$0xff] }
 0x283   :  { %v5406_v52 = vcombine.high %v1433_v46, %v1437_v47  ;;  %v5405_v56 = vcombine.low %v1433_v46, %v1437_v47  ;;  %v5452_v44 = vcombine.high %v1480_v36, %v1484_v37  ;;  %v1488_v47 = vld [vmem:[%s7768_s3 + $0xd90] sm:$0xff] }
 0x284   :  { %4615 = vmatpush1.bf16.msra.mxu0 %v5347_v53  ;;  %v1440_v53 = vld [vmem:[%s7768_s3 + $0xc10] sm:$0xff] }
 0x285   :  { %4787 = vmatpush1.bf16.msra.mxu1 %v5349_v55  ;;  %4616 = vmatprep.subr.bf16.mxu0 %v5356_v18  ;;  %v1444_v55 = vld [vmem:[%s7768_s3 + $0xc30] sm:$0xff]  ;;  %v1441_v18 = vld [vmem:[%s7768_s3 + $0xc18] sm:$0xff] }
 0x286   :  { %4788 = vmatprep.subr.bf16.mxu1 %v5358_v23  ;;  %v1445_v23 = vld [vmem:[%s7768_s3 + $0xc38] sm:$0xff]  ;;  %v5412_v57 = vcombine.high %v1440_v53, %v1444_v55 }
 0x287   :  { %v5414_v58 = vcombine.high %v1441_v18, %v1445_v23  ;;  %v5413_v2 = vcombine.low %v1441_v18, %v1445_v23  ;;  %v5451_v18 = vcombine.low %v1480_v36, %v1484_v37 }
 0x288   :  { %4617 = vmatpush1.bf16.msra.mxu0 %v5355_v59  ;;  %v1448_v59 = vld [vmem:[%s7768_s3 + $0xc50] sm:$0xff] }
 0x289   :  { %4789 = vmatpush1.bf16.msra.mxu1 %v5357_v60  ;;  %4618 = vmatprep.subr.bf16.mxu0 %v5364_v61  ;;  %v1452_v60 = vld [vmem:[%s7768_s3 + $0xc70] sm:$0xff]  ;;  %v5411_v61 = vcombine.low %v1440_v53, %v1444_v55  ;;  %v1493_v53 = vld [vmem:[%s7768_s3 + $0xdb8] sm:$0xff] }
 0x28a   :  { %4790 = vmatprep.subr.bf16.mxu1 %v5366_v62  ;;  %v1449_v62 = vld [vmem:[%s7768_s3 + $0xc58] sm:$0xff]  ;;  %v5420_v3 = vcombine.high %v1448_v59, %v1452_v60  ;;  %v5419_v5 = vcombine.low %v1448_v59, %v1452_v60 }
 0x28b   :  { %v5421_v7 = vcombine.low %v1449_v62, %v1453_v1 }
 0x28c   :  { %4619 = vmatpush1.bf16.msra.mxu0 %v5363_v8  ;;  %v1460_v8 = vld [vmem:[%s7768_s3 + $0xcb0] sm:$0xff] }
 0x28d   :  { %4791 = vmatpush1.bf16.msra.mxu1 %v5365_v9  ;;  %4620 = vmatprep.subr.bf16.mxu0 %v5372_v63  ;;  %v5422_v9 = vcombine.high %v1449_v62, %v1453_v1  ;;  %v1457_v63 = vld [vmem:[%s7768_s3 + $0xc98] sm:$0xff]  ;;  %v5428_v10 = vcombine.high %v1456_v6, %v1460_v8 }
 0x28e   :  { %4792 = vmatprep.subr.bf16.mxu1 %v5374_v4  ;;  %v1461_v4 = vld [vmem:[%s7768_s3 + $0xcb8] sm:$0xff] }
 0x28f   :  { %v5430_v11 = vcombine.high %v1457_v63, %v1461_v4 }
 0x290   :  { %4621 = vmatpush1.bf16.msra.mxu0 %v5371_v12  ;;  %v1464_v12 = vld [vmem:[%s7768_s3 + $0xcd0] sm:$0xff] }
 0x291   :  { %4793 = vmatpush1.bf16.msra.mxu1 %v5373_v13  ;;  %4622 = vmatprep.subr.bf16.mxu0 %v5380_v43  ;;  %v1468_v13 = vld [vmem:[%s7768_s3 + $0xcf0] sm:$0xff]  ;;  %v1469_v43 = vld [vmem:[%s7768_s3 + $0xcf8] sm:$0xff] }
 0x292   :  { %4794 = vmatprep.subr.bf16.mxu1 %v5382_v14  ;;  %v5429_v14 = vcombine.low %v1457_v63, %v1461_v4  ;;  %v5436_v19 = vcombine.high %v1464_v12, %v1468_v13 }
 0x294   :  { %4623 = vmatpush1.bf16.msra.mxu0 %v5379_v25  ;;  %v1473_v25 = vld [vmem:[%s7768_s3 + $0xd18] sm:$0xff] }
 0x295   :  { %4795 = vmatpush1.bf16.msra.mxu1 %v5381_v28  ;;  %4624 = vmatprep.subr.bf16.mxu0 %v5388_v30  ;;  %v1477_v28 = vld [vmem:[%s7768_s3 + $0xd38] sm:$0xff]  ;;  %v5435_v30 = vcombine.low %v1464_v12, %v1468_v13 }
 0x296   :  { %4796 = vmatprep.subr.bf16.mxu1 %v5390_v31  ;;  %v5446_v33 = vcombine.high %v1473_v25, %v1477_v28  ;;  %v5445_v45 = vcombine.low %v1473_v25, %v1477_v28  ;;  %v1505_v28 = vld [vmem:[%s7768_s3 + $0xe18] sm:$0xff] }
 0x298   :  { %4625 = vmatpush1.bf16.msra.mxu0 %v5387_v38  ;;  %v1481_v38 = vld [vmem:[%s7768_s3 + $0xd58] sm:$0xff] }
 0x299   :  { %4797 = vmatpush1.bf16.msra.mxu1 %v5389_v0  ;;  %4626 = vmatprep.subr.bf16.mxu0 %v5396_v40  ;;  %v1485_v0 = vld [vmem:[%s7768_s3 + $0xd78] sm:$0xff]  ;;  %v5443_v40 = vcombine.low %v1472_v16, %v1476_v17  ;;  %v1508_v16 = vld [vmem:[%s7768_s3 + $0xe30] sm:$0xff] }
 0x29a   :  { %4798 = vmatprep.subr.bf16.mxu1 %v5398_v41  ;;  %v7560_v41 = vld [vmem:[%s7770_s4] sm:$0xff]  ;;  %v5454_v46 = vcombine.high %v1481_v38, %v1485_v0  ;;  %v5453_v23 = vcombine.low %v1481_v38, %v1485_v0  ;;  %v1512_v0 = vld [vmem:[%s7768_s3 + $0xe50] sm:$0xff] }
 0x29b   :  { %v1575_v55 = vrot.slane %v7560_v41, %v158_v24  ;;  %v7597_v24 = vld [vmem:[%s7768_s3 + $0xdd8] sm:$0xff] }
 0x29c   :  { %4627 = vmatpush1.bf16.msra.mxu0 %v5395_v48  ;;  %v1492_v48 = vld [vmem:[%s7768_s3 + $0xdb0] sm:$0xff] }
 0x29d   :  { %4799 = vmatpush1.bf16.msra.mxu1 %v5397_v49  ;;  %4628 = vmatprep.subr.bf16.mxu0 %v5404_v51  ;;  %v1571_v49 = vrot.slane %v7560_v41, %v154_v21  ;;  %v1579_v51 = vrot.slane %v7560_v41, %v162_v35  ;;  %v1583_v21 = vrot.slane %v7560_v41, %v166_v39  ;;  %v7589_v35 = vld [vmem:[%s7768_s3 + $0xdd0] sm:$0xff]  ;;  %v1501_v39 = vld [vmem:[%s7768_s3 + $0xdf8] sm:$0xff] }
 0x29e   :  { %4800 = vmatprep.subr.bf16.mxu1 %v5406_v52  ;;  %v1489_v52 = vld [vmem:[%s7768_s3 + $0xd98] sm:$0xff]  ;;  %v5469_v36 = vcombine.low %v7597_v24, %v1501_v39 }
 0x29f   :  { %v5462_v59 = vcombine.high %v1489_v52, %v1493_v53 }
 0x2a0   :  { %4629 = vmatpush1.bf16.msra.mxu0 %v5403_v42  ;;  %v5460_v42 = vcombine.high %v1488_v47, %v1492_v48 }
 0x2a1   :  { %4801 = vmatpush1.bf16.msra.mxu1 %v5405_v56  ;;  %4641 = vmatprep.subr.bf16.mxu0 %v5412_v57  ;;  %v1500_v56 = vld [vmem:[%s7768_s3 + $0xdf0] sm:$0xff] }
 0x2a2   :  { %4813 = vmatprep.subr.bf16.mxu1 %v5414_v58  ;;  %v5468_v4 = vcombine.high %v7589_v35, %v1500_v56 }
 0x2a3   :  { %4631 = vmatmul.mubr.bf16.vlgmr.msra.gmra.mrb[12].mxu0 %v6511_v22 }
 0x2a4   :  { %4803 = vmatmul.mubr.bf16.vlgmr.msra.gmra.mrb[12].mxu1 %v6511_v22  ;;  %4642 = vmatpush1.bf16.msra.mxu0 %v5411_v61  ;;  %v1465_v22 = vld [vmem:[%s7768_s3 + $0xcd8] sm:$0xff] }
 0x2a5   :  { %4673 = vmatprep.mubr.bf16.mxu0 %v6563_v27  ;;  %4814 = vmatpush1.bf16.msra.mxu1 %v5413_v2  ;;  %v5438_v15 = vcombine.high %v1465_v22, %v1469_v43  ;;  %v5437_v31 = vcombine.low %v1465_v22, %v1469_v43  ;;  %v5459_v2 = vcombine.low %v1488_v47, %v1492_v48 }
 0x2a6   :  { %4845 = vmatprep.mubr.bf16.mxu1 %v6563_v27  ;;  %4643 = vmatprep.subr.bf16.mxu0 %v5420_v3  ;;  %v5427_v27 = vcombine.low %v1456_v6, %v1460_v8  ;;  %v5461_v3 = vcombine.low %v1489_v52, %v1493_v53  ;;  %v1524_v52 = vld [vmem:[%s7768_s3 + $0xeb0] sm:$0xff]  ;;  %v1521_v53 = vld [vmem:[%s7768_s3 + $0xe98] sm:$0xff] }
 0x2a7   :  { %4815 = vmatprep.subr.bf16.mxu1 %v5422_v9 }
 0x2a8   :  { %4644 = vmatpush1.bf16.msra.mxu0 %v5419_v5  ;;  %v5470_v5 = vcombine.high %v7597_v24, %v1501_v39  ;;  %v1529_v24 = vld [vmem:[%s7768_s3 + $0xed8] sm:$0xff] }
 0x2a9   :  { %4816 = vmatpush1.bf16.msra.mxu1 %v5421_v7  ;;  %4645 = vmatprep.subr.bf16.mxu0 %v5428_v10  ;;  %v1533_v39 = vld [vmem:[%s7768_s3 + $0xef8] sm:$0xff] }
 0x2aa   :  { %4817 = vmatprep.subr.bf16.mxu1 %v5430_v11 }
 0x2ac   :  { %4646 = vmatpush1.bf16.msra.mxu0 %v5427_v27 }
 0x2ad   :  { %4818 = vmatpush1.bf16.msra.mxu1 %v5429_v14  ;;  %4647 = vmatprep.subr.bf16.mxu0 %v5436_v19 }
 0x2ae   :  { %4819 = vmatprep.subr.bf16.mxu1 %v5438_v15  ;;  %v1504_v15 = vld [vmem:[%s7768_s3 + $0xe10] sm:$0xff] }
 0x2af   :  { %v5476_v37 = vcombine.high %v1504_v15, %v1508_v16 }
 0x2b0   :  { %4648 = vmatpush1.bf16.msra.mxu0 %v5435_v30  ;;  %v1509_v30 = vld [vmem:[%s7768_s3 + $0xe38] sm:$0xff] }
 0x2b1   :  { %4820 = vmatpush1.bf16.msra.mxu1 %v5437_v31  ;;  %4649 = vmatprep.subr.bf16.mxu0 %v5444_v32  ;;  %v5478_v38 = vcombine.high %v1505_v28, %v1509_v30  ;;  %v5477_v47 = vcombine.low %v1505_v28, %v1509_v30  ;;  %v1564_v28 = vld [vmem:[%s7768_s3 + $0xff0] sm:$0xff]  ;;  %v1561_v30 = vld [vmem:[%s7768_s3 + $0xfd8] sm:$0xff] }
 0x2b2   :  { %4821 = vmatprep.subr.bf16.mxu1 %v5446_v33  ;;  %v5467_v33 = vcombine.low %v7589_v35, %v1500_v56  ;;  %v1532_v56 = vld [vmem:[%s7768_s3 + $0xef0] sm:$0xff] }
 0x2b4   :  { %4650 = vmatpush1.bf16.msra.mxu0 %v5443_v40  ;;  %v1516_v40 = vld [vmem:[%s7768_s3 + $0xe70] sm:$0xff] }
 0x2b5   :  { %4822 = vmatpush1.bf16.msra.mxu1 %v5445_v45  ;;  %4651 = vmatprep.subr.bf16.mxu0 %v5452_v44  ;;  %v1513_v45 = vld [vmem:[%s7768_s3 + $0xe58] sm:$0xff]  ;;  %v5484_v48 = vcombine.high %v1512_v0, %v1516_v40 }
 0x2b6   :  { %v4331_v57 = vpop.f32.mrb[8].mxu0  ;;  %v4503_v58 = vpop.f32.mrb[8].mxu1  ;;  %4823 = vmatprep.subr.bf16.mxu1 %v5454_v46  ;;  %v1517_v44 = vld [vmem:[%s7768_s3 + $0xe78] sm:$0xff]  ;;  %v5475_v46 = vcombine.low %v1504_v15, %v1508_v16 }
 0x2b7   :  { %v5535_v60 = vadd.f32 %v4331_v57, %v1571_v49  ;;  %v5539_v61 = vadd.f32 %v4503_v58, %v1579_v51  ;;  %v4333_v62 = vpop.f32.mrb[9].mxu0  ;;  %v4505_v1 = vpop.f32.mrb[9].mxu1 }
 0x2b8   :  { %v5536_v6 = vadd.f32 %v4333_v62, %v1575_v55  ;;  %v5540_v8 = vadd.f32 %v4505_v1, %v1583_v21  ;;  %v4335_v9 = vpop.f32.mrb[10].mxu0  ;;  %v4507_v63 = vpop.f32.mrb[10].mxu1  ;;  %4652 = vmatpush1.bf16.msra.mxu0 %v5451_v18  ;;  %v5485_v18 = vcombine.low %v1513_v45, %v1517_v44  ;;  %v1540_v62 = vld [vmem:[%s7768_s3 + $0xf30] sm:$0xff]  ;;  %v1537_v1 = vld [vmem:[%s7768_s3 + $0xf18] sm:$0xff] }
 0x2b9   :  { %v4856_v7 = vmax.f32 %v5535_v60, 0.0  ;;  %v4858_v10 = vmax.f32 %v5539_v61, 0.0  ;;  %v5537_v11 = vadd.f32 %v4335_v9, %v1571_v49  ;;  %v5541_v12 = vadd.f32 %v4507_v63, %v1579_v51  ;;  %4824 = vmatpush1.bf16.msra.mxu1 %v5453_v23  ;;  %v4337_v13 = vpop.f32.mrb[11].mxu0  ;;  %v4509_v22 = vpop.f32.mrb[11].mxu1  ;;  %4653 = vmatprep.subr.bf16.mxu0 %v5460_v42  ;;  %v1520_v51 = vld [vmem:[%s7768_s3 + $0xe90] sm:$0xff] }
 0x2ba   :  { %v4857_v43 = vmax.f32 %v5536_v6, 0.0  ;;  %v4859_v27 = vmax.f32 %v5540_v8, 0.0  ;;  %v5538_v14 = vadd.f32 %v4337_v13, %v1575_v55  ;;  %v5542_v19 = vadd.f32 %v4509_v22, %v1583_v21  ;;  %4825 = vmatprep.subr.bf16.mxu1 %v5462_v59  ;;  %v1525_v55 = vld [vmem:[%s7768_s3 + $0xeb8] sm:$0xff]  ;;  %v1528_v42 = vld [vmem:[%s7768_s3 + $0xed0] sm:$0xff] }
 0x2bb   :  { %4872 = vst [vmem:[%s7771_s5] sm:$0xff] %v4856_v7  ;;  %4874 = vst [vmem:[%s7771_s5 + $0x10] sm:$0xff] %v4858_v10  ;;  %v4864_v17 = vmax.f32 %v5537_v11, 0.0  ;;  %v4866_v25 = vmax.f32 %v5541_v12, 0.0  ;;  %v5486_v49 = vcombine.high %v1513_v45, %v1517_v44  ;;  %v5483_v21 = vcombine.low %v1512_v0, %v1516_v40  ;;  %v1536_v61 = vld [vmem:[%s7768_s3 + $0xf10] sm:$0xff]  ;;  %v1549_v7 = vld [vmem:[%s7768_s3 + $0xf78] sm:$0xff] }
 0x2bc   :  { %4873 = vst [vmem:[%s7771_s5 + $0x8] sm:$0xff] %v4857_v43  ;;  %4875 = vst [vmem:[%s7771_s5 + $0x18] sm:$0xff] %v4859_v27  ;;  %v4865_v31 = vmax.f32 %v5538_v14, 0.0  ;;  %v4867_v32 = vmax.f32 %v5542_v19, 0.0  ;;  %4654 = vmatpush1.bf16.msra.mxu0 %v5459_v2  ;;  %v5492_v35 = vcombine.high %v1520_v51, %v1524_v52  ;;  %v5494_v23 = vcombine.high %v1521_v53, %v1525_v55  ;;  %v1541_v2 = vld [vmem:[%s7768_s3 + $0xf38] sm:$0xff]  ;;  %v1544_v63 = vld [vmem:[%s7768_s3 + $0xf50] sm:$0xff] }
 0x2bd   :  { %4881 = vst [vmem:[%s7771_s5 + $0x40] sm:$0xff] %v4864_v17  ;;  %4883 = vst [vmem:[%s7771_s5 + $0x50] sm:$0xff] %v4866_v25  ;;  %4826 = vmatpush1.bf16.msra.mxu1 %v5461_v3  ;;  %4655 = vmatprep.subr.bf16.mxu0 %v5468_v4  ;;  %v5491_v57 = vcombine.low %v1520_v51, %v1524_v52  ;;  %v5493_v58 = vcombine.low %v1521_v53, %v1525_v55  ;;  %v1548_v4 = vld [vmem:[%s7768_s3 + $0xf70] sm:$0xff]  ;;  %v1553_v27 = vld [vmem:[%s7768_s3 + $0xf98] sm:$0xff] }
 0x2be   :  { %4882 = vst [vmem:[%s7771_s5 + $0x48] sm:$0xff] %v4865_v31  ;;  %4884 = vst [vmem:[%s7771_s5 + $0x58] sm:$0xff] %v4867_v32  ;;  %4827 = vmatprep.subr.bf16.mxu1 %v5470_v5  ;;  %v5500_v59 = vcombine.high %v1528_v42, %v1532_v56  ;;  %v5502_v60 = vcombine.high %v1529_v24, %v1533_v39  ;;  %v5499_v3 = vcombine.low %v1528_v42, %v1532_v56  ;;  %v1545_v5 = vld [vmem:[%s7768_s3 + $0xf58] sm:$0xff]  ;;  %v1552_v22 = vld [vmem:[%s7768_s3 + $0xf90] sm:$0xff] }
 0x2bf   :  { %v5501_v6 = vcombine.low %v1529_v24, %v1533_v39  ;;  %v5508_v8 = vcombine.high %v1536_v61, %v1540_v62  ;;  %v5510_v9 = vcombine.high %v1537_v1, %v1541_v2  ;;  %v5507_v10 = vcombine.low %v1536_v61, %v1540_v62  ;;  %v1556_v43 = vld [vmem:[%s7768_s3 + $0xfb0] sm:$0xff]  ;;  %v1557_v14 = vld [vmem:[%s7768_s3 + $0xfb8] sm:$0xff] }
 0x2c0   :  { %4656 = vmatpush1.bf16.msra.mxu0 %v5467_v33  ;;  %v5509_v11 = vcombine.low %v1537_v1, %v1541_v2  ;;  %v5516_v12 = vcombine.high %v1544_v63, %v1548_v4  ;;  %v5518_v13 = vcombine.high %v1545_v5, %v1549_v7  ;;  %v5515_v19 = vcombine.low %v1544_v63, %v1548_v4  ;;  %v1560_v25 = vld [vmem:[%s7768_s3 + $0xfd0] sm:$0xff]  ;;  %v1565_v31 = vld [vmem:[%s7768_s3 + $0xff8] sm:$0xff] }
 0x2c1   :  { %4828 = vmatpush1.bf16.msra.mxu1 %v5469_v36  ;;  %4657 = vmatprep.subr.bf16.mxu0 %v5476_v37  ;;  %v5517_v15 = vcombine.low %v1545_v5, %v1549_v7  ;;  %v5524_v16 = vcombine.high %v1552_v22, %v1556_v43  ;;  %v5526_v17 = vcombine.high %v1553_v27, %v1557_v14 }
 0x2c2   :  { %4829 = vmatprep.subr.bf16.mxu1 %v5478_v38  ;;  %v5523_v32 = vcombine.low %v1552_v22, %v1556_v43  ;;  %v5525_v33 = vcombine.low %v1553_v27, %v1557_v14  ;;  %v5532_v36 = vcombine.high %v1560_v25, %v1564_v28  ;;  %v5534_v37 = vcombine.high %v1561_v30, %v1565_v31 }
 0x2c3   :  { %v5531_v38 = vcombine.low %v1560_v25, %v1564_v28  ;;  %v5533_v0 = vcombine.low %v1561_v30, %v1565_v31  ;;  %v1587_v40 = vrot.slane %v7560_v41, %v170_v50  ;;  %v1595_v45 = vrot.slane %v7560_v41, %v178_v29 }
 0x2c4   :  { %4658 = vmatpush1.bf16.msra.mxu0 %v5475_v46  ;;  %v1591_v44 = vrot.slane %v7560_v41, %v174_v54  ;;  %v1599_v46 = vrot.slane %v7560_v41, %v182_v34 }
 0x2c5   :  { %4830 = vmatpush1.bf16.msra.mxu1 %v5477_v47  ;;  %4659 = vmatprep.subr.bf16.mxu0 %v5484_v48 }
 0x2c6   :  { %4831 = vmatprep.subr.bf16.mxu1 %v5486_v49 }
 0x2c8   :  { %4660 = vmatpush1.bf16.msra.mxu0 %v5483_v21 }
 0x2c9   :  { %4832 = vmatpush1.bf16.msra.mxu1 %v5485_v18  ;;  %4661 = vmatprep.subr.bf16.mxu0 %v5492_v35 }
 0x2ca   :  { %4833 = vmatprep.subr.bf16.mxu1 %v5494_v23 }
 0x2cc   :  { %4662 = vmatpush1.bf16.msra.mxu0 %v5491_v57 }
 0x2cd   :  { %4834 = vmatpush1.bf16.msra.mxu1 %v5493_v58  ;;  %4663 = vmatprep.subr.bf16.mxu0 %v5500_v59 }
 0x2ce   :  { %4835 = vmatprep.subr.bf16.mxu1 %v5502_v60 }
 0x2d0   :  { %4664 = vmatpush1.bf16.msra.mxu0 %v5499_v3 }
 0x2d1   :  { %4836 = vmatpush1.bf16.msra.mxu1 %v5501_v6  ;;  %4665 = vmatprep.subr.bf16.mxu0 %v5508_v8 }
 0x2d2   :  { %4837 = vmatprep.subr.bf16.mxu1 %v5510_v9 }
 0x2d4   :  { %4666 = vmatpush1.bf16.msra.mxu0 %v5507_v10 }
 0x2d5   :  { %4838 = vmatpush1.bf16.msra.mxu1 %v5509_v11  ;;  %4667 = vmatprep.subr.bf16.mxu0 %v5516_v12 }
 0x2d6   :  { %4839 = vmatprep.subr.bf16.mxu1 %v5518_v13 }
 0x2d8   :  { %4668 = vmatpush1.bf16.msra.mxu0 %v5515_v19 }
 0x2d9   :  { %4840 = vmatpush1.bf16.msra.mxu1 %v5517_v15  ;;  %4669 = vmatprep.subr.bf16.mxu0 %v5524_v16 }
 0x2da   :  { %4841 = vmatprep.subr.bf16.mxu1 %v5526_v17 }
 0x2dc   :  { %4670 = vmatpush1.bf16.msra.mxu0 %v5523_v32 }
 0x2dd   :  { %4842 = vmatpush1.bf16.msra.mxu1 %v5525_v33  ;;  %4671 = vmatprep.subr.bf16.mxu0 %v5532_v36 }
 0x2de   :  { %4843 = vmatprep.subr.bf16.mxu1 %v5534_v37 }
 0x2e0   :  { %4672 = vmatpush1.bf16.msra.mxu0 %v5531_v38 }
 0x2e1   :  { %4844 = vmatpush1.bf16.msra.mxu1 %v5533_v0 }
 0x2e3   :  { %4674 = vmatmul.mubr.bf16.vlgmr.msra.gmra.mrb[12].mxu0 %v6561_v26 }
 0x2e4   :  { %4846 = vmatmul.mubr.bf16.vlgmr.msra.gmra.mrb[12].mxu1 %v6561_v26 }
 0x3b6   :  { %v4675_v47 = vpop.f32.mrb[12].mxu0 }
 0x3b7   :  { %v5543_v48 = vadd.f32 %v4675_v47, %v1587_v40  ;;  %v4847_v49 = vpop.f32.mrb[12].mxu1  ;;  %v4677_v26 = vpop.f32.mrb[13].mxu0 }
 0x3b8   :  { %v5547_v51 = vadd.f32 %v4847_v49, %v1595_v45  ;;  %v5544_v52 = vadd.f32 %v4677_v26, %v1591_v44  ;;  %v4849_v53 = vpop.f32.mrb[13].mxu1  ;;  %v4679_v50 = vpop.f32.mrb[14].mxu0 }
 0x3b9   :  { %v4860_v55 = vmax.f32 %v5543_v48, 0.0  ;;  %v5548_v21 = vadd.f32 %v4849_v53, %v1599_v46  ;;  %v5545_v29 = vadd.f32 %v4679_v50, %v1587_v40  ;;  %v4851_v18 = vpop.f32.mrb[14].mxu1  ;;  %v4681_v35 = vpop.f32.mrb[15].mxu0 }
 0x3ba   :  { %v4862_v23 = vmax.f32 %v5547_v51, 0.0  ;;  %v4861_v54 = vmax.f32 %v5544_v52, 0.0  ;;  %v5549_v42 = vadd.f32 %v4851_v18, %v1595_v45  ;;  %v5546_v20 = vadd.f32 %v4681_v35, %v1591_v44  ;;  %v4853_v56 = vpop.f32.mrb[15].mxu1 }
 0x3bb   :  { %4876 = vst [vmem:[%s7771_s5 + $0x20] sm:$0xff] %v4860_v55  ;;  %v4863_v34 = vmax.f32 %v5548_v21, 0.0  ;;  %v4868_v41 = vmax.f32 %v5545_v29, 0.0  ;;  %v5550_v24 = vadd.f32 %v4853_v56, %v1599_v46 }
 0x3bc   :  { %4878 = vst [vmem:[%s7771_s5 + $0x30] sm:$0xff] %v4862_v23  ;;  %4877 = vst [vmem:[%s7771_s5 + $0x28] sm:$0xff] %v4861_v54  ;;  %v4870_v39 = vmax.f32 %v5549_v42, 0.0  ;;  %v4869_v57 = vmax.f32 %v5546_v20, 0.0 }
 0x3bd   :  { %4880 = vst.msk [vmem:[%s7771_s5 + $0x38] sm:$0xff] %vm4879_vm0, %v4863_v34  ;;  %4885 = vst [vmem:[%s7771_s5 + $0x60] sm:$0xff] %v4868_v41  ;;  %v4871_v58 = vmax.f32 %v5550_v24, 0.0 }
 0x3be   :  { %4887 = vst [vmem:[%s7771_s5 + $0x70] sm:$0xff] %v4870_v39  ;;  %4886 = vst [vmem:[%s7771_s5 + $0x68] sm:$0xff] %v4869_v57 }
 0x3bf   :  { %4888 = vst.msk [vmem:[%s7771_s5 + $0x78] sm:$0xff] %vm4879_vm0, %v4871_v58 }

</bundles_post_ra>
